<compile_context>
chip_gen: v5e
topology: v5e:2x2
jax: 0.10.0
libtpu: 0.0.40
codegen_flags: <defaults>
</compile_context>

<pallas_src>
import functools

import numpy as np
import jax
import jax.numpy as jnp
from jax.experimental import pallas as pl
from jax.experimental.pallas import tpu as pltpu


# ----------------------------------------------------------------------------
# generation-aware VMEM budget
# ----------------------------------------------------------------------------

def _round_up(x, m):
    return -(-x // m) * m


try:
    _VMEM_CAP = int(pltpu.get_tpu_info().vmem_capacity_bytes)
except Exception:
    _VMEM_CAP = 64 * 1024 * 1024          # v7x-safe fallback
_VMEM_LIMIT = min(int(_VMEM_CAP * 3 // 4), 96 * 1024 * 1024)
_TILE_BUDGET = min(_VMEM_LIMIT // 2, 32 * 1024 * 1024)


def _pick_row_tile(m, per_row_bytes, budget, pref=1024):
    """Pick a row tile TM (multiple of 8) and padded row count Mp = k*TM >= m."""
    m8 = _round_up(max(m, 1), 8)
    cap = max(8, (budget // max(per_row_bytes, 1)) // 8 * 8)
    tmax = max(8, min(pref, cap, m8))
    nsteps = -(-m8 // tmax)
    if nsteps == 1 and m8 > 8:
        nsteps = 2                      # keep >=2 grid steps when possible
    tm = _round_up(-(-m8 // nsteps), 8)
    return tm, nsteps * tm


def _pad_rows_to(a, axis, target):
    n = a.shape[axis]
    if n == target:
        return a
    pad = [(0, 0)] * a.ndim
    pad[axis] = (0, target - n)
    return jnp.pad(a, pad)


# ----------------------------------------------------------------------------
# Pallas kernels
# ----------------------------------------------------------------------------

def _make_mm_kernel(act, has_res):
    # plain 1x1-conv / linear:  A(TM,K) @ W(K,Np) + bias -> act (+ residual)
    def kernel(*refs):
        if has_res:
            a_ref, w_ref, b_ref, res_ref, o_ref = refs
        else:
            a_ref, w_ref, b_ref, o_ref = refs
        y = jnp.dot(a_ref[...], w_ref[...],
                    preferred_element_type=jnp.float32) + b_ref[...]
        if act == "silu":
            y = y * jax.nn.sigmoid(y)
        elif act == "sigmoid":
            y = jax.nn.sigmoid(y)
        if has_res:
            y = y + res_ref[...].astype(jnp.float32)
        o_ref[...] = y.astype(o_ref.dtype)
    return kernel


def _make_halo_conv_kernel(offsets, guard, tm, act, has_res):
    # stride-1 3x3 conv on the flattened padded grid: the whole (guarded)
    # sample is resident in VMEM; each tap is a row-shifted slice.
    def kernel(*refs):
        if has_res:
            a_ref, w_ref, b_ref, res_ref, o_ref = refs
        else:
            a_ref, w_ref, b_ref, o_ref = refs
        i = pl.program_id(1)
        base = pl.multiple_of(i * tm, 8)
        acc = jnp.zeros(o_ref.shape[1:], jnp.float32)
        for t, off in enumerate(offsets):
            a = a_ref[0, pl.ds(base + (guard + off), tm), :]
            acc = acc + jnp.dot(a, w_ref[t],
                                preferred_element_type=jnp.float32)
        y = acc + b_ref[...]
        if act == "silu":
            y = y * jax.nn.sigmoid(y)
        elif act == "sigmoid":
            y = jax.nn.sigmoid(y)
        if has_res:
            y = y + res_ref[0].astype(jnp.float32)
        o_ref[0] = y.astype(o_ref.dtype)
    return kernel


def _make_halo_dw_kernel(offsets, guard, tm):
    # stride-1 depthwise 3x3: per-channel FMA over the 9 row-shifted slices.
    def kernel(a_ref, w_ref, b_ref, o_ref):
        i = pl.program_id(1)
        base = pl.multiple_of(i * tm, 8)
        acc = jnp.zeros(o_ref.shape[1:], jnp.float32)
        for t, off in enumerate(offsets):
            a = a_ref[0, pl.ds(base + (guard + off), tm), :].astype(jnp.float32)
            acc = acc + a * w_ref[t]
        y = acc + b_ref[...]
        o_ref[0] = (y * jax.nn.sigmoid(y)).astype(o_ref.dtype)
    return kernel


def _make_tap_conv_kernel(act, kk, has_res):
    # stride-2 fallback: tap-grid matmul with f32 VMEM accumulator.
    def kernel(*refs):
        if has_res:
            a_ref, w_ref, b_ref, res_ref, o_ref, acc_ref = refs
        else:
            a_ref, w_ref, b_ref, o_ref, acc_ref = refs
        t = pl.program_id(1)

        @pl.when(t == 0)
        def _init():
            acc_ref[...] = jnp.zeros_like(acc_ref)

        acc_ref[...] += jnp.dot(a_ref[0], w_ref[0],
                                preferred_element_type=jnp.float32)

        @pl.when(t == kk - 1)
        def _epilogue():
            y = acc_ref[...] + b_ref[...]
            if act == "silu":
                y = y * jax.nn.sigmoid(y)
            elif act == "sigmoid":
                y = jax.nn.sigmoid(y)
            if has_res:
                y = y + res_ref[...].astype(jnp.float32)
            o_ref[...] = y.astype(o_ref.dtype)
    return kernel


def _make_tap_dw_kernel(kk):
    def kernel(a_ref, w_ref, b_ref, o_ref, acc_ref):
        t = pl.program_id(1)

        @pl.when(t == 0)
        def _init():
            acc_ref[...] = jnp.zeros_like(acc_ref)

        acc_ref[...] += a_ref[0].astype(jnp.float32) * w_ref[0]

        @pl.when(t == kk - 1)
        def _epilogue():
            y = acc_ref[...] + b_ref[...]
            o_ref[...] = (y * jax.nn.sigmoid(y)).astype(o_ref.dtype)
    return kernel


def _make_project_kernel(has_res):
    # MBConv project: (A * se_scale)[bf16] @ W + bias (+ residual); per-sample grid.
    def kernel(*refs):
        if has_res:
            a_ref, s_ref, w_ref, b_ref, res_ref, o_ref = refs
        else:
            a_ref, s_ref, w_ref, b_ref, o_ref = refs
        a = a_ref[0] * s_ref[0]                      # bf16 * bf16
        y = jnp.dot(a, w_ref[...], preferred_element_type=jnp.float32)
        y = y + b_ref[...]
        if has_res:
            y = y + res_ref[0].astype(jnp.float32)
        o_ref[0] = y.astype(o_ref.dtype)
    return kernel


def _se_kernel(x_ref, w1_ref, b1_ref, w2_ref, b2_ref, o_ref, *, inv_hw):
    # fused squeeze-excite: avg-pool -> fc1 -> SiLU -> fc2 -> sigmoid.
    p = jnp.sum(x_ref[0].astype(jnp.float32), axis=0, keepdims=True) * inv_hw
    p8 = jnp.broadcast_to(p, (8, p.shape[-1]))       # 8 rows for MXU-friendly M
    h = jnp.dot(p8.astype(jnp.bfloat16), w1_ref[...],
                preferred_element_type=jnp.float32) + b1_ref[...]
    h = h * jax.nn.sigmoid(h)
    s = jnp.dot(h.astype(jnp.bfloat16), w2_ref[...],
                preferred_element_type=jnp.float32) + b2_ref[...]
    # note: zero-padded channels come out as sigmoid(0)=0.5, harmless because
    # the corresponding activation channels and project-weight rows are zero.
    o_ref[0] = jax.nn.sigmoid(s[0:1, :]).astype(o_ref.dtype)


def _pool_kernel(x_ref, o_ref, *, inv_hw):
    s = jnp.sum(x_ref[0].astype(jnp.float32), axis=0, keepdims=True) * inv_hw
    o_ref[0] = s.astype(o_ref.dtype)


# ----------------------------------------------------------------------------
# layer wrappers (traced inside jit; compute in Pallas)
# ----------------------------------------------------------------------------

def _matmul_conv(a, w, b, act="silu", residual=None):
    # a: (M, K) bf16; w: (K, Np) bf16; b: (1, Np) f32; residual: (M, Np) bf16
    M, K = a.shape
    Np = w.shape[-1]
    per_row = 2 * K * 2 + Np * 4 + 2 * Np * 2 + (2 * Np * 2 if residual is not None else 0)
    TM, Mp = _pick_row_tile(M, per_row, _TILE_BUDGET, pref=1024)
    a = _pad_rows_to(a, 0, Mp)
    args = [a, w, b]
    in_specs = [pl.BlockSpec((TM, K), lambda i: (i, 0)),
                pl.BlockSpec((K, Np), lambda i: (0, 0)),
                pl.BlockSpec((1, Np), lambda i: (0, 0))]
    if residual is not None:
        args.append(_pad_rows_to(residual, 0, Mp))
        in_specs.append(pl.BlockSpec((TM, Np), lambda i: (i, 0)))
    y = pl.pallas_call(
        _make_mm_kernel(act, residual is not None),
        grid=(Mp // TM,),
        in_specs=in_specs,
        out_specs=pl.BlockSpec((TM, Np), lambda i: (i, 0)),
        out_shape=jax.ShapeDtypeStruct((Mp, Np), jnp.bfloat16),
        compiler_params=pltpu.CompilerParams(
            dimension_semantics=("parallel",),
            vmem_limit_bytes=_VMEM_LIMIT),
    )(*args)
    return y[:M]


def _halo_conv(x, w, b, act="silu", residual=None):
    # stride-1 3x3 conv; returns None if the per-sample resident block would
    # not fit the VMEM budget (caller falls back to the tap path).
    N, H, W, Cp = x.shape
    kk, K, Np = w.shape
    Wp2 = W + 2
    G = Wp2 + 1
    Mfull = (H + 2) * Wp2
    per_row = Np * 4 + 2 * Np * 2 + (2 * Np * 2 if residual is not None else 0)
    TM, Mp = _pick_row_tile(Mfull, per_row, _TILE_BUDGET // 2, pref=1024)
    Min_g = _round_up(Mp + 2 * G, 8)
    est = 2 * Min_g * Cp * 2 + 2 * kk * K * Np * 2 + TM * per_row
    if est > _TILE_BUDGET:
        return None
    xp = jnp.pad(x, ((0, 0), (1, 1), (1, 1), (0, 0))).reshape(N, Mfull, Cp)
    a = jnp.pad(xp, ((0, 0), (G, Min_g - Mfull - G), (0, 0)))
    offsets = tuple((dy - 1) * Wp2 + (dx - 1) for dy in range(3) for dx in range(3))
    args = [a, w, b]
    in_specs = [pl.BlockSpec((1, Min_g, Cp), lambda n, i: (n, 0, 0)),
                pl.BlockSpec((kk, K, Np), lambda n, i: (0, 0, 0)),
                pl.BlockSpec((1, Np), lambda n, i: (0, 0))]
    if residual is not None:
        rp = jnp.pad(residual, ((0, 0), (1, 1), (1, 1), (0, 0))).reshape(N, Mfull, Np)
        args.append(_pad_rows_to(rp, 1, Mp))
        in_specs.append(pl.BlockSpec((1, TM, Np), lambda n, i: (n, i, 0)))
    y = pl.pallas_call(
        _make_halo_conv_kernel(offsets, G, TM, act, residual is not None),
        grid=(N, Mp // TM),
        in_specs=in_specs,
        out_specs=pl.BlockSpec((1, TM, Np), lambda n, i: (n, i, 0)),
        out_shape=jax.ShapeDtypeStruct((N, Mp, Np), jnp.bfloat16),
        compiler_params=pltpu.CompilerParams(
            dimension_semantics=("parallel", "parallel"),
            vmem_limit_bytes=_VMEM_LIMIT),
    )(*args)
    y = y[:, :Mfull].reshape(N, H + 2, Wp2, Np)
    return y[:, 1:H + 1, 1:W + 1, :]


def _halo_dw(x, w, b):
    N, H, W, Cp = x.shape
    kk = w.shape[0]
    Wp2 = W + 2
    G = Wp2 + 1
    Mfull = (H + 2) * Wp2
    per_row = Cp * 4 + 2 * Cp * 2
    TM, Mp = _pick_row_tile(Mfull, per_row, _TILE_BUDGET // 2, pref=1024)
    Min_g = _round_up(Mp + 2 * G, 8)
    est = 2 * Min_g * Cp * 2 + kk * Cp * 4 + TM * per_row
    if est > _TILE_BUDGET:
        return None
    xp = jnp.pad(x, ((0, 0), (1, 1), (1, 1), (0, 0))).reshape(N, Mfull, Cp)
    a = jnp.pad(xp, ((0, 0), (G, Min_g - Mfull - G), (0, 0)))
    offsets = tuple((dy - 1) * Wp2 + (dx - 1) for dy in range(3) for dx in range(3))
    y = pl.pallas_call(
        _make_halo_dw_kernel(offsets, G, TM),
        grid=(N, Mp // TM),
        in_specs=[pl.BlockSpec((1, Min_g, Cp), lambda n, i: (n, 0, 0)),
                  pl.BlockSpec((kk, 1, Cp), lambda n, i: (0, 0, 0)),
                  pl.BlockSpec((1, Cp), lambda n, i: (0, 0))],
        out_specs=pl.BlockSpec((1, TM, Cp), lambda n, i: (n, i, 0)),
        out_shape=jax.ShapeDtypeStruct((N, Mp, Cp), jnp.bfloat16),
        compiler_params=pltpu.CompilerParams(
            dimension_semantics=("parallel", "parallel"),
            vmem_limit_bytes=_VMEM_LIMIT),
    )(a, w, b)
    y = y[:, :Mfull].reshape(N, H + 2, Wp2, Cp)
    return y[:, 1:H + 1, 1:W + 1, :]


def _taps(x, k, stride):
    # shifted/strided taps (stride-2 fallback path only): (k*k, N*Ho*Wo, Cp)
    N, H, W, Cp = x.shape
    pad = (k - 1) // 2
    xp = jnp.pad(x, ((0, 0), (pad, pad), (pad, pad), (0, 0)))
    Ho = (H + 2 * pad - k) // stride + 1
    Wo = (W + 2 * pad - k) // stride + 1
    taps = [xp[:, dy:dy + stride * Ho:stride, dx:dx + stride * Wo:stride, :]
            for dy in range(k) for dx in range(k)]
    a = jnp.stack(taps, axis=0).reshape(k * k, N * Ho * Wo, Cp)
    return a, Ho, Wo


def _tap_conv(x, w, b, stride, act="silu", residual=None):
    N, H, W, Cp = x.shape
    kk, K, Np = w.shape
    k = int(round(kk ** 0.5))
    a, Ho, Wo = _taps(x, k, stride)
    M = N * Ho * Wo
    per_row = 2 * K * 2 + Np * 4 + 2 * Np * 2 + (2 * Np * 2 if residual is not None else 0)
    TM, Mp = _pick_row_tile(M, per_row, _TILE_BUDGET, pref=512)
    a = _pad_rows_to(a, 1, Mp)
    args = [a, w, b]
    in_specs = [pl.BlockSpec((1, TM, K), lambda i, t: (t, i, 0)),
                pl.BlockSpec((1, K, Np), lambda i, t: (t, 0, 0)),
                pl.BlockSpec((1, Np), lambda i, t: (0, 0))]
    if residual is not None:
        args.append(_pad_rows_to(residual.reshape(M, Np), 0, Mp))
        in_specs.append(pl.BlockSpec((TM, Np), lambda i, t: (i, 0)))
    y = pl.pallas_call(
        _make_tap_conv_kernel(act, kk, residual is not None),
        grid=(Mp // TM, kk),
        in_specs=in_specs,
        out_specs=pl.BlockSpec((TM, Np), lambda i, t: (i, 0)),
        out_shape=jax.ShapeDtypeStruct((Mp, Np), jnp.bfloat16),
        scratch_shapes=[pltpu.VMEM((TM, Np), jnp.float32)],
        compiler_params=pltpu.CompilerParams(
            dimension_semantics=("parallel", "arbitrary"),
            vmem_limit_bytes=_VMEM_LIMIT),
    )(*args)
    return y[:M].reshape(N, Ho, Wo, Np)


def _tap_dw(x, w, b, stride):
    N, H, W, Cp = x.shape
    kk = w.shape[0]
    k = int(round(kk ** 0.5))
    a, Ho, Wo = _taps(x, k, stride)
    M = N * Ho * Wo
    per_row = 2 * Cp * 2 + Cp * 4 + 2 * Cp * 2
    TM, Mp = _pick_row_tile(M, per_row, _TILE_BUDGET, pref=512)
    a = _pad_rows_to(a, 1, Mp)
    y = pl.pallas_call(
        _make_tap_dw_kernel(kk),
        grid=(Mp // TM, kk),
        in_specs=[pl.BlockSpec((1, TM, Cp), lambda i, t: (t, i, 0)),
                  pl.BlockSpec((1, 1, Cp), lambda i, t: (t, 0, 0)),
                  pl.BlockSpec((1, Cp), lambda i, t: (0, 0))],
        out_specs=pl.BlockSpec((TM, Cp), lambda i, t: (i, 0)),
        out_shape=jax.ShapeDtypeStruct((Mp, Cp), jnp.bfloat16),
        scratch_shapes=[pltpu.VMEM((TM, Cp), jnp.float32)],
        compiler_params=pltpu.CompilerParams(
            dimension_semantics=("parallel", "arbitrary"),
            vmem_limit_bytes=_VMEM_LIMIT),
    )(a, w, b)
    return y[:M].reshape(N, Ho, Wo, Cp)


def conv_bn_act(x, w, b, stride=1, act="silu", residual=None):
    # x: (N,H,W,Cinp) bf16, channel-padded; w: (kk, Cinp, Coutp) bf16 with BN
    # scale folded in; b: (1, Coutp) f32.  Optional residual fused in epilogue.
    N, H, W, Cp = x.shape
    kk, K, Np = w.shape
    if kk == 1:
        assert stride == 1, "1x1 convs in this network are stride 1"
        a = x.reshape(N * H * W, Cp)
        r = residual.reshape(N * H * W, Np) if residual is not None else None
        y = _matmul_conv(a, w.reshape(K, Np), b, act=act, residual=r)
        return y.reshape(N, H, W, Np)
    if stride == 1:
        y = _halo_conv(x, w, b, act=act, residual=residual)
        if y is not None:
            return y
    return _tap_conv(x, w, b, stride, act=act, residual=residual)


def depthwise_bn_silu(x, w, b, stride=1):
    if stride == 1:
        y = _halo_dw(x, w, b)
        if y is not None:
            return y
    return _tap_dw(x, w, b, stride)


def se_scale(x, w1, b1, w2, b2):
    # fused torchvision SqueezeExcitation on the expanded activation
    N, H, W, Cp = x.shape
    HW = H * W
    w1 = w1.reshape(w1.shape[-2], w1.shape[-1])
    w2 = w2.reshape(w2.shape[-2], w2.shape[-1])
    Sq = w1.shape[-1]
    return pl.pallas_call(
        functools.partial(_se_kernel, inv_hw=1.0 / float(HW)),
        grid=(N,),
        in_specs=[pl.BlockSpec((1, HW, Cp), lambda n: (n, 0, 0)),
                  pl.BlockSpec((Cp, Sq), lambda n: (0, 0)),
                  pl.BlockSpec((1, Sq), lambda n: (0, 0)),
                  pl.BlockSpec((Sq, Cp), lambda n: (0, 0)),
                  pl.BlockSpec((1, Cp), lambda n: (0, 0))],
        out_specs=pl.BlockSpec((1, 1, Cp), lambda n: (n, 0, 0)),
        out_shape=jax.ShapeDtypeStruct((N, 1, Cp), jnp.bfloat16),
        compiler_params=pltpu.CompilerParams(
            dimension_semantics=("parallel",),
            vmem_limit_bytes=_VMEM_LIMIT),
    )(x.reshape(N, HW, Cp), w1, b1, w2, b2)


def mbconv_project(x, s, w, b, residual=None):
    # project 1x1 conv with the SE channel scale applied to its input and the
    # residual add fused into the epilogue.
    N, H, W, Kp = x.shape
    HW = H * W
    Np = w.shape[-1]
    per_row = 2 * Kp * 2 + Np * 4 + 2 * Np * 2 + (2 * Np * 2 if residual is not None else 0)
    TH, HWp = _pick_row_tile(HW, per_row, _TILE_BUDGET, pref=1024)
    a = _pad_rows_to(x.reshape(N, HW, Kp), 1, HWp)
    args = [a, s, w.reshape(Kp, Np), b]
    in_specs = [pl.BlockSpec((1, TH, Kp), lambda n, i: (n, i, 0)),
                pl.BlockSpec((1, 1, Kp), lambda n, i: (n, 0, 0)),
                pl.BlockSpec((Kp, Np), lambda n, i: (0, 0)),
                pl.BlockSpec((1, Np), lambda n, i: (0, 0))]
    if residual is not None:
        args.append(_pad_rows_to(residual.reshape(N, HW, Np), 1, HWp))
        in_specs.append(pl.BlockSpec((1, TH, Np), lambda n, i: (n, i, 0)))
    y = pl.pallas_call(
        _make_project_kernel(residual is not None),
        grid=(N, HWp // TH),
        in_specs=in_specs,
        out_specs=pl.BlockSpec((1, TH, Np), lambda n, i: (n, i, 0)),
        out_shape=jax.ShapeDtypeStruct((N, HWp, Np), jnp.bfloat16),
        compiler_params=pltpu.CompilerParams(
            dimension_semantics=("parallel", "parallel"),
            vmem_limit_bytes=_VMEM_LIMIT),
    )(*args)
    return y[:, :HW].reshape(N, H, W, Np)


def global_avg_pool(x):
    N, H, W, Cp = x.shape
    HW = H * W
    return pl.pallas_call(
        functools.partial(_pool_kernel, inv_hw=1.0 / float(HW)),
        grid=(N,),
        in_specs=[pl.BlockSpec((1, HW, Cp), lambda n: (n, 0, 0))],
        out_specs=pl.BlockSpec((1, 1, Cp), lambda n: (n, 0, 0)),
        out_shape=jax.ShapeDtypeStruct((N, 1, Cp), jnp.bfloat16),
        compiler_params=pltpu.CompilerParams(
            dimension_semantics=("parallel",),
            vmem_limit_bytes=_VMEM_LIMIT),
    )(x.reshape(N, HW, Cp))


# ----------------------------------------------------------------------------
# jitted block functions (shape-cached: identical blocks share one executable)
# ----------------------------------------------------------------------------

@jax.jit
def _stem_block(x_nchw, w, b):
    # 3x3 stride-2 conv, Cin=3: one K=27->128 im2col matmul.
    x = jnp.transpose(x_nchw, (0, 2, 3, 1)).astype(jnp.bfloat16)   # (N,H,W,3)
    N, H, W, C = x.shape
    xp = jnp.pad(x, ((0, 0), (1, 1), (1, 1), (0, 0)))
    Ho = (H - 1) // 2 + 1
    Wo = (W - 1) // 2 + 1
    cols = [xp[:, dy:dy + 2 * Ho:2, dx:dx + 2 * Wo:2, :]
            for dy in range(3) for dx in range(3)]
    a = jnp.concatenate(cols, axis=-1)                              # (N,Ho,Wo,27)
    Kp, Np = w.shape
    a = jnp.pad(a, ((0, 0), (0, 0), (0, 0), (0, Kp - a.shape[-1])))
    y = _matmul_conv(a.reshape(N * Ho * Wo, Kp), w, b, act="silu")
    return y.reshape(N, Ho, Wo, Np)


@functools.partial(jax.jit, static_argnames=("stride", "use_res"))
def _fused_single_block(x, w, b, *, stride, use_res):
    # FusedMBConv, expand_ratio == 1: 3x3 conv + BN + SiLU (+ residual)
    return conv_bn_act(x, w, b, stride=stride, act="silu",
                       residual=x if use_res else None)


@functools.partial(jax.jit, static_argnames=("stride", "use_res"))
def _fused_block(x, we, be, wp, bp, *, stride, use_res):
    # FusedMBConv: 3x3 expand conv (SiLU) + 1x1 project conv (+ residual)
    h = conv_bn_act(x, we, be, stride=stride, act="silu")
    return conv_bn_act(h, wp, bp, stride=1, act="none",
                       residual=x if use_res else None)


@functools.partial(jax.jit, static_argnames=("stride", "use_res"))
def _mbconv_block(x, we, be, wd, bd, w1, b1, w2, b2, wp, bp, *, stride, use_res):
    # MBConv: 1x1 expand (SiLU) -> depthwise 3x3 (SiLU) -> SE -> 1x1 project (+ res)
    h = conv_bn_act(x, we, be, stride=1, act="silu")
    h = depthwise_bn_silu(h, wd, bd, stride=stride)
    s = se_scale(h, w1, b1, w2, b2)
    # stochastic depth is the identity at inference
    return mbconv_project(h, s, wp, bp, residual=x if use_res else None)


@functools.partial(jax.jit, static_argnames=("num_classes",))
def _head_block(x, wh, bh, wc, bc, *, num_classes):
    h = conv_bn_act(x, wh, bh, stride=1, act="silu")                # 1x1 -> 1280
    N = h.shape[0]
    feats = global_avg_pool(h)                                      # (N, 1, 1280)
    # classifier: nn.Dropout(p=0.2) is the identity at inference; Linear(1280, nc)
    logits = conv_bn_act(feats.reshape(N, 1, 1, feats.shape[-1]), wc, bc,
                         act="none")
    return logits.reshape(N, -1)[:, :num_classes].astype(jnp.float32)


# ----------------------------------------------------------------------------
# deterministic parameter construction (EfficientNetV2-S architecture shapes)
# ----------------------------------------------------------------------------

_PRNG = np.random.default_rng(0)

# (expand_ratio, kernel, stride, in_ch, out_ch, num_layers)
_FUSED_STAGES = [(1, 3, 1, 24, 24, 2), (4, 3, 2, 24, 48, 4), (4, 3, 2, 48, 64, 4)]
_MBCONV_STAGES = [(4, 3, 2, 64, 128, 6), (6, 3, 1, 128, 160, 9), (6, 3, 2, 160, 256, 15)]


def _pad_to(arr, shape):
    out = np.zeros(shape, np.float32)
    out[tuple(slice(0, s) for s in arr.shape)] = arr
    return out


def _bn(c, eps=1e-3):
    # inference BatchNorm folded to (scale, bias): gamma=1, beta=0, mean=0, var=1.
    return (np.full((c,), 1.0 / np.sqrt(1.0 + eps), np.float32),
            np.zeros((c,), np.float32))


def _conv_w_np(cout, cin, k):
    fan_in = cin * k * k
    return (_PRNG.standard_normal((cout, cin, k, k)).astype(np.float32)
            * np.sqrt(2.0 / fan_in))


def _dw_w_np(c, k):
    return (_PRNG.standard_normal((c, 1, k, k)).astype(np.float32)
            * np.sqrt(2.0 / (k * k)))


def _fc_w_np(cout, cin):
    return (_PRNG.standard_normal((cout, cin)).astype(np.float32)
            * np.sqrt(1.0 / cin))


def _fold_conv(w, scale, bias):
    # w: PyTorch layout (cout, cin, k, k); BN scale folded into the weight.
    cout, cin, k, _ = w.shape
    w = w * scale[:, None, None, None]
    wt = np.transpose(w, (2, 3, 1, 0)).reshape(k * k, cin, cout)
    wp = _pad_to(wt, (k * k, _round_up(cin, 128), _round_up(cout, 128)))
    bp = _pad_to(bias.reshape(1, cout), (1, _round_up(cout, 128)))
    return jnp.asarray(wp, jnp.bfloat16), jnp.asarray(bp)


def _fold_stem(w, scale, bias):
    # stem 3x3 conv, Cin=3: K = 3*3*3 = 27 padded to 128 for the im2col matmul.
    cout, cin, k, _ = w.shape
    w = w * scale[:, None, None, None]
    wt = np.transpose(w, (2, 3, 1, 0)).reshape(k * k * cin, cout)
    wp = _pad_to(wt, (_round_up(k * k * cin, 128), _round_up(cout, 128)))
    bp = _pad_to(bias.reshape(1, cout), (1, _round_up(cout, 128)))
    return jnp.asarray(wp, jnp.bfloat16), jnp.asarray(bp)


def _fold_dw(w, scale, bias):
    # w: (c, 1, k, k); BN scale folded in; kept f32 for the VPU.
    c, _, k, _ = w.shape
    w = w * scale[:, None, None, None]
    wt = np.transpose(w, (2, 3, 1, 0)).reshape(k * k, 1, c)
    wp = _pad_to(wt, (k * k, 1, _round_up(c, 128)))
    bp = _pad_to(bias.reshape(1, c), (1, _round_up(c, 128)))
    return jnp.asarray(wp), jnp.asarray(bp)


def _fold_fc(w, bias):
    # w: (cout, cin) linear / 1x1-conv weight with bias.
    cout, cin = w.shape
    wp = _pad_to(w.T.reshape(1, cin, cout),
                 (1, _round_up(cin, 128), _round_up(cout, 128)))
    bp = _pad_to(bias.reshape(1, cout), (1, _round_up(cout, 128)))
    return jnp.asarray(wp, jnp.bfloat16), jnp.asarray(bp)


def build_params(num_classes=2):
    # TODO(synk): pretrained EfficientNet_V2_S_Weights are not loadable here;
    # weights are synthesized deterministically with matching shapes (BN folded,
    # channels padded to 128-lane multiples).
    p = {"num_classes": num_classes, "blocks": []}
    p["stem"] = _fold_stem(_conv_w_np(24, 3, 3), *_bn(24))
    for er, k, s, cin, cout, nl in _FUSED_STAGES:
        for i in range(nl):
            bcin = cin if i == 0 else cout
            st = s if i == 0 else 1
            use_res = st == 1 and bcin == cout
            if er == 1:
                blk = {"type": "fused1", "stride": st, "use_res": use_res,
                       "conv": _fold_conv(_conv_w_np(cout, bcin, k), *_bn(cout))}
            else:
                exp = bcin * er
                blk = {"type": "fused", "stride": st, "use_res": use_res,
                       "expand": _fold_conv(_conv_w_np(exp, bcin, k), *_bn(exp)),
                       "project": _fold_conv(_conv_w_np(cout, exp, 1), *_bn(cout))}
            p["blocks"].append(blk)
    for er, k, s, cin, cout, nl in _MBCONV_STAGES:
        for i in range(nl):
            bcin = cin if i == 0 else cout
            st = s if i == 0 else 1
            use_res = st == 1 and bcin == cout
            exp = bcin * er
            sq = max(1, bcin // 4)
            blk = {"type": "mb", "stride": st, "use_res": use_res,
                   "expand": _fold_conv(_conv_w_np(exp, bcin, 1), *_bn(exp)),
                   "dw": _fold_dw(_dw_w_np(exp, k), *_bn(exp)),
                   "se": (_fold_fc(_fc_w_np(sq, exp), np.zeros(sq, np.float32))
                          + _fold_fc(_fc_w_np(exp, sq), np.zeros(exp, np.float32))),
                   "project": _fold_conv(_conv_w_np(cout, exp, 1), *_bn(cout))}
            p["blocks"].append(blk)
    p["head"] = _fold_conv(_conv_w_np(1280, 256, 1), *_bn(1280))
    p["classifier"] = _fold_fc(_fc_w_np(num_classes, 1280),
                               np.zeros(num_classes, np.float32))
    return p


# ----------------------------------------------------------------------------
# forward pass (inference semantics of BinaryClassifier.forward)
# ----------------------------------------------------------------------------

def binary_classifier_forward(params, x_nchw):
    x = _stem_block(x_nchw, *params["stem"])
    for blk in params["blocks"]:
        if blk["type"] == "fused1":
            x = _fused_single_block(x, *blk["conv"],
                                    stride=blk["stride"], use_res=blk["use_res"])
        elif blk["type"] == "fused":
            x = _fused_block(x, *blk["expand"], *blk["project"],
                             stride=blk["stride"], use_res=blk["use_res"])
        else:
            x = _mbconv_block(x, *blk["expand"], *blk["dw"], *blk["se"],
                              *blk["project"],
                              stride=blk["stride"], use_res=blk["use_res"])
    return _head_block(x, *params["head"], *params["classifier"],
                       num_classes=params["num_classes"])


if __name__ == "__main__":
    params = build_params(num_classes=2)
    # small but architecture-consistent input: 3-channel 64x64 images, batch 2
    x = jax.random.normal(jax.random.PRNGKey(0), (2, 3, 64, 64), dtype=jnp.float32)
    logits = binary_classifier_forward(params, x)
    logits = jax.block_until_ready(logits)
    assert logits.shape == (2, 2) and bool(jnp.all(jnp.isfinite(logits)))
    print("KERNEL_OK")
</pallas_src>

<mosaic_0001>
module attributes {stable_mosaic.version = 11 : i64} {
  func.func @kernel(%arg0: i32, %arg1: memref<1024x128xbf16, #tpu.memory_space<vmem>>, %arg2: memref<128x128xbf16, #tpu.memory_space<vmem>>, %arg3: memref<1x128xf32, #tpu.memory_space<vmem>>, %arg4: memref<1024x128xbf16, #tpu.memory_space<vmem>>) attributes {dimension_semantics = [#tpu.dimension_semantics<parallel>], iteration_bounds = array<i64: 2>, scalar_prefetch = 0 : i64, scratch_operands = 0 : i64, tpu.core_type = #tpu.core_type<tc>, window_params = [{transform_indices = @transform_0, window_bounds = array<i64: 1024, 128>}, {pipeline_mode = #tpu.pipeline_mode<synchronous>, transform_indices = @transform_1, window_bounds = array<i64: 128, 128>}, {pipeline_mode = #tpu.pipeline_mode<synchronous>, transform_indices = @transform_2, window_bounds = array<i64: 1, 128>}, {transform_indices = @transform_3, window_bounds = array<i64: 1024, 128>}]} {
    %c0 = arith.constant 0 : index
    %c0_0 = arith.constant 0 : index
    %0 = vector.load %arg1[%c0, %c0_0] : memref<1024x128xbf16, #tpu.memory_space<vmem>>, vector<1024x128xbf16>
    %c0_1 = arith.constant 0 : index
    %c0_2 = arith.constant 0 : index
    %1 = vector.load %arg2[%c0_1, %c0_2] : memref<128x128xbf16, #tpu.memory_space<vmem>>, vector<128x128xbf16>
    %cst = arith.constant dense<0.000000e+00> : vector<1024x128xf32>
    %2 = tpu.matmul %0, %1, %cst {dimension_numbers = #tpu.dot_dimension_numbers<[1], [0], [0], [1], [0, 0, 1, 1], [], []>} : vector<1024x128xbf16>, vector<128x128xbf16>, vector<1024x128xf32> -> vector<1024x128xf32>
    %c0_3 = arith.constant 0 : index
    %c0_4 = arith.constant 0 : index
    %3 = vector.load %arg3[%c0_3, %c0_4] : memref<1x128xf32, #tpu.memory_space<vmem>>, vector<1x128xf32>
    %4 = vector.broadcast %3 : vector<1x128xf32> to vector<1024x128xf32>
    %5 = arith.addf %2, %4 : vector<1024x128xf32>
    %6 = arith.negf %5 : vector<1024x128xf32>
    %7 = math.exp %6 : vector<1024x128xf32>
    %cst_5 = arith.constant 1.000000e+00 : f32
    %8 = vector.broadcast %cst_5 : f32 to vector<1024x128xf32>
    %9 = arith.addf %8, %7 : vector<1024x128xf32>
    %10 = arith.divf %8, %9 : vector<1024x128xf32>
    %11 = arith.mulf %5, %10 : vector<1024x128xf32>
    %12 = arith.truncf %11 : vector<1024x128xf32> to vector<1024x128xbf16>
    %c0_6 = arith.constant 0 : index
    %c0_7 = arith.constant 0 : index
    %13 = vector.load %arg4[%c0_6, %c0_7] : memref<1024x128xbf16, #tpu.memory_space<vmem>>, vector<1024x128xbf16>
    tpu.vector_store %arg4[%c0_6, %c0_7], %12 {strides = array<i32>} : memref<1024x128xbf16, #tpu.memory_space<vmem>>, vector<1024x128xbf16>,
    return
  }
  func.func @transform_0(%arg0: i32) -> (i32, i32) {
    %c0_i32 = arith.constant 0 : i32
    %c0_i32_0 = arith.constant 0 : i32
    return %arg0, %c0_i32 : i32, i32
  }
  func.func @transform_1(%arg0: i32) -> (i32, i32) {
    %c0_i32 = arith.constant 0 : i32
    %c0_i32_0 = arith.constant 0 : i32
    %c0_i32_1 = arith.constant 0 : i32
    return %c0_i32, %c0_i32_0 : i32, i32
  }
  func.func @transform_2(%arg0: i32) -> (i32, i32) {
    %c0_i32 = arith.constant 0 : i32
    %c0_i32_0 = arith.constant 0 : i32
    %c0_i32_1 = arith.constant 0 : i32
    return %c0_i32, %c0_i32_0 : i32, i32
  }
  func.func @transform_3(%arg0: i32) -> (i32, i32) {
    %c0_i32 = arith.constant 0 : i32
    %c0_i32_0 = arith.constant 0 : i32
    return %arg0, %c0_i32 : i32, i32
  }
}

</mosaic_0001>

<bundles_post_ra>
// kernel: _stem_block.1
= control target key start
LH: loop header
LB: loop body
LE: loop exit
PB: predicated region body
PF: predicated region fallthrough
CT: control target
= control target key end

     0   :  { %8 = vsyncpa [#allocation3], 0  ;;  %s9253_s0 = inlined_call_operand.vmem [shape: bf16[2048,128], index: 0, kind: input, shape index: {}]   ;;  %s9254_s1 = inlined_call_operand.vmem [shape: bf16[128,128], index: 1, kind: input, shape index: {}]   ;;  %s9255_s2 = inlined_call_operand.vmem [shape: f32[1,128], index: 2, kind: input, shape index: {}]   ;;  %s9256_s3 = inlined_call_operand.hbm [shape: bf16[2048,128], index: 3, kind: output, shape index: {}]  }
   0x1   :  { %10 = vsyncpa [#allocation3 + $0x1], 0  ;;  %s5528_s12 = smov 0   ;;  %s5530_s13 = smov 0  }
   0x2   :  { %s5532_s14 = smov 0   ;;  %s5534_s15 = smov 0  }
   0x3 LB: > { %s5549_s16 = sadd.s32 4294967295, %s5504_s15   ;;  %s3975_s17 = sadd.s32 4294967294, %s5504_s15   ;;  %s5504_s15 = sphi %s5534_s15, %s9578_s15   ;;  %s5500_s14 = sphi %s5532_s14, %s9577_s14   ;;  %s5496_s13 = sphi %s5530_s13, %s9576_s13   ;;  %s5492_s12 = sphi %s5528_s12, %s9575_s12  }
   0x4   : > { %s5553_s18 = sadd.s32 1, %s5504_s15   ;;  %s91_s19 = sadd.s32 1, %s5500_s14 }
   0x5   : > { %s88_s20 = ssub.s32 %s5504_s15, %s5553_s18  ;;  %p101_p0 = scmp.ne.s32.totalorder %s5500_s14, %s5496_s13 }
   0x6   : > { %p89_p1 = scmp.eq.s32.totalorder %s88_s20, 0  ;;  %p102_p2 = scmp.eq.s32.totalorder %s5549_s16, 1 }
   0x7   : > { %p107_p3 = scmp.ne.s32.totalorder %s5496_s13, %s5492_s12  ;;  %p108_p4 = scmp.eq.s32.totalorder %s3975_s17, 1 }
   0x8   : > { %s5564_s21 = scalar_select %p89_p1, %s5500_s14, %s91_s19  }
   0x9   : > { %p5566_p5 = por %p102_p2, %p101_p0  ;;  %p5570_p6 = por %p108_p4, %p107_p3 }
   0xa   : > { %p3978_p7 = scmp.ge.s32.totalorder %s5504_s15, 1  ;;  %p141_p8 = scmp.lt.s32.totalorder %s5504_s15, 3 }
   0xc   : > { %p142_p9 = pnand %p3978_p7, %p141_p8 }
   0xd   : > { %s3980_s5 = sshll.u32 (!%p142_p9), %s5549_s16, 7  ;;  %s162_s29 = sand.u32 (!%p142_p9), 1, %s5496_s13  }
   0xe   : > { %145 = sbr.rel (%p142_p9) target bundleno = 788 (0x314), region = 32  ;;  %p166_p10 = scmp.lt.s32.totalorder (!%p142_p9), %s3980_s5, 255 }
   0xf   : > { %s5860_s30 = sshll.u32 (!%p142_p9), %s162_s29, 9  ;;  %s4475_s24 = sshll.u32 (!%p142_p9), %s5549_s16, 9 }
  0x10   : > { %s5897_s4 = scalar_lea.vmem (!%p142_p9), [#allocation2], %s5860_s30  ;;  %s3898_s30 = scalar_lea.sflag (!%p142_p9), [#allocation3], %s162_s29 }
  0x11   : > { %s3910_s27 = sshll.u32 (!%p142_p9), %s5897_s4, 4  ;;  %s5462_s9 = scalar_lea.hbm (!%p142_p9), %s9256_s3, 1024  ;;  %s3911_s27 = int_to_ptr.vmem [resolvable:$true] %s3910_s27 }
  0x13   : > { %v4474_v0 = vld [vmem:[%s9254_s1 + $0x38] sm:$0xff]  ;;  %v4473_v1 = vld [vmem:[%s9254_s1 + $0x30] sm:$0xff]  ;;  %v4472_v2 = vld [vmem:[%s9254_s1 + $0x28] sm:$0xff]  ;;  %s9580_s5 = smov (!%p166_p10, %s3980_s5), 255 }
  0x14   : > { %752 = vmatpush.bf16.msra.mxu0 %v4474_v0  ;;  %4859 = vmatpush.bf16.msra.mxu1 %v4474_v0  ;;  %v4471_v3 = vld [vmem:[%s9254_s1 + $0x20] sm:$0xff]  ;;  %v4470_v4 = vld [vmem:[%s9254_s1 + $0x18] sm:$0xff]  ;;  %v4469_v5 = vld [vmem:[%s9254_s1 + $0x10] sm:$0xff]  ;;  %s3981_s17 = sshll.u32 %s9580_s5, 2 }
  0x15   : > { %4860 = vmatpush.bf16.msra.mxu2 %v4474_v0  ;;  %4861 = vmatpush.bf16.msra.mxu3 %v4474_v0  ;;  %v4468_v6 = vld [vmem:[%s9254_s1 + $0x8] sm:$0xff]  ;;  %v4467_v7 = vld [vmem:[%s9254_s1] sm:$0xff]  ;;  %s5604_s26 = scalar_lea.vmem %s9253_s0, %s3981_s17 }
  0x16   : > { %v4403_v8 = vld [vmem:[%s5604_s26] sm:$0xff]  ;;  %v4404_v12 = vld [vmem:[%s5604_s26 + $0x8] sm:$0xff]  ;;  %v4405_v16 = vld [vmem:[%s5604_s26 + $0x10] sm:$0xff] }
  0x17   : > { %v4419_v9 = vld [vmem:[%s5604_s26 + $0x80] sm:$0xff]  ;;  %v4420_v13 = vld [vmem:[%s5604_s26 + $0x88] sm:$0xff]  ;;  %v4421_v17 = vld [vmem:[%s5604_s26 + $0x90] sm:$0xff] }
  0x18   : > { %753 = vmatpush.bf16.msra.mxu0 %v4473_v1  ;;  %4862 = vmatpush.bf16.msra.mxu1 %v4473_v1  ;;  %v4435_v10 = vld [vmem:[%s5604_s26 + $0x100] sm:$0xff]  ;;  %v4436_v14 = vld [vmem:[%s5604_s26 + $0x108] sm:$0xff]  ;;  %v4437_v18 = vld [vmem:[%s5604_s26 + $0x110] sm:$0xff] }
  0x19   : > { %4863 = vmatpush.bf16.msra.mxu2 %v4473_v1  ;;  %4864 = vmatpush.bf16.msra.mxu3 %v4473_v1  ;;  %v4451_v11 = vld [vmem:[%s5604_s26 + $0x180] sm:$0xff]  ;;  %v4452_v15 = vld [vmem:[%s5604_s26 + $0x188] sm:$0xff]  ;;  %v4453_v19 = vld [vmem:[%s5604_s26 + $0x190] sm:$0xff] }
  0x1a   : > { %v4406_v20 = vld [vmem:[%s5604_s26 + $0x18] sm:$0xff]  ;;  %v4407_v24 = vld [vmem:[%s5604_s26 + $0x20] sm:$0xff]  ;;  %v4408_v28 = vld [vmem:[%s5604_s26 + $0x28] sm:$0xff] }
  0x1b   : > { %v4422_v21 = vld [vmem:[%s5604_s26 + $0x98] sm:$0xff]  ;;  %v4423_v25 = vld [vmem:[%s5604_s26 + $0xa0] sm:$0xff]  ;;  %v4424_v29 = vld [vmem:[%s5604_s26 + $0xa8] sm:$0xff] }
  0x1c   : > { %754 = vmatpush.bf16.msra.mxu0 %v4472_v2  ;;  %4865 = vmatpush.bf16.msra.mxu1 %v4472_v2  ;;  %v4438_v22 = vld [vmem:[%s5604_s26 + $0x118] sm:$0xff]  ;;  %v4439_v26 = vld [vmem:[%s5604_s26 + $0x120] sm:$0xff]  ;;  %v4440_v30 = vld [vmem:[%s5604_s26 + $0x128] sm:$0xff] }
  0x1d   : > { %4866 = vmatpush.bf16.msra.mxu2 %v4472_v2  ;;  %4867 = vmatpush.bf16.msra.mxu3 %v4472_v2  ;;  %v4454_v23 = vld [vmem:[%s5604_s26 + $0x198] sm:$0xff]  ;;  %v4455_v27 = vld [vmem:[%s5604_s26 + $0x1a0] sm:$0xff]  ;;  %v4456_v31 = vld [vmem:[%s5604_s26 + $0x1a8] sm:$0xff] }
  0x1e   : > { %v4409_v32 = vld [vmem:[%s5604_s26 + $0x30] sm:$0xff]  ;;  %v4410_v36 = vld [vmem:[%s5604_s26 + $0x38] sm:$0xff]  ;;  %v5641_v40 = vld [vmem:[%s9255_s2] ss:$0 sm:$0xff] }
  0x1f   : > { %v4425_v33 = vld [vmem:[%s5604_s26 + $0xb0] sm:$0xff]  ;;  %v4426_v37 = vld [vmem:[%s5604_s26 + $0xb8] sm:$0xff]  ;;  %v4411_v41 = vld [vmem:[%s5604_s26 + $0x40] sm:$0xff] }
  0x20   : > { %755 = vmatpush.bf16.msra.mxu0 %v4471_v3  ;;  %4868 = vmatpush.bf16.msra.mxu1 %v4471_v3  ;;  %v4441_v34 = vld [vmem:[%s5604_s26 + $0x130] sm:$0xff]  ;;  %v4442_v38 = vld [vmem:[%s5604_s26 + $0x138] sm:$0xff]  ;;  %v4427_v42 = vld [vmem:[%s5604_s26 + $0xc0] sm:$0xff] }
  0x21   : > { %4869 = vmatpush.bf16.msra.mxu2 %v4471_v3  ;;  %4870 = vmatpush.bf16.msra.mxu3 %v4471_v3  ;;  %v4457_v35 = vld [vmem:[%s5604_s26 + $0x1b0] sm:$0xff]  ;;  %v4458_v39 = vld [vmem:[%s5604_s26 + $0x1b8] sm:$0xff]  ;;  %v4443_v45 = vld [vmem:[%s5604_s26 + $0x140] sm:$0xff] }
  0x22   : > { %v4459_v46 = vld [vmem:[%s5604_s26 + $0x1c0] sm:$0xff] }
  0x24   : > { %756 = vmatpush.bf16.msra.mxu0 %v4470_v4  ;;  %4871 = vmatpush.bf16.msra.mxu1 %v4470_v4 }
  0x25   : > { %4872 = vmatpush.bf16.msra.mxu2 %v4470_v4  ;;  %4873 = vmatpush.bf16.msra.mxu3 %v4470_v4 }
  0x28   : > { %757 = vmatpush.bf16.msra.mxu0 %v4469_v5  ;;  %4874 = vmatpush.bf16.msra.mxu1 %v4469_v5 }
  0x29   : > { %4875 = vmatpush.bf16.msra.mxu2 %v4469_v5  ;;  %4876 = vmatpush.bf16.msra.mxu3 %v4469_v5  ;;  %v4412_v5 = vld [vmem:[%s5604_s26 + $0x48] sm:$0xff] }
  0x2c   : > { %758 = vmatpush.bf16.msra.mxu0 %v4468_v6  ;;  %4877 = vmatpush.bf16.msra.mxu1 %v4468_v6 }
  0x2d   : > { %4878 = vmatpush.bf16.msra.mxu2 %v4468_v6  ;;  %4879 = vmatpush.bf16.msra.mxu3 %v4468_v6  ;;  %v4428_v6 = vld [vmem:[%s5604_s26 + $0xc8] sm:$0xff] }
  0x30   : > { %759 = vmatpush.bf16.msra.mxu0 %v4467_v7  ;;  %4880 = vmatpush.bf16.msra.mxu1 %v4467_v7 }
  0x31   : > { %4881 = vmatpush.bf16.msra.mxu2 %v4467_v7  ;;  %4882 = vmatpush.bf16.msra.mxu3 %v4467_v7 }
  0x33   : > { %760 = vmatmul.bf16.vlgmr.msra.gmra.mxu0 %v4403_v8  ;;  %840 = vmatmul.bf16.vlgmr.msra.gmra.mxu1 %v4419_v9  ;;  %v4444_v8 = vld [vmem:[%s5604_s26 + $0x148] sm:$0xff] }
  0x34   : > { %920 = vmatmul.bf16.vlgmr.msra.gmra.mxu2 %v4435_v10  ;;  %1000 = vmatmul.bf16.vlgmr.msra.gmra.mxu3 %v4451_v11  ;;  %v4460_v9 = vld [vmem:[%s5604_s26 + $0x1c8] sm:$0xff] }
  0x43   : > { %765 = vmatmul.bf16.gmra.mxu0 %v4404_v12  ;;  %845 = vmatmul.bf16.gmra.mxu1 %v4420_v13 }
  0x44   : > { %925 = vmatmul.bf16.gmra.mxu2 %v4436_v14  ;;  %1005 = vmatmul.bf16.gmra.mxu3 %v4452_v15 }
  0x53   : > { %770 = vmatmul.bf16.gmra.mxu0 %v4405_v16  ;;  %850 = vmatmul.bf16.gmra.mxu1 %v4421_v17 }
  0x54   : > { %930 = vmatmul.bf16.gmra.mxu2 %v4437_v18  ;;  %1010 = vmatmul.bf16.gmra.mxu3 %v4453_v19 }
  0x63   : > { %775 = vmatmul.bf16.gmra.mxu0 %v4406_v20  ;;  %855 = vmatmul.bf16.gmra.mxu1 %v4422_v21 }
  0x64   : > { %935 = vmatmul.bf16.gmra.mxu2 %v4438_v22  ;;  %1015 = vmatmul.bf16.gmra.mxu3 %v4454_v23 }
  0x73   : > { %780 = vmatmul.bf16.gmra.mxu0 %v4407_v24  ;;  %860 = vmatmul.bf16.gmra.mxu1 %v4423_v25 }
  0x74   : > { %940 = vmatmul.bf16.gmra.mxu2 %v4439_v26  ;;  %1020 = vmatmul.bf16.gmra.mxu3 %v4455_v27 }
  0x83   : > { %785 = vmatmul.bf16.gmra.mxu0 %v4408_v28  ;;  %865 = vmatmul.bf16.gmra.mxu1 %v4424_v29 }
  0x84   : > { %945 = vmatmul.bf16.gmra.mxu2 %v4440_v30  ;;  %1025 = vmatmul.bf16.gmra.mxu3 %v4456_v31 }
  0x93   : > { %790 = vmatmul.bf16.gmra.mxu0 %v4409_v32  ;;  %870 = vmatmul.bf16.gmra.mxu1 %v4425_v33 }
  0x94   : > { %950 = vmatmul.bf16.gmra.mxu2 %v4441_v34  ;;  %1030 = vmatmul.bf16.gmra.mxu3 %v4457_v35 }
  0xa3   : > { %795 = vmatmul.bf16.gmra.mxu0 %v4410_v36  ;;  %875 = vmatmul.bf16.gmra.mxu1 %v4426_v37 }
  0xa4   : > { %955 = vmatmul.bf16.gmra.mxu2 %v4442_v38  ;;  %1035 = vmatmul.bf16.gmra.mxu3 %v4458_v39 }
  0xb0   : > { %v761_v43 = vpop.f32.mrf.mxu0  ;;  %v841_v44 = vpop.f32.mrf.mxu1 }
  0xb1   : > { %v5648_v47 = vadd.f32 %v5641_v40, %v761_v43  ;;  %v5651_v48 = vadd.f32 %v5641_v40, %v841_v44 }
  0xb3   : > { %v4270_v49 = vmul.f32 -1.442695, %v5648_v47  ;;  %v4302_v50 = vmul.f32 -1.442695, %v5651_v48  ;;  %800 = vmatmul.bf16.gmra.mxu0 %v4411_v41  ;;  %880 = vmatmul.bf16.gmra.mxu1 %v4427_v42 }
  0xb4   : > { %960 = vmatmul.bf16.gmra.mxu2 %v4443_v45  ;;  %1040 = vmatmul.bf16.gmra.mxu3 %v4459_v46 }
  0xb5   : > { %4925 = vpow2.f32 %v4270_v49 }
  0xb6   : > { %4927 = vpow2.f32 %v4302_v50 }
  0xb7   : > { %v921_v51 = vpop.f32.mrf.mxu2  ;;  %v1001_v52 = vpop.f32.mrf.mxu3 }
  0xb8   : > { %v5656_v53 = vadd.f32 %v5641_v40, %v921_v51  ;;  %v5659_v54 = vadd.f32 %v5641_v40, %v1001_v52  ;;  %v763_v55 = vpop.f32.mrf.mxu0  ;;  %v843_v56 = vpop.f32.mrf.mxu1 }
  0xb9   : > { %v5662_v57 = vadd.f32 %v5641_v40, %v763_v55  ;;  %v5665_v58 = vadd.f32 %v5641_v40, %v843_v56 }
  0xba   : > { %v4334_v59 = vmul.f32 -1.442695, %v5656_v53  ;;  %v4366_v60 = vmul.f32 -1.442695, %v5659_v54 }
  0xbb   : > { %v4926_v61 = vpop.eup %4925  ;;  %v4271_v0 = vmul.f32 -1.442695, %v5662_v57  ;;  %v4303_v2 = vmul.f32 -1.442695, %v5665_v58 }
  0xbc   : > { %v4928_v62 = vpop.eup %4927  ;;  %v5669_v63 = vadd.f32 1.0, %v4926_v61  ;;  %4929 = vpow2.f32 %v4334_v59 }
  0xbd   : > { %v5672_v1 = vadd.f32 1.0, %v4928_v62  ;;  %4931 = vpow2.f32 %v4366_v60 }
  0xbe   : > { %4933 = vrcp.f32 %v5669_v63  ;;  %v1602_v19 = vand.u32 2147483647, %v5669_v63  ;;  %v1604_v20 = vand.u32 2147483648, %v5669_v63  ;;  %vm1598_vm0 = vweird.f32 %v5669_v63 }
  0xbf   : > { %4935 = vrcp.f32 %v5672_v1  ;;  %v923_v3 = vpop.f32.mrf.mxu2  ;;  %v1003_v4 = vpop.f32.mrf.mxu3  ;;  %vm2078_vm1 = vweird.f32 %v5672_v1  ;;  %v2082_v28 = vand.u32 2147483647, %v5672_v1  ;;  %v2084_v29 = vand.u32 2147483648, %v5672_v1 }
  0xc0   : > { %4937 = vpow2.f32 %v4271_v0  ;;  %v5680_v7 = vadd.f32 %v5641_v40, %v923_v3  ;;  %v5685_v11 = vadd.f32 %v5641_v40, %v1003_v4  ;;  %v766_v21 = vpop.f32.mrf.mxu0  ;;  %v846_v22 = vpop.f32.mrf.mxu1  ;;  %vm5716_vm2 = vcmp.eq.f32.partialorder %v1602_v19, 8.507059e+37  ;;  %v4413_v4 = vld [vmem:[%s5604_s26 + $0x50] sm:$0xff] }
  0xc1   : > { %4939 = vpow2.f32 %v4303_v2  ;;  %v5710_v31 = vadd.f32 %v5641_v40, %v766_v21  ;;  %v5713_v32 = vadd.f32 %v5641_v40, %v846_v22  ;;  %v1605_v35 = vor.u32 1.1754944e-38, %v1604_v20 }
  0xc2   : > { %v4930_v10 = vpop.eup %4929  ;;  %v4335_v16 = vmul.f32 -1.442695, %v5680_v7  ;;  %v4367_v25 = vmul.f32 -1.442695, %v5685_v11  ;;  %vm5730_vm4 = vcmp.eq.f32.partialorder %v2082_v28, 8.507059e+37  ;;  %v2085_v46 = vor.u32 1.1754944e-38, %v2084_v29 }
  0xc3   : > { %v4932_v12 = vpop.eup %4931  ;;  %v5687_v13 = vadd.f32 1.0, %v4930_v10  ;;  %805 = vmatmul.bf16.gmra.mxu0 %v4412_v5  ;;  %885 = vmatmul.bf16.gmra.mxu1 %v4428_v6  ;;  %v4272_v50 = vmul.f32 -1.442695, %v5710_v31  ;;  %v5741_v51 = vmul.f32 -1.442695, %v5713_v32 }
  0xc4   : > { %v5689_v14 = vpop.eup %4933  ;;  %v5691_v15 = vadd.f32 1.0, %v4932_v12  ;;  %965 = vmatmul.bf16.gmra.mxu2 %v4444_v8  ;;  %1045 = vmatmul.bf16.gmra.mxu3 %v4460_v9 }
  0xc5   : > { %v5694_v17 = vpop.eup %4935  ;;  %v1594_v18 = vmul.f32 %v5689_v14, %v5669_v63  ;;  %4941 = vrcp.f32 %v5687_v13  ;;  %vm1599_vm3 = vweird.f32 %v5689_v14  ;;  %v2562_v39 = vand.u32 2147483647, %v5687_v13 }
  0xc6   : > { %v4938_v23 = vpop.eup %4937  ;;  %v2074_v24 = vmul.f32 %v5694_v17, %v5672_v1  ;;  %4943 = vrcp.f32 %v5691_v15  ;;  %v2564_v44 = vand.u32 2147483648, %v5687_v13  ;;  %v3044_v45 = vand.u32 2147483648, %v5691_v15  ;;  %vm5753_vm7 = vmor %vm1598_vm0, %vm1599_vm3 }
  0xc7   : > { %v4940_v26 = vpop.eup %4939  ;;  %v1595_v27 = vsub.f32 1.0, %v1594_v18  ;;  %4945 = vpow2.f32 %v4335_v16  ;;  %v5720_v36 = vadd.f32 1.0, %v4938_v23  ;;  %v926_v52 = vpop.f32.mrf.mxu2  ;;  %vm2079_vm5 = vweird.f32 %v5694_v17 }
  0xc8   : > { %v2075_v30 = vsub.f32 1.0, %v2074_v24  ;;  %v5722_v37 = vadd.f32 1.0, %v4940_v26  ;;  %4947 = vpow2.f32 %v4367_v25  ;;  %vm2558_vm6 = vweird.f32 %v5687_v13  ;;  %vm5778_vm10 = vmor %vm2078_vm1, %vm2079_vm5 }
  0xc9   : > { %v1596_v33 = vmul.f32 %v5689_v14, %v1595_v27  ;;  %4949 = vrcp.f32 %v5720_v36  ;;  %v3042_v0 = vand.u32 2147483647, %v5691_v15  ;;  %v1617_v2 = vand.u32 2147483647, %v5720_v36 }
  0xca   : > { %v2076_v38 = vmul.f32 %v5694_v17, %v2075_v30  ;;  %4951 = vrcp.f32 %v5722_v37  ;;  %vm5764_vm8 = vcmp.eq.f32.partialorder %v2562_v39, 8.507059e+37  ;;  %v2565_v63 = vor.u32 1.1754944e-38, %v2564_v44 }
  0xcb   : > { %v5727_v41 = vpop.eup %4941  ;;  %v1597_v42 = vadd.f32 %v5689_v14, %v1596_v33  ;;  %vm3038_vm9 = vweird.f32 %v5691_v15  ;;  %v5769_v5 = vor.u32 1.1754944e-38, %v3044_v45  ;;  %v5772_v6 = vadd.f32 %v5641_v40, %v926_v52 }
  0xcc   : > { %v2554_v49 = vmul.f32 %v5727_v41, %v5687_v13  ;;  %v5743_v55 = vpop.eup %4943  ;;  %v2077_v56 = vadd.f32 %v5694_v17, %v2076_v38  ;;  %vm2559_vm11 = vweird.f32 %v5727_v41  ;;  %vm1613_vm12 = vweird.f32 %v5720_v36 }
  0xcd   : > { %v4946_v59 = vpop.eup %4945  ;;  %v3034_v62 = vmul.f32 %v5743_v55, %v5691_v15  ;;  %v1601_v3 = vsel %vm5753_vm7, %v5689_v14, %v1597_v42  ;;  %v1619_v18 = vand.u32 2147483648, %v5720_v36  ;;  %4953 = vpow2.f32 %v4272_v50  ;;  %vm5815_vm15 = vmor %vm2558_vm6, %vm2559_vm11 }
  0xce   : > { %v2555_v61 = vsub.f32 1.0, %v2554_v49  ;;  %v4948_v8 = vpop.eup %4947  ;;  %v2081_v16 = vsel %vm5778_vm10, %v5694_v17, %v2077_v56  ;;  %v5789_v19 = vadd.f32 1.0, %v4946_v59  ;;  %v1606_v1 = vsel %vm5716_vm2, %v1605_v35, %v1601_v3 }
  0xcf   : > { %v3035_v12 = vsub.f32 1.0, %v3034_v62  ;;  %v4950_v14 = vpop.eup %4949  ;;  %vm5796_vm13 = vcmp.eq.f32.partialorder %v1617_v2, 8.507059e+37  ;;  %vm5800_vm14 = vcmp.eq.f32.partialorder %v3042_v0, 8.507059e+37  ;;  %v2097_v25 = vand.u32 2147483647, %v5722_v37  ;;  %v1006_v62 = vpop.f32.mrf.mxu3 }
  0xd0   : > { %v2556_v10 = vmul.f32 %v5727_v41, %v2555_v61  ;;  %v1609_v22 = vmul.f32 %v4950_v14, %v5720_v36  ;;  %v4952_v24 = vpop.eup %4951  ;;  %v2099_v26 = vand.u32 2147483648, %v5722_v37  ;;  %4955 = vrcp.f32 %v5789_v19 }
  0xd1   : > { %v3036_v21 = vmul.f32 %v5743_v55, %v3035_v12  ;;  %v5807_v27 = vadd.f32 1.0, %v4948_v8  ;;  %v2086_v28 = vsel %vm5730_vm4, %v2085_v46, %v2081_v16  ;;  %v2089_v33 = vmul.f32 %v4952_v24, %v5722_v37  ;;  %v4445_v8 = vld [vmem:[%s5604_s26 + $0x150] sm:$0xff] }
  0xd2   : > { %v2557_v20 = vadd.f32 %v5727_v41, %v2556_v10  ;;  %v1610_v30 = vsub.f32 1.0, %v1609_v22  ;;  %vm2093_vm0 = vweird.f32 %v5722_v37  ;;  %v5822_v34 = vmul.f32 %v1606_v1, %v5648_v47 }
  0xd3   : > { %v3037_v38 = vadd.f32 %v5743_v55, %v3036_v21  ;;  %vm3039_vm1 = vweird.f32 %v5743_v55  ;;  %vm1614_vm2 = vweird.f32 %v4950_v14  ;;  %v1620_v39 = vor.u32 1.1754944e-38, %v1619_v18  ;;  %v4954_v43 = vpop.eup %4953  ;;  %810 = vmatmul.bf16.gmra.mxu0 %v4413_v4 }
  0xd4   : > { %v2561_v35 = vsel %vm5815_vm15, %v5727_v41, %v2557_v20  ;;  %v1611_v13 = vmul.f32 %v4950_v14, %v1610_v30  ;;  %v2090_v42 = vsub.f32 1.0, %v2089_v33  ;;  %v5830_v44 = vmul.f32 %v2086_v28, %v5651_v48  ;;  %vm5842_vm4 = vmor %vm3038_vm9, %vm3039_vm1  ;;  %970 = vmatmul.bf16.gmra.mxu2 %v4445_v8 }
  0xd5   : > { %vm5833_vm3 = vcmp.eq.f32.partialorder %v2097_v25, 8.507059e+37  ;;  %v2100_v45 = vor.u32 1.1754944e-38, %v2099_v26  ;;  %4957 = vrcp.f32 %v5807_v27  ;;  %v2566_v41 = vsel %vm5764_vm8, %v2565_v63, %v2561_v35  ;;  %vm1615_vm6 = vmor %vm1613_vm12, %vm1614_vm2  ;;  %v4429_v63 = vld [vmem:[%s5604_s26 + $0xd0] sm:$0xff]  ;;  %v848_v26 = vpop.f32.mrf.mxu1 }
  0xd6   : > { %v1612_v48 = vadd.f32 %v4950_v14, %v1611_v13  ;;  %v2091_v49 = vmul.f32 %v4952_v24, %v2090_v42  ;;  %vm2094_vm5 = vweird.f32 %v4952_v24  ;;  %v5846_v50 = vpop.eup %4955  ;;  %v3041_v52 = vsel %vm5842_vm4, %v5743_v55, %v3037_v38  ;;  %890 = vmatmul.bf16.gmra.mxu1 %v4429_v63 }
  0xd7   : > { %vm2573_vm7 = vweird.f32 %v5789_v19  ;;  %v5855_v15 = vadd.f32 1.0, %v4954_v43  ;;  %4959 = vpow2.f32 %v5741_v51  ;;  %v2569_v55 = vmul.f32 %v5846_v50, %v5789_v19  ;;  %vm2095_vm8 = vmor %vm2093_vm0, %vm2094_vm5 }
  0xd8   : > { %v1616_v56 = vsel %vm1615_vm6, %v4950_v14, %v1612_v48  ;;  %v2092_v59 = vadd.f32 %v4952_v24, %v2091_v49  ;;  %v2577_v36 = vand.u32 2147483647, %v5789_v19  ;;  %v5866_v60 = vmul.f32 %v2566_v41, %v5656_v53  ;;  %v768_v14 = vpop.f32.mrf.mxu0 }
  0xd9   : > { %v1621_v61 = vsel %vm5796_vm13, %v1620_v39, %v1616_v56  ;;  %v2579_v51 = vand.u32 2147483648, %v5789_v19  ;;  %4961 = vrcp.f32 %v5855_v15  ;;  %v3046_v0 = vsel %vm5800_vm14, %v5769_v5, %v3041_v52  ;;  %v4461_v5 = vld [vmem:[%s5604_s26 + $0x1d0] sm:$0xff]  ;;  %v1008_v52 = vpop.f32.mrf.mxu3 }
  0xda   : > { %v3514_v2 = vmul.f32 %v1621_v61, %v5662_v57  ;;  %v2096_v53 = vsel %vm2095_vm8, %v4952_v24, %v2092_v59  ;;  %v2570_v3 = vsub.f32 1.0, %v2569_v55  ;;  %vm2574_vm9 = vweird.f32 %v5846_v50  ;;  %1050 = vmatmul.bf16.gmra.mxu3 %v4461_v5 }
  0xdb   : > { %v4958_v9 = vpop.eup %4957  ;;  %v2101_v37 = vsel %vm5833_vm3, %v2100_v45, %v2096_v53  ;;  %v3057_v10 = vand.u32 2147483647, %v5807_v27  ;;  %v4336_v12 = vmul.f32 -1.442695, %v5772_v6  ;;  %vm5891_vm10 = vcmp.eq.f32.partialorder %v2577_v36, 8.507059e+37  ;;  %vm2575_vm11 = vmor %vm2573_vm7, %vm2574_vm9 }
  0xdc   : > { %v4479_v57 = vpack.c.bf16 %v3514_v2, %v5822_v34  ;;  %v3546_v16 = vmul.f32 %v2101_v37, %v5665_v58  ;;  %v2571_v18 = vmul.f32 %v5846_v50, %v2570_v3  ;;  %v3049_v1 = vmul.f32 %v4958_v9, %v5807_v27  ;;  %v928_v34 = vpop.f32.mrf.mxu2 }
  0xdd   : > { %v4960_v20 = vpop.eup %4959  ;;  %v2580_v22 = vor.u32 1.1754944e-38, %v2579_v51  ;;  %v3059_v23 = vand.u32 2147483648, %v5807_v27  ;;  %4963 = vpow2.f32 %v4336_v12  ;;  %vm3053_vm12 = vweird.f32 %v5807_v27  ;;  %v851_v63 = vpop.f32.mrf.mxu1 }
  0xde   : > { %4480 = vst [vmem:[%s5897_s4] sm:$0xff] %v4479_v57   ;;  %v4559_v58 = vpack.c.bf16 %v3546_v16, %v5830_v44  ;;  %v2572_v24 = vadd.f32 %v5846_v50, %v2571_v18  ;;  %v3050_v17 = vsub.f32 1.0, %v3049_v1  ;;  %v5902_v25 = vadd.f32 1.0, %v4960_v20 }
  0xdf   : > { %v5904_v28 = vpop.eup %4961  ;;  %vm5911_vm13 = vcmp.eq.f32.partialorder %v3057_v10, 8.507059e+37  ;;  %v5916_v30 = vadd.f32 %v5641_v40, %v1006_v62  ;;  %v5919_v33 = vadd.f32 %v5641_v40, %v768_v14  ;;  %vm3054_vm14 = vweird.f32 %v4958_v9 }
  0xe0   : > { %4811 = vst [vmem:[%s5897_s4 + $0x80] sm:$0xff] %v4559_v58   ;;  %v2576_v35 = vsel %vm2575_vm11, %v5846_v50, %v2572_v24  ;;  %v3051_v38 = vmul.f32 %v4958_v9, %v3050_v17  ;;  %v1624_v19 = vmul.f32 %v5904_v28, %v5855_v15  ;;  %v3060_v39 = vor.u32 1.1754944e-38, %v3059_v23  ;;  %vm3055_vm15 = vmor %vm3053_vm12, %vm3054_vm14  ;;  %v771_v61 = vpop.f32.mrf.mxu0 }
  0xe1   : > { %v2581_v13 = vsel %vm5891_vm10, %v2580_v22, %v2576_v35  ;;  %4965 = vrcp.f32 %v5902_v25  ;;  %v5929_v42 = vadd.f32 %v5641_v40, %v848_v26  ;;  %v5933_v45 = vadd.f32 %v5641_v40, %v928_v34 }
  0xe2   : > { %v3578_v43 = vmul.f32 %v2581_v13, %v5680_v7  ;;  %v3052_v44 = vadd.f32 %v4958_v9, %v3051_v38  ;;  %v1625_v47 = vsub.f32 1.0, %v1624_v19  ;;  %v3609_v46 = vmul.f32 %v3046_v0, %v5659_v54 }
  0xe3   : > { %v4964_v41 = vpop.eup %4963  ;;  %v1632_v48 = vand.u32 2147483647, %v5855_v15  ;;  %v4368_v49 = vmul.f32 -1.442695, %v5916_v30  ;;  %v4273_v50 = vmul.f32 -1.442695, %v5919_v33  ;;  %v5953_v62 = vadd.f32 %v5641_v40, %v1008_v52 }
  0xe4   : > { %v4639_v7 = vpack.c.bf16 %v3578_v43, %v5866_v60  ;;  %v3056_v56 = vsel %vm3055_vm15, %v4958_v9, %v3052_v44  ;;  %v1626_v59 = vmul.f32 %v5904_v28, %v1625_v47  ;;  %v1634_v55 = vand.u32 2147483648, %v5855_v15  ;;  %v931_v26 = vpop.f32.mrf.mxu2 }
  0xe5   : > { %v3061_v54 = vsel %vm5911_vm13, %v3060_v39, %v3056_v56  ;;  %v5946_v36 = vadd.f32 1.0, %v4964_v41  ;;  %4967 = vpow2.f32 %v4368_v49  ;;  %v4305_v27 = vmul.f32 -1.442695, %v5929_v42  ;;  %v4414_v39 = vld [vmem:[%s5604_s26 + $0x58] sm:$0xff] }
  0xe6   : > { %4827 = vst [vmem:[%s5897_s4 + $0x100] sm:$0xff] %v4639_v7   ;;  %v3610_v51 = vmul.f32 %v3061_v54, %v5685_v11  ;;  %4969 = vpow2.f32 %v4273_v50  ;;  %v4337_v60 = vmul.f32 -1.442695, %v5933_v45  ;;  %v1627_v2 = vadd.f32 %v5904_v28, %v1626_v59  ;;  %815 = vmatmul.bf16.gmra.mxu0 %v4414_v39 }
  0xe7   : > { %v5955_v0 = vpop.eup %4965  ;;  %vm1628_vm0 = vweird.f32 %v5855_v15  ;;  %vm1629_vm1 = vweird.f32 %v5904_v28  ;;  %4971 = vrcp.f32 %v5946_v36  ;;  %vm5963_vm2 = vcmp.eq.f32.partialorder %v1632_v48, 8.507059e+37 }
  0xe8   : > { %v4719_v53 = vpack.c.bf16 %v3610_v51, %v3609_v46  ;;  %v2104_v11 = vmul.f32 %v5955_v0, %v5902_v25  ;;  %v2112_v4 = vand.u32 2147483647, %v5902_v25  ;;  %4973 = vpow2.f32 %v4305_v27  ;;  %vm5969_vm3 = vmor %vm1628_vm0, %vm1629_vm1  ;;  %v773_v19 = vpop.f32.mrf.mxu0 }
  0xe9   : > { %v1635_v15 = vor.u32 1.1754944e-38, %v1634_v55  ;;  %4975 = vpow2.f32 %v4337_v60  ;;  %v4369_v37 = vmul.f32 -1.442695, %v5953_v62  ;;  %v1631_v12 = vsel %vm5969_vm3, %v5904_v28, %v1627_v2  ;;  %v1011_v28 = vpop.f32.mrf.mxu3  ;;  %v853_v55 = vpop.f32.mrf.mxu1 }
  0xea   : > { %4843 = vst [vmem:[%s5897_s4 + $0x180] sm:$0xff] %v4719_v53   ;;  %v2105_v9 = vsub.f32 1.0, %v2104_v11  ;;  %v2114_v14 = vand.u32 2147483648, %v5902_v25  ;;  %v2592_v5 = vand.u32 2147483647, %v5946_v36  ;;  %v5980_v57 = vadd.f32 %v5641_v40, %v771_v61 }
  0xeb   : > { %v4968_v10 = vpop.eup %4967  ;;  %v2594_v1 = vand.u32 2147483648, %v5946_v36  ;;  %4977 = vpow2.f32 %v4369_v37  ;;  %vm2108_vm4 = vweird.f32 %v5902_v25  ;;  %vm2109_vm5 = vweird.f32 %v5955_v0 }
  0xec   : > { %v4970_v16 = vpop.eup %4969  ;;  %v2106_v18 = vmul.f32 %v5955_v0, %v2105_v9  ;;  %v5984_v20 = vadd.f32 1.0, %v4968_v10  ;;  %vm5988_vm6 = vcmp.eq.f32.partialorder %v2112_v4, 8.507059e+37  ;;  %v1636_v58 = vsel %vm5963_vm2, %v1635_v15, %v1631_v12  ;;  %vm6008_vm7 = vmor %vm2108_vm4, %vm2109_vm5 }
  0xed   : > { %v4972_v21 = vpop.eup %4971  ;;  %v5992_v23 = vadd.f32 1.0, %v4970_v16  ;;  %v2115_v34 = vor.u32 1.1754944e-38, %v2114_v14  ;;  %v4274_v35 = vmul.f32 -1.442695, %v5980_v57  ;;  %v6002_v38 = vadd.f32 %v5641_v40, %v851_v63 }
  0xee   : > { %v2107_v24 = vadd.f32 %v5955_v0, %v2106_v18  ;;  %v2584_v17 = vmul.f32 %v4972_v21, %v5946_v36  ;;  %4979 = vrcp.f32 %v5984_v20  ;;  %v4974_v29 = vpop.eup %4973  ;;  %vm2588_vm8 = vweird.f32 %v5946_v36 }
  0xef   : > { %4981 = vrcp.f32 %v5992_v23  ;;  %v4976_v13 = vpop.eup %4975  ;;  %vm6013_vm9 = vcmp.eq.f32.partialorder %v2592_v5, 8.507059e+37  ;;  %v2595_v47 = vor.u32 1.1754944e-38, %v2594_v1  ;;  %v6018_v41 = vmul.f32 %v1636_v58, %v5710_v31 }
  0xf0   : > { %v2585_v43 = vsub.f32 1.0, %v2584_v17  ;;  %v2111_v46 = vsel %vm6008_vm7, %v5955_v0, %v2107_v24  ;;  %v6024_v25 = vadd.f32 %v5641_v40, %v931_v26  ;;  %v6027_v48 = vadd.f32 %v5641_v40, %v1011_v28 }
  0xf1   : > { %v4978_v49 = vpop.eup %4977  ;;  %vm2589_vm10 = vweird.f32 %v4972_v21  ;;  %v6029_v52 = vadd.f32 1.0, %v4974_v29  ;;  %v6032_v7 = vadd.f32 %v5641_v40, %v773_v19  ;;  %v3074_v31 = vand.u32 2147483648, %v5984_v20 }
  0xf2   : > { %v2586_v50 = vmul.f32 %v4972_v21, %v2585_v43  ;;  %v6035_v56 = vadd.f32 1.0, %v4976_v13  ;;  %4983 = vpow2.f32 %v4274_v35  ;;  %v4306_v59 = vmul.f32 -1.442695, %v6002_v38  ;;  %vm2590_vm11 = vmor %vm2588_vm8, %vm2589_vm10  ;;  %v4430_v43 = vld [vmem:[%s5604_s26 + $0xd8] sm:$0xff] }
  0xf3   : > { %v2116_v27 = vsel %vm5988_vm6, %v2115_v34, %v2111_v46  ;;  %v1647_v51 = vand.u32 2147483647, %v5992_v23  ;;  %4985 = vrcp.f32 %v6029_v52  ;;  %v1649_v2 = vand.u32 2147483648, %v5992_v23  ;;  %895 = vmatmul.bf16.gmra.mxu1 %v4430_v43 }
  0xf4   : > { %v6038_v54 = vpop.eup %4979  ;;  %v2587_v61 = vadd.f32 %v4972_v21, %v2586_v50  ;;  %4987 = vrcp.f32 %v6035_v56  ;;  %v6050_v53 = vadd.f32 1.0, %v4978_v49  ;;  %v3072_v3 = vand.u32 2147483647, %v5984_v20  ;;  %v4446_v50 = vld [vmem:[%s5604_s26 + $0x158] sm:$0xff] }
  0xf5   : > { %v4982_v60 = vpop.eup %4981  ;;  %v3064_v0 = vmul.f32 %v6038_v54, %v5984_v20  ;;  %v6055_v63 = vadd.f32 %v5641_v40, %v853_v55  ;;  %vm1643_vm12 = vweird.f32 %v5992_v23  ;;  %v2127_v36 = vand.u32 2147483647, %v6029_v52  ;;  %975 = vmatmul.bf16.gmra.mxu2 %v4446_v50 }
  0xf6   : > { %v2591_v11 = vsel %vm2590_vm11, %v4972_v21, %v2587_v61  ;;  %v1639_v4 = vmul.f32 %v4982_v60, %v5992_v23  ;;  %v2129_v15 = vand.u32 2147483648, %v6029_v52  ;;  %v6061_v9 = vmul.f32 %v2116_v27, %v5713_v32 }
  0xf7   : > { %v3065_v8 = vsub.f32 1.0, %v3064_v0  ;;  %v2596_v37 = vsel %vm6013_vm9, %v2595_v47, %v2591_v11  ;;  %vm3068_vm13 = vweird.f32 %v5984_v20  ;;  %v6066_v10 = vor.u32 1.1754944e-38, %v3074_v31  ;;  %v4462_v31 = vld [vmem:[%s5604_s26 + $0x1d8] sm:$0xff]  ;;  %v1013_v47 = vpop.f32.mrf.mxu3 }
  0xf8   : > { %v1640_v12 = vsub.f32 1.0, %v1639_v4  ;;  %v4984_v14 = vpop.eup %4983  ;;  %vm6068_vm14 = vcmp.eq.f32.partialorder %v1647_v51, 8.507059e+37  ;;  %v1650_v16 = vor.u32 1.1754944e-38, %v1649_v2  ;;  %vm2123_vm15 = vweird.f32 %v6029_v52  ;;  %1055 = vmatmul.bf16.gmra.mxu3 %v4462_v31 }
  0xf9   : > { %4989 = vrcp.f32 %v6050_v53  ;;  %v4986_v32 = vpop.eup %4985  ;;  %v3066_v18 = vmul.f32 %v6038_v54, %v3065_v8  ;;  %vm3069_vm0 = vweird.f32 %v6038_v54  ;;  %vm1644_vm1 = vweird.f32 %v4982_v60 }
  0xfa   : > { %v1641_v1 = vmul.f32 %v4982_v60, %v1640_v12  ;;  %v4988_v21 = vpop.eup %4987  ;;  %v6077_v22 = vmul.f32 %v2596_v37, %v5772_v6  ;;  %v2119_v58 = vmul.f32 %v4986_v32, %v6029_v52  ;;  %vm6080_vm2 = vcmp.eq.f32.partialorder %v2127_v36, 8.507059e+37  ;;  %vm6090_vm4 = vmor %vm1643_vm12, %vm1644_vm1 }
  0xfb   : > { %v2130_v17 = vor.u32 1.1754944e-38, %v2129_v15  ;;  %vm2603_vm3 = vweird.f32 %v6035_v56  ;;  %v2599_v28 = vmul.f32 %v4988_v21, %v6035_v56  ;;  %v2607_v29 = vand.u32 2147483647, %v6035_v56  ;;  %vm6118_vm8 = vmor %vm3068_vm13, %vm3069_vm0 }
  0xfc   : > { %v1642_v26 = vadd.f32 %v4982_v60, %v1641_v1  ;;  %v2609_v34 = vand.u32 2147483648, %v6035_v56  ;;  %v2120_v35 = vsub.f32 1.0, %v2119_v58  ;;  %v3087_v19 = vand.u32 2147483647, %v6050_v53 }
  0xfd   : > { %v6095_v13 = vadd.f32 1.0, %v4984_v14  ;;  %4991 = vpow2.f32 %v4306_v59  ;;  %v3067_v44 = vadd.f32 %v6038_v54, %v3066_v18  ;;  %vm6100_vm5 = vcmp.eq.f32.partialorder %v3072_v3, 8.507059e+37 }
  0xfe   : > { %v1646_v23 = vsel %vm6090_vm4, %v4982_v60, %v1642_v26  ;;  %v2600_v46 = vsub.f32 1.0, %v2599_v28  ;;  %v4338_v49 = vmul.f32 -1.442695, %v6024_v25  ;;  %v2121_v27 = vmul.f32 %v4986_v32, %v2120_v35  ;;  %v933_v35 = vpop.f32.mrf.mxu2 }
  0xff   : > { %v4990_v55 = vpop.eup %4989  ;;  %v1651_v59 = vsel %vm6068_vm14, %v1650_v16, %v1646_v23  ;;  %vm2124_vm6 = vweird.f32 %v4986_v32  ;;  %4993 = vrcp.f32 %v6095_v13  ;;  %vm2604_vm7 = vweird.f32 %v4988_v21 }
 0x100   : > { %v3516_v61 = vmul.f32 %v1651_v59, %v5919_v33  ;;  %v2601_v51 = vmul.f32 %v4988_v21, %v2600_v46  ;;  %v3079_v60 = vmul.f32 %v4990_v55, %v6050_v53  ;;  %v2122_v2 = vadd.f32 %v4986_v32, %v2121_v27  ;;  %vm2125_vm10 = vmor %vm2123_vm15, %vm2124_vm6 }
 0x101   : > { %vm6122_vm9 = vcmp.eq.f32.partialorder %v2607_v29, 8.507059e+37  ;;  %v2610_v33 = vor.u32 1.1754944e-38, %v2609_v34  ;;  %v3089_v3 = vand.u32 2147483648, %v6050_v53  ;;  %4995 = vpow2.f32 %v4338_v49  ;;  %vm2605_vm11 = vmor %vm2603_vm3, %vm2604_vm7 }
 0x102   : > { %v4484_v4 = vpack.c.bf16 %v3516_v61, %v6018_v41  ;;  %v2602_v20 = vadd.f32 %v4988_v21, %v2601_v51  ;;  %v3080_v8 = vsub.f32 1.0, %v3079_v60  ;;  %v3071_v15 = vsel %vm6118_vm8, %v6038_v54, %v3067_v44 }
 0x103   : > { %v4992_v36 = vpop.eup %4991  ;;  %v2126_v37 = vsel %vm2125_vm10, %v4986_v32, %v2122_v2  ;;  %vm3084_vm12 = vweird.f32 %v4990_v55  ;;  %v4370_v41 = vmul.f32 -1.442695, %v6027_v48  ;;  %v4275_v56 = vmul.f32 -1.442695, %v6032_v7 }
 0x104   : > { %4796 = vst [vmem:[%s5897_s4 + $0x8] sm:$0xff] %v4484_v4   ;;  %v2131_v52 = vsel %vm6080_vm2, %v2130_v17, %v2126_v37  ;;  %v2606_v12 = vsel %vm2605_vm11, %v4988_v21, %v2602_v20  ;;  %v3081_v14 = vmul.f32 %v4990_v55, %v3080_v8  ;;  %v6141_v5 = vadd.f32 1.0, %v4992_v36 }
 0x105   : > { %v6143_v16 = vpop.eup %4993  ;;  %v3548_v54 = vmul.f32 %v2131_v52, %v5929_v42  ;;  %v2611_v32 = vsel %vm6122_vm9, %v2610_v33, %v2606_v12  ;;  %4997 = vpow2.f32 %v4370_v41  ;;  %vm3083_vm13 = vweird.f32 %v6050_v53 }
 0x106   : > { %v3580_v18 = vmul.f32 %v2611_v32, %v5933_v45  ;;  %v3082_v1 = vadd.f32 %v4990_v55, %v3081_v14  ;;  %v1654_v21 = vmul.f32 %v6143_v16, %v6095_v13  ;;  %v3076_v42 = vsel %vm6100_vm5, %v6066_v10, %v3071_v15  ;;  %vm3085_vm14 = vmor %vm3083_vm13, %vm3084_vm12 }
 0x107   : > { %v4564_v58 = vpack.c.bf16 %v3548_v54, %v6061_v9  ;;  %v3090_v24 = vor.u32 1.1754944e-38, %v3089_v3  ;;  %4999 = vrcp.f32 %v6141_v5  ;;  %v4996_v17 = vpop.eup %4995  ;;  %vm3088_vm15 = vcmp.eq.f32.partialorder %v3087_v19, 8.507059e+37 }
 0x108   : > { %v4644_v45 = vpack.c.bf16 %v3580_v18, %v6077_v22  ;;  %v3086_v26 = vsel %vm3085_vm14, %v4990_v55, %v3082_v1  ;;  %v1655_v28 = vsub.f32 1.0, %v1654_v21  ;;  %v6163_v34 = vadd.f32 1.0, %v4996_v17  ;;  %v776_v55 = vpop.f32.mrf.mxu0 }
 0x109   : > { %4812 = vst [vmem:[%s5897_s4 + $0x88] sm:$0xff] %v4564_v58   ;;  %v3091_v29 = vsel %vm3088_vm15, %v3090_v24, %v3086_v26  ;;  %5001 = vpow2.f32 %v4275_v56  ;;  %v3611_v9 = vmul.f32 %v3076_v42, %v5916_v30  ;;  %v4307_v6 = vmul.f32 -1.442695, %v6055_v63  ;;  %v856_v56 = vpop.f32.mrf.mxu1 }
 0x10a   : > { %4828 = vst [vmem:[%s5897_s4 + $0x108] sm:$0xff] %v4644_v45   ;;  %v3612_v10 = vmul.f32 %v3091_v29, %v5953_v62  ;;  %v1656_v39 = vmul.f32 %v6143_v16, %v1655_v28  ;;  %5003 = vrcp.f32 %v6163_v34  ;;  %v1662_v30 = vand.u32 2147483647, %v6095_v13 }
 0x10b   : > { %v4998_v22 = vpop.eup %4997  ;;  %5005 = vpow2.f32 %v4307_v6  ;;  %v1664_v44 = vand.u32 2147483648, %v6095_v13  ;;  %v6178_v62 = vadd.f32 %v5641_v40, %v933_v35  ;;  %vm1658_vm0 = vweird.f32 %v6095_v13 }
 0x10c   : > { %v4724_v53 = vpack.c.bf16 %v3612_v10, %v3611_v9  ;;  %v6171_v19 = vadd.f32 1.0, %v4998_v22  ;;  %v1657_v49 = vadd.f32 %v6143_v16, %v1656_v39  ;;  %vm1659_vm1 = vweird.f32 %v6143_v16 }
 0x10d   : > { %v6173_v43 = vpop.eup %4999  ;;  %v2142_v50 = vand.u32 2147483647, %v6141_v5  ;;  %v2144_v31 = vand.u32 2147483648, %v6141_v5  ;;  %v4339_v61 = vmul.f32 -1.442695, %v6178_v62  ;;  %v6193_v51 = vadd.f32 %v5641_v40, %v1013_v47  ;;  %vm6205_vm4 = vmor %vm1658_vm0, %vm1659_vm1 }
 0x10e   : > { %4844 = vst [vmem:[%s5897_s4 + $0x188] sm:$0xff] %v4724_v53   ;;  %v2134_v23 = vmul.f32 %v6173_v43, %v6141_v5  ;;  %5007 = vrcp.f32 %v6171_v19  ;;  %vm6197_vm2 = vcmp.eq.f32.partialorder %v1662_v30, 8.507059e+37  ;;  %v1665_v2 = vor.u32 1.1754944e-38, %v1664_v44 }
 0x10f   : > { %v5002_v46 = vpop.eup %5001  ;;  %vm2138_vm3 = vweird.f32 %v6141_v5  ;;  %v2624_v11 = vand.u32 2147483648, %v6163_v34  ;;  %v6214_v8 = vadd.f32 %v5641_v40, %v776_v55  ;;  %v1661_v36 = vsel %vm6205_vm4, %v6143_v16, %v1657_v49  ;;  %v1016_v55 = vpop.f32.mrf.mxu3 }
 0x110   : > { %v2135_v59 = vsub.f32 1.0, %v2134_v23  ;;  %v6189_v27 = vadd.f32 1.0, %v5002_v46  ;;  %v6195_v60 = vpop.eup %5003  ;;  %vm6219_vm5 = vcmp.eq.f32.partialorder %v2142_v50, 8.507059e+37  ;;  %v2145_v15 = vor.u32 1.1754944e-38, %v2144_v31  ;;  %v936_v46 = vpop.f32.mrf.mxu2 }
 0x111   : > { %v5006_v33 = vpop.eup %5005  ;;  %v2614_v20 = vmul.f32 %v6195_v60, %v6163_v34  ;;  %v2622_v12 = vand.u32 2147483647, %v6163_v34  ;;  %v4371_v14 = vmul.f32 -1.442695, %v6193_v51  ;;  %vm2139_vm6 = vweird.f32 %v6173_v43  ;;  %v858_v5 = vpop.f32.mrf.mxu1 }
 0x112   : > { %v2136_v4 = vmul.f32 %v6173_v43, %v2135_v59  ;;  %5009 = vrcp.f32 %v6189_v27  ;;  %v6223_v37 = vadd.f32 1.0, %v5006_v33  ;;  %vm2618_vm7 = vweird.f32 %v6163_v34  ;;  %vm6246_vm9 = vmor %vm2138_vm3, %vm2139_vm6 }
 0x113   : > { %v2615_v52 = vsub.f32 1.0, %v2614_v20  ;;  %5011 = vpow2.f32 %v4339_v61  ;;  %v3104_v32 = vand.u32 2147483648, %v6171_v19  ;;  %v1666_v18 = vsel %vm6197_vm2, %v1665_v2, %v1661_v36 }
 0x114   : > { %v6225_v41 = vpop.eup %5007  ;;  %v2137_v54 = vadd.f32 %v6173_v43, %v2136_v4  ;;  %v6237_v1 = vor.u32 1.1754944e-38, %v2624_v11  ;;  %5013 = vrcp.f32 %v6223_v37  ;;  %v4276_v21 = vmul.f32 -1.442695, %v6214_v8  ;;  %v6316_v4 = vld [vmem:[%s9255_s2] ss:$0 sm:$0xff] }
 0x115   : > { %v3094_v16 = vmul.f32 %v6225_v41, %v6171_v19  ;;  %v2616_v42 = vmul.f32 %v6195_v60, %v2615_v52  ;;  %vm3098_vm8 = vweird.f32 %v6171_v19  ;;  %v3102_v24 = vand.u32 2147483647, %v6171_v19 }
 0x116   : > { %v1677_v26 = vand.u32 2147483647, %v6189_v27  ;;  %v1679_v28 = vand.u32 2147483648, %v6189_v27  ;;  %5015 = vpow2.f32 %v4371_v14  ;;  %v6253_v29 = vadd.f32 %v5641_v40, %v856_v56 }
 0x117   : > { %v3095_v58 = vsub.f32 1.0, %v3094_v16  ;;  %v6256_v9 = vmul.f32 %v1666_v18, %v5980_v57  ;;  %v2141_v10 = vsel %vm6246_vm9, %v6173_v43, %v2137_v54  ;;  %vm6261_vm10 = vcmp.eq.f32.partialorder %v2622_v12, 8.507059e+37  ;;  %v4431_v54 = vld [vmem:[%s5604_s26 + $0xe0] sm:$0xff] }
 0x118   : > { %v5010_v17 = vpop.eup %5009  ;;  %v6265_v6 = vor.u32 1.1754944e-38, %v3104_v32  ;;  %vm2619_vm11 = vweird.f32 %v6195_v60  ;;  %5017 = vpow2.f32 %v4276_v21  ;;  %v4308_v57 = vmul.f32 -1.442695, %v6253_v29  ;;  %v4447_v16 = vld [vmem:[%s5604_s26 + $0x160] sm:$0xff]  ;;  %900 = vmatmul.bf16.gmra.mxu1 %v4431_v54 }
 0x119   : > { %v1669_v35 = vmul.f32 %v5010_v17, %v6189_v27  ;;  %v5012_v22 = vpop.eup %5011  ;;  %v3096_v40 = vmul.f32 %v6225_v41, %v3095_v58  ;;  %v2617_v39 = vadd.f32 %v6195_v60, %v2616_v42  ;;  %vm1673_vm12 = vweird.f32 %v6189_v27  ;;  %vm6294_vm1 = vmor %vm2618_vm7, %vm2619_vm11  ;;  %v4463_v18 = vld [vmem:[%s5604_s26 + $0x1e0] sm:$0xff]  ;;  %980 = vmatmul.bf16.gmra.mxu2 %v4447_v16 }
 0x11a   : > { %v6273_v43 = vadd.f32 1.0, %v5012_v22  ;;  %v6275_v30 = vpop.eup %5013  ;;  %v2146_v44 = vsel %vm6219_vm5, %v2145_v15, %v2141_v10  ;;  %vm3099_vm13 = vweird.f32 %v6225_v41  ;;  %vm6280_vm14 = vcmp.eq.f32.partialorder %v1677_v26, 8.507059e+37  ;;  %1060 = vmatmul.bf16.gmra.mxu3 %v4463_v18  ;;  %v938_v18 = vpop.f32.mrf.mxu2 }
 0x11b   : > { %v1670_v53 = vsub.f32 1.0, %v1669_v35  ;;  %v1680_v23 = vor.u32 1.1754944e-38, %v1679_v28  ;;  %vm6284_vm15 = vcmp.eq.f32.partialorder %v3102_v24, 8.507059e+37  ;;  %vm1674_vm0 = vweird.f32 %v5010_v17  ;;  %vm6309_vm3 = vmor %vm3098_vm8, %vm3099_vm13 }
 0x11c   : > { %v2149_v31 = vmul.f32 %v6275_v30, %v6223_v37  ;;  %5019 = vpow2.f32 %v4308_v57  ;;  %v5016_v59 = vpop.eup %5015  ;;  %v3097_v0 = vadd.f32 %v6225_v41, %v3096_v40  ;;  %vm2153_vm2 = vweird.f32 %v6223_v37  ;;  %vm1675_vm4 = vmor %vm1673_vm12, %vm1674_vm0 }
 0x11d   : > { %v1671_v50 = vmul.f32 %v5010_v17, %v1670_v53  ;;  %v2157_v2 = vand.u32 2147483647, %v6223_v37  ;;  %5021 = vrcp.f32 %v6273_v43  ;;  %v2621_v11 = vsel %vm6294_vm1, %v6195_v60, %v2617_v39 }
 0x11e   : > { %v2150_v3 = vsub.f32 1.0, %v2149_v31  ;;  %v6319_v60 = vadd.f32 %v6316_v4, %v936_v46  ;;  %v5018_v20 = vpop.eup %5017  ;;  %v3549_v19 = vmul.f32 %v2146_v44, %v6002_v38  ;;  %v2159_v36 = vand.u32 2147483648, %v6223_v37  ;;  %v4415_v38 = vld [vmem:[%s5604_s26 + $0x60] sm:$0xff]  ;;  %v778_v37 = vpop.f32.mrf.mxu0 }
 0x11f   : > { %v1672_v33 = vadd.f32 %v5010_v17, %v1671_v50  ;;  %v6326_v13 = vadd.f32 1.0, %v5016_v59  ;;  %v6329_v15 = vadd.f32 %v6316_v4, %v1016_v55  ;;  %vm2154_vm5 = vweird.f32 %v6275_v30  ;;  %820 = vmatmul.bf16.gmra.mxu0 %v4415_v38 }
 0x120   : > { %v2151_v12 = vmul.f32 %v6275_v30, %v2150_v3  ;;  %v6333_v14 = vadd.f32 1.0, %v5018_v20  ;;  %v2626_v27 = vsel %vm6261_vm10, %v6237_v1, %v2621_v11  ;;  %v3101_v32 = vsel %vm6309_vm3, %v6225_v41, %v3097_v0  ;;  %vm2155_vm6 = vmor %vm2153_vm2, %vm2154_vm5 }
 0x121   : > { %v1676_v52 = vsel %vm1675_vm4, %v5010_v17, %v1672_v33  ;;  %5023 = vrcp.f32 %v6326_v13  ;;  %v4340_v24 = vmul.f32 -1.442695, %v6319_v60  ;;  %vm2158_vm7 = vcmp.eq.f32.partialorder %v2157_v2, 8.507059e+37 }
 0x122   : > { %v1681_v56 = vsel %vm6280_vm14, %v1680_v23, %v1676_v52  ;;  %v5020_v21 = vpop.eup %5019  ;;  %v2152_v58 = vadd.f32 %v6275_v30, %v2151_v12  ;;  %5025 = vrcp.f32 %v6333_v14  ;;  %v2160_v41 = vor.u32 1.1754944e-38, %v2159_v36 }
 0x123   : > { %v3518_v42 = vmul.f32 %v1681_v56, %v6032_v7  ;;  %v5022_v1 = vpop.eup %5021  ;;  %v2637_v17 = vand.u32 2147483647, %v6273_v43  ;;  %v4372_v7 = vmul.f32 -1.442695, %v6329_v15  ;;  %v6359_v45 = vmul.f32 %v2626_v27, %v6024_v25 }
 0x124   : > { %v2156_v28 = vsel %vm2155_vm6, %v6275_v30, %v2152_v58  ;;  %v2629_v10 = vmul.f32 %v5022_v1, %v6273_v43  ;;  %v3106_v35 = vsel %vm6284_vm15, %v6265_v6, %v3101_v32  ;;  %vm2633_vm8 = vweird.f32 %v6273_v43  ;;  %v1018_v58 = vpop.f32.mrf.mxu3 }
 0x125   : > { %v4489_v26 = vpack.c.bf16 %v3518_v42, %v6256_v9  ;;  %v2161_v22 = vsel %vm2158_vm7, %v2160_v41, %v2156_v28  ;;  %v2639_v40 = vand.u32 2147483648, %v6273_v43  ;;  %v6371_v9 = vadd.f32 1.0, %v5020_v21 }
 0x126   : > { %v3550_v25 = vmul.f32 %v2161_v22, %v6055_v63  ;;  %v2630_v57 = vsub.f32 1.0, %v2629_v10  ;;  %5027 = vpow2.f32 %v4340_v24  ;;  %vm6373_vm9 = vcmp.eq.f32.partialorder %v2637_v17, 8.507059e+37 }
 0x127   : > { %4797 = vst [vmem:[%s5897_s4 + $0x10] sm:$0xff] %v4489_v26   ;;  %v5024_v39 = vpop.eup %5023  ;;  %5029 = vpow2.f32 %v4372_v7  ;;  %v6378_v6 = vadd.f32 %v6316_v4, %v778_v37  ;;  %v6381_v30 = vadd.f32 %v6316_v4, %v858_v5  ;;  %vm2634_vm10 = vweird.f32 %v5022_v1 }
 0x128   : > { %v6383_v44 = vpop.eup %5025  ;;  %v4569_v63 = vpack.c.bf16 %v3550_v25, %v3549_v19  ;;  %v2631_v47 = vmul.f32 %v5022_v1, %v2630_v57  ;;  %v3109_v23 = vmul.f32 %v5024_v39, %v6326_v13  ;;  %v2640_v46 = vor.u32 1.1754944e-38, %v2639_v40  ;;  %vm2635_vm12 = vmor %vm2633_vm8, %vm2634_vm10 }
 0x129   : > { %vm3113_vm11 = vweird.f32 %v6326_v13  ;;  %v1684_v49 = vmul.f32 %v6383_v44, %v6333_v14  ;;  %5031 = vrcp.f32 %v6371_v9  ;;  %v3117_v55 = vand.u32 2147483647, %v6326_v13 }
 0x12a   : > { %4813 = vst [vmem:[%s5897_s4 + $0x90] sm:$0xff] %v4569_v63   ;;  %v2632_v50 = vadd.f32 %v5022_v1, %v2631_v47  ;;  %v3110_v31 = vsub.f32 1.0, %v3109_v23  ;;  %v3119_v59 = vand.u32 2147483648, %v6326_v13  ;;  %vm1688_vm13 = vweird.f32 %v6333_v14 }
 0x12b   : > { %v1685_v61 = vsub.f32 1.0, %v1684_v49  ;;  %v4277_v0 = vmul.f32 -1.442695, %v6378_v6  ;;  %v4309_v2 = vmul.f32 -1.442695, %v6381_v30  ;;  %vm3114_vm14 = vweird.f32 %v5024_v39 }
 0x12c   : > { %v5028_v11 = vpop.eup %5027  ;;  %v2636_v34 = vsel %vm2635_vm12, %v5022_v1, %v2632_v50  ;;  %v3111_v33 = vmul.f32 %v5024_v39, %v3110_v31  ;;  %v1694_v3 = vand.u32 2147483648, %v6333_v14  ;;  %vm3115_vm15 = vmor %vm3113_vm11, %vm3114_vm14  ;;  %v3120_v16 = vor.u32 1.1754944e-38, %v3119_v59  ;;  %v781_v50 = vpop.f32.mrf.mxu0 }
 0x12d   : > { %v5030_v20 = vpop.eup %5029  ;;  %v2641_v19 = vsel %vm6373_vm9, %v2640_v46, %v2636_v34  ;;  %v1686_v43 = vmul.f32 %v6383_v44, %v1685_v61  ;;  %v6402_v36 = vadd.f32 1.0, %v5028_v11  ;;  %5033 = vpow2.f32 %v4277_v0  ;;  %v861_v0 = vpop.f32.mrf.mxu1 }
 0x12e   : > { %v3582_v52 = vmul.f32 %v2641_v19, %v6178_v62  ;;  %v3112_v12 = vadd.f32 %v5024_v39, %v3111_v33  ;;  %v6405_v38 = vadd.f32 1.0, %v5030_v20  ;;  %5035 = vpow2.f32 %v4309_v2 }
 0x12f   : > { %v6407_v54 = vpop.eup %5031  ;;  %v1687_v27 = vadd.f32 %v6383_v44, %v1686_v43  ;;  %vm1689_vm0 = vweird.f32 %v6383_v44  ;;  %5037 = vrcp.f32 %v6402_v36  ;;  %vm3118_vm1 = vcmp.eq.f32.partialorder %v3117_v55, 8.507059e+37 }
 0x130   : > { %v4649_v32 = vpack.c.bf16 %v3582_v52, %v6359_v45  ;;  %v3116_v62 = vsel %vm3115_vm15, %v5024_v39, %v3112_v12  ;;  %v2164_v56 = vmul.f32 %v6407_v54, %v6371_v9  ;;  %v3613_v21 = vmul.f32 %v3106_v35, %v6027_v48  ;;  %vm6423_vm2 = vmor %vm1688_vm13, %vm1689_vm0 }
 0x131   : > { %v3121_v42 = vsel %vm3118_vm1, %v3120_v16, %v3116_v62  ;;  %v1692_v13 = vand.u32 2147483647, %v6333_v14  ;;  %v2172_v17 = vand.u32 2147483647, %v6371_v9  ;;  %5039 = vrcp.f32 %v6405_v38 }
 0x132   : > { %4829 = vst [vmem:[%s5897_s4 + $0x110] sm:$0xff] %v4649_v32   ;;  %v3614_v24 = vmul.f32 %v3121_v42, %v6193_v51  ;;  %v2165_v41 = vsub.f32 1.0, %v2164_v56  ;;  %v1691_v7 = vsel %vm6423_vm2, %v6383_v44, %v1687_v27  ;;  %v1695_v45 = vor.u32 1.1754944e-38, %v1694_v3 }
 0x133   : > { %v5034_v48 = vpop.eup %5033  ;;  %v2174_v51 = vand.u32 2147483648, %v6371_v9  ;;  %v6434_v14 = vadd.f32 %v6316_v4, %v938_v18  ;;  %v6440_v5 = vadd.f32 %v6316_v4, %v1018_v58  ;;  %vm1693_vm3 = vcmp.eq.f32.partialorder %v1692_v13, 8.507059e+37 }
 0x134   : > { %v5036_v26 = vpop.eup %5035  ;;  %v4729_v28 = vpack.c.bf16 %v3614_v24, %v3613_v21  ;;  %v2166_v10 = vmul.f32 %v6407_v54, %v2165_v41  ;;  %v6437_v37 = vadd.f32 1.0, %v5034_v48  ;;  %vm2168_vm4 = vweird.f32 %v6371_v9 }
 0x135   : > { %v6442_v35 = vpop.eup %5037  ;;  %v2654_v22 = vand.u32 2147483648, %v6402_v36  ;;  %v6446_v40 = vadd.f32 1.0, %v5036_v26  ;;  %v1696_v25 = vsel %vm1693_vm3, %v1695_v45, %v1691_v7  ;;  %vm6449_vm5 = vcmp.eq.f32.partialorder %v2172_v17, 8.507059e+37 }
 0x136   : > { %4845 = vst [vmem:[%s5897_s4 + $0x190] sm:$0xff] %v4729_v28   ;;  %v2644_v39 = vmul.f32 %v6442_v35, %v6402_v36  ;;  %v3134_v53 = vand.u32 2147483648, %v6405_v38  ;;  %vm2169_vm6 = vweird.f32 %v6407_v54  ;;  %v2175_v44 = vor.u32 1.1754944e-38, %v2174_v51 }
 0x137   : > { %5041 = vrcp.f32 %v6437_v37  ;;  %v4341_v63 = vmul.f32 -1.442695, %v6434_v14  ;;  %v6459_v47 = vpop.eup %5039  ;;  %v2167_v23 = vadd.f32 %v6407_v54, %v2166_v10  ;;  %v4373_v49 = vmul.f32 -1.442695, %v6440_v5  ;;  %vm6482_vm10 = vmor %vm2168_vm4, %vm2169_vm6 }
 0x138   : > { %v2645_v46 = vsub.f32 1.0, %v2644_v39  ;;  %5043 = vrcp.f32 %v6446_v40  ;;  %v6465_v31 = vmul.f32 %v1696_v25, %v6214_v8  ;;  %vm2648_vm7 = vweird.f32 %v6402_v36  ;;  %v941_v8 = vpop.f32.mrf.mxu2 }
 0x139   : > { %v2652_v55 = vand.u32 2147483647, %v6402_v36  ;;  %v6469_v59 = vor.u32 1.1754944e-38, %v2654_v22  ;;  %v3124_v61 = vmul.f32 %v6459_v47, %v6405_v38  ;;  %vm2649_vm8 = vweird.f32 %v6442_v35 }
 0x13a   : > { %vm3128_vm9 = vweird.f32 %v6405_v38  ;;  %v3132_v2 = vand.u32 2147483647, %v6405_v38  ;;  %v6476_v11 = vor.u32 1.1754944e-38, %v3134_v53  ;;  %v2646_v33 = vmul.f32 %v6442_v35, %v2645_v46  ;;  %vm6527_vm1 = vmor %vm2648_vm7, %vm2649_vm8  ;;  %v4432_v46 = vld [vmem:[%s5604_s26 + $0xe8] sm:$0xff] }
 0x13b   : > { %v3125_v3 = vsub.f32 1.0, %v3124_v61  ;;  %5045 = vpow2.f32 %v4341_v63  ;;  %v6488_v20 = vadd.f32 %v6316_v4, %v781_v50  ;;  %v2171_v19 = vsel %vm6482_vm10, %v6407_v54, %v2167_v23  ;;  %905 = vmatmul.bf16.gmra.mxu1 %v4432_v46 }
 0x13c   : > { %vm1703_vm11 = vweird.f32 %v6437_v37  ;;  %5047 = vpow2.f32 %v4373_v49  ;;  %v6495_v9 = vadd.f32 %v6316_v4, %v861_v0  ;;  %vm6497_vm12 = vcmp.eq.f32.partialorder %v2652_v55, 8.507059e+37  ;;  %v4448_v49 = vld [vmem:[%s5604_s26 + $0x168] sm:$0xff] }
 0x13d   : > { %v5042_v43 = vpop.eup %5041  ;;  %v3126_v12 = vmul.f32 %v6459_v47, %v3125_v3  ;;  %v1707_v16 = vand.u32 2147483647, %v6437_v37  ;;  %v4278_v27 = vmul.f32 -1.442695, %v6488_v20  ;;  %v6505_v32 = vadd.f32 %v6316_v4, %v941_v8  ;;  %v4464_v0 = vld [vmem:[%s5604_s26 + $0x1e8] sm:$0xff]  ;;  %985 = vmatmul.bf16.gmra.mxu2 %v4448_v49 }
 0x13e   : > { %v5044_v54 = vpop.eup %5043  ;;  %v1699_v62 = vmul.f32 %v5042_v43, %v6437_v37  ;;  %v1709_v56 = vand.u32 2147483648, %v6437_v37  ;;  %vm2183_vm13 = vweird.f32 %v6446_v40  ;;  %v4310_v18 = vmul.f32 -1.442695, %v6495_v9  ;;  %v4416_v37 = vld [vmem:[%s5604_s26 + $0x68] sm:$0xff]  ;;  %1065 = vmatmul.bf16.gmra.mxu3 %v4464_v0 }
 0x13f   : > { %v2176_v21 = vsel %vm6449_vm5, %v2175_v44, %v2171_v19  ;;  %v2647_v42 = vadd.f32 %v6442_v35, %v2646_v33  ;;  %vm3129_vm14 = vweird.f32 %v6459_v47  ;;  %vm6515_vm15 = vcmp.eq.f32.partialorder %v3132_v2, 8.507059e+37  ;;  %v1021_v44 = vpop.f32.mrf.mxu3  ;;  %825 = vmatmul.bf16.gmra.mxu0 %v4416_v37 }
 0x140   : > { %v2179_v58 = vmul.f32 %v5044_v54, %v6446_v40  ;;  %v1700_v24 = vsub.f32 1.0, %v1699_v62  ;;  %v2187_v1 = vand.u32 2147483647, %v6446_v40  ;;  %5049 = vpow2.f32 %v4278_v27  ;;  %vm6541_vm2 = vmor %vm3128_vm9, %vm3129_vm14 }
 0x141   : > { %v4342_v41 = vmul.f32 -1.442695, %v6505_v32  ;;  %v5046_v17 = vpop.eup %5045  ;;  %v3127_v48 = vadd.f32 %v6459_v47, %v3126_v12  ;;  %vm1704_vm0 = vweird.f32 %v5042_v43  ;;  %5051 = vpow2.f32 %v4310_v18 }
 0x142   : > { %v2180_v7 = vsub.f32 1.0, %v2179_v58  ;;  %v5048_v45 = vpop.eup %5047  ;;  %v1701_v26 = vmul.f32 %v5042_v43, %v1700_v24  ;;  %v2189_v28 = vand.u32 2147483648, %v6446_v40  ;;  %v6532_v10 = vadd.f32 1.0, %v5046_v17  ;;  %vm6551_vm4 = vmor %vm1703_vm11, %vm1704_vm0 }
 0x143   : > { %5053 = vpow2.f32 %v4342_v41  ;;  %v2651_v22 = vsel %vm6527_vm1, %v6442_v35, %v2647_v42  ;;  %vm2184_vm3 = vweird.f32 %v5044_v54  ;;  %v6545_v57 = vadd.f32 1.0, %v5048_v45 }
 0x144   : > { %v2181_v25 = vmul.f32 %v5044_v54, %v2180_v7  ;;  %v3551_v39 = vmul.f32 %v2176_v21, %v6253_v29  ;;  %v1702_v53 = vadd.f32 %v5042_v43, %v1701_v26  ;;  %vm6555_vm5 = vcmp.eq.f32.partialorder %v1707_v16, 8.507059e+37  ;;  %vm2185_vm6 = vmor %vm2183_vm13, %vm2184_vm3  ;;  %v863_v26 = vpop.f32.mrf.mxu1 }
 0x145   : > { %5055 = vrcp.f32 %v6532_v10  ;;  %v3131_v29 = vsel %vm6541_vm2, %v6459_v47, %v3127_v48  ;;  %v1710_v63 = vor.u32 1.1754944e-38, %v1709_v56  ;;  %v2656_v55 = vsel %vm6497_vm12, %v6469_v59, %v2651_v22  ;;  %v783_v48 = vpop.f32.mrf.mxu0 }
 0x146   : > { %v2182_v23 = vadd.f32 %v5044_v54, %v2181_v25  ;;  %5057 = vrcp.f32 %v6545_v57  ;;  %v5050_v50 = vpop.eup %5049  ;;  %v1706_v61 = vsel %vm6551_vm4, %v5042_v43, %v1702_v53  ;;  %vm2188_vm7 = vcmp.eq.f32.partialorder %v2187_v1, 8.507059e+37  ;;  %v943_v25 = vpop.f32.mrf.mxu2 }
 0x147   : > { %v2190_v47 = vor.u32 1.1754944e-38, %v2189_v28  ;;  %v5052_v2 = vpop.eup %5051  ;;  %v1711_v8 = vsel %vm6555_vm5, %v1710_v63, %v1706_v61  ;;  %v6578_v33 = vadd.f32 1.0, %v5050_v50  ;;  %v6581_v3 = vadd.f32 %v6316_v4, %v1021_v44 }
 0x148   : > { %v2186_v34 = vsel %vm2185_vm6, %v5044_v54, %v2182_v23  ;;  %v3136_v40 = vsel %vm6515_vm15, %v6476_v11, %v3131_v29  ;;  %v3520_v19 = vmul.f32 %v1711_v8, %v6378_v6  ;;  %v2667_v52 = vand.u32 2147483647, %v6532_v10 }
 0x149   : > { %v5054_v59 = vpop.eup %5053  ;;  %v2191_v43 = vsel %vm2188_vm7, %v2190_v47, %v2186_v34  ;;  %v2669_v16 = vand.u32 2147483648, %v6532_v10  ;;  %v3147_v27 = vand.u32 2147483647, %v6545_v57  ;;  %5059 = vrcp.f32 %v6578_v33 }
 0x14a   : > { %v3552_v12 = vmul.f32 %v2191_v43, %v6381_v30  ;;  %v4494_v11 = vpack.c.bf16 %v3520_v19, %v6465_v31  ;;  %v3149_v6 = vand.u32 2147483648, %v6545_v57  ;;  %v6594_v62 = vadd.f32 1.0, %v5052_v2  ;;  %v1023_v19 = vpop.f32.mrf.mxu3 }
 0x14b   : > { %v5056_v54 = vpop.eup %5055  ;;  %v6596_v56 = vadd.f32 1.0, %v5054_v59  ;;  %v6599_v21 = vmul.f32 %v2656_v55, %v6319_v60  ;;  %v6602_v30 = vmul.f32 %v3136_v40, %v6329_v15  ;;  %vm2663_vm8 = vweird.f32 %v6532_v10 }
 0x14c   : > { %v5058_v18 = vpop.eup %5057  ;;  %v4574_v42 = vpack.c.bf16 %v3552_v12, %v3551_v39  ;;  %v2659_v13 = vmul.f32 %v5056_v54, %v6532_v10  ;;  %4798 = vst [vmem:[%s5897_s4 + $0x18] sm:$0xff] %v4494_v11   ;;  %5061 = vrcp.f32 %v6594_v62  ;;  %v4374_v58 = vmul.f32 -1.442695, %v6581_v3 }
 0x14d   : > { %v3139_v31 = vmul.f32 %v5058_v18, %v6545_v57  ;;  %vm6611_vm9 = vcmp.eq.f32.partialorder %v2667_v52, 8.507059e+37  ;;  %v2670_v15 = vor.u32 1.1754944e-38, %v2669_v16  ;;  %vm3143_vm10 = vweird.f32 %v6545_v57 }
 0x14e   : > { %4814 = vst [vmem:[%s5897_s4 + $0x98] sm:$0xff] %v4574_v42   ;;  %v2660_v24 = vsub.f32 1.0, %v2659_v13  ;;  %vm6616_vm11 = vcmp.eq.f32.partialorder %v3147_v27, 8.507059e+37  ;;  %v3150_v17 = vor.u32 1.1754944e-38, %v3149_v6  ;;  %5063 = vrcp.f32 %v6596_v56  ;;  %v4449_v13 = vld [vmem:[%s5604_s26 + $0x170] sm:$0xff] }
 0x14f   : > { %v3140_v1 = vsub.f32 1.0, %v3139_v31  ;;  %v6621_v7 = vpop.eup %5059  ;;  %vm2664_vm12 = vweird.f32 %v5056_v54  ;;  %vm1718_vm13 = vweird.f32 %v6578_v33  ;;  %v1722_v51 = vand.u32 2147483647, %v6578_v33  ;;  %990 = vmatmul.bf16.gmra.mxu2 %v4449_v13 }
 0x150   : > { %v2661_v45 = vmul.f32 %v5056_v54, %v2660_v24  ;;  %vm3144_vm14 = vweird.f32 %v5058_v18  ;;  %v1714_v22 = vmul.f32 %v6621_v7, %v6578_v33  ;;  %v1724_v36 = vand.u32 2147483648, %v6578_v33  ;;  %vm2665_vm0 = vmor %vm2663_vm8, %vm2664_vm12 }
 0x151   : > { %v3141_v28 = vmul.f32 %v5058_v18, %v3140_v1  ;;  %vm2198_vm15 = vweird.f32 %v6594_v62  ;;  %5065 = vpow2.f32 %v4374_v58  ;;  %v6630_v53 = vadd.f32 %v6316_v4, %v783_v48  ;;  %vm3145_vm1 = vmor %vm3143_vm10, %vm3144_vm14 }
 0x152   : > { %v2662_v39 = vadd.f32 %v5056_v54, %v2661_v45  ;;  %v6632_v35 = vpop.eup %5061  ;;  %v1715_v44 = vsub.f32 1.0, %v1714_v22  ;;  %v2202_v29 = vand.u32 2147483647, %v6594_v62  ;;  %v6638_v63 = vadd.f32 %v6316_v4, %v863_v26 }
 0x153   : > { %v3142_v38 = vadd.f32 %v5058_v18, %v3141_v28  ;;  %v2194_v37 = vmul.f32 %v6632_v35, %v6594_v62  ;;  %v4279_v46 = vmul.f32 -1.442695, %v6630_v53  ;;  %v6647_v10 = vadd.f32 %v6316_v4, %v943_v25 }
 0x154   : > { %v2666_v23 = vsel %vm2665_vm0, %v5056_v54, %v2662_v39  ;;  %v6649_v49 = vpop.eup %5063  ;;  %v1716_v61 = vmul.f32 %v6621_v7, %v1715_v44  ;;  %vm6654_vm2 = vcmp.eq.f32.partialorder %v1722_v51, 8.507059e+37  ;;  %v4311_v57 = vmul.f32 -1.442695, %v6638_v63  ;;  %v866_v39 = vpop.f32.mrf.mxu1 }
 0x155   : > { %v2671_v50 = vsel %vm6611_vm9, %v2670_v15, %v2666_v23  ;;  %v3146_v55 = vsel %vm3145_vm1, %v5058_v18, %v3142_v38  ;;  %v2195_v8 = vsub.f32 1.0, %v2194_v37  ;;  %v2674_v34 = vmul.f32 %v6649_v49, %v6596_v56  ;;  %v946_v23 = vpop.f32.mrf.mxu2 }
 0x156   : > { %v3584_v0 = vmul.f32 %v2671_v50, %v6434_v14  ;;  %v3151_v2 = vsel %vm6616_vm11, %v3150_v17, %v3146_v55  ;;  %v1717_v40 = vadd.f32 %v6621_v7, %v1716_v61  ;;  %vm1719_vm3 = vweird.f32 %v6621_v7 }
 0x157   : > { %v3616_v59 = vmul.f32 %v3151_v2, %v6440_v5  ;;  %5067 = vpow2.f32 %v4279_v46  ;;  %v5066_v43 = vpop.eup %5065  ;;  %v2196_v52 = vmul.f32 %v6632_v35, %v2195_v8  ;;  %v2675_v12 = vsub.f32 1.0, %v2674_v34  ;;  %vm6677_vm5 = vmor %vm1718_vm13, %vm1719_vm3 }
 0x158   : > { %v4654_v14 = vpack.c.bf16 %v3584_v0, %v6599_v21  ;;  %5069 = vpow2.f32 %v4311_v57  ;;  %vm2199_vm4 = vweird.f32 %v6632_v35  ;;  %v6671_v27 = vadd.f32 1.0, %v5066_v43 }
 0x159   : > { %v4734_v16 = vpack.c.bf16 %v3616_v59, %v6602_v30  ;;  %v4343_v5 = vmul.f32 -1.442695, %v6647_v10  ;;  %v2197_v11 = vadd.f32 %v6632_v35, %v2196_v52  ;;  %v2204_v6 = vand.u32 2147483648, %v6594_v62  ;;  %v786_v30 = vpop.f32.mrf.mxu0  ;;  %vm6697_vm7 = vmor %vm2198_vm15, %vm2199_vm4 }
 0x15a   : > { %4830 = vst [vmem:[%s5897_s4 + $0x118] sm:$0xff] %v4654_v14   ;;  %v2676_v18 = vmul.f32 %v6649_v49, %v2675_v12  ;;  %v6685_v21 = vadd.f32 %v6316_v4, %v1023_v19  ;;  %v1721_v42 = vsel %vm6677_vm5, %v6621_v7, %v1717_v40  ;;  %v1725_v33 = vor.u32 1.1754944e-38, %v1724_v36 }
 0x15b   : > { %4846 = vst [vmem:[%s5897_s4 + $0x198] sm:$0xff] %v4734_v16   ;;  %vm2679_vm6 = vweird.f32 %v6649_v49  ;;  %5071 = vrcp.f32 %v6671_v27  ;;  %vm2678_vm8 = vweird.f32 %v6596_v56  ;;  %v2684_v58 = vand.u32 2147483648, %v6596_v56 }
 0x15c   : > { %v2677_v31 = vadd.f32 %v6649_v49, %v2676_v18  ;;  %5073 = vpow2.f32 %v4343_v5  ;;  %v2201_v60 = vsel %vm6697_vm7, %v6632_v35, %v2197_v11  ;;  %v2682_v15 = vand.u32 2147483647, %v6596_v56  ;;  %vm6716_vm10 = vmor %vm2678_vm8, %vm2679_vm6 }
 0x15d   : > { %v5068_v24 = vpop.eup %5067  ;;  %v4375_v62 = vmul.f32 -1.442695, %v6685_v21  ;;  %v6710_v1 = vadd.f32 %v6316_v4, %v786_v30  ;;  %v1726_v17 = vsel %vm6654_vm2, %v1725_v33, %v1721_v42  ;;  %vm2203_vm9 = vcmp.eq.f32.partialorder %v2202_v29, 8.507059e+37  ;;  %v4417_v42 = vld [vmem:[%s5604_s26 + $0x70] sm:$0xff] }
 0x15e   : > { %v5070_v41 = vpop.eup %5069  ;;  %v2205_v48 = vor.u32 1.1754944e-38, %v2204_v6  ;;  %v6720_v45 = vadd.f32 1.0, %v5068_v24  ;;  %v2681_v56 = vsel %vm6716_vm10, %v6649_v49, %v2677_v31  ;;  %v2685_v22 = vor.u32 1.1754944e-38, %v2684_v58  ;;  %v4433_v33 = vld [vmem:[%s5604_s26 + $0xf0] sm:$0xff]  ;;  %830 = vmatmul.bf16.gmra.mxu0 %v4417_v42  ;;  %v868_v42 = vpop.f32.mrf.mxu1 }
 0x15f   : > { %v6725_v51 = vadd.f32 1.0, %v5070_v41  ;;  %5075 = vpow2.f32 %v4375_v62  ;;  %v4280_v26 = vmul.f32 -1.442695, %v6710_v1  ;;  %v3164_v36 = vand.u32 2147483648, %v6671_v27  ;;  %910 = vmatmul.bf16.gmra.mxu1 %v4433_v33 }
 0x160   : > { %v2206_v28 = vsel %vm2203_vm9, %v2205_v48, %v2201_v60  ;;  %5077 = vrcp.f32 %v6720_v45  ;;  %vm2683_vm11 = vcmp.eq.f32.partialorder %v2682_v15, 8.507059e+37  ;;  %v6734_v38 = vmul.f32 %v1726_v17, %v6488_v20  ;;  %v4465_v15 = vld [vmem:[%s5604_s26 + $0x1f0] sm:$0xff] }
 0x161   : > { %v6730_v25 = vpop.eup %5071  ;;  %5079 = vrcp.f32 %v6725_v51  ;;  %v2686_v44 = vsel %vm2683_vm11, %v2685_v22, %v2681_v56  ;;  %v6739_v37 = vmul.f32 %v2206_v28, %v6495_v9  ;;  %v3162_v46 = vand.u32 2147483647, %v6671_v27  ;;  %1070 = vmatmul.bf16.gmra.mxu3 %v4465_v15 }
 0x162   : > { %v5074_v35 = vpop.eup %5073  ;;  %v3154_v29 = vmul.f32 %v6730_v25, %v6671_v27  ;;  %5081 = vpow2.f32 %v4280_v26  ;;  %vm3158_vm12 = vweird.f32 %v6671_v27  ;;  %v6745_v55 = vor.u32 1.1754944e-38, %v3164_v36 }
 0x163   : > { %v6742_v49 = vadd.f32 1.0, %v5074_v35  ;;  %v1737_v20 = vand.u32 2147483647, %v6720_v45  ;;  %v6749_v61 = vadd.f32 %v6316_v4, %v866_v39  ;;  %v6752_v57 = vmul.f32 %v2686_v44, %v6505_v32 }
 0x164   : > { %v3155_v50 = vsub.f32 1.0, %v3154_v29  ;;  %v1739_v9 = vand.u32 2147483648, %v6720_v45  ;;  %v6757_v0 = vadd.f32 %v6316_v4, %v946_v23  ;;  %vm1733_vm13 = vweird.f32 %v6720_v45 }
 0x165   : > { %v5076_v47 = vpop.eup %5075  ;;  %5083 = vrcp.f32 %v6742_v49  ;;  %v2217_v8 = vand.u32 2147483647, %v6725_v51  ;;  %v4312_v59 = vmul.f32 -1.442695, %v6749_v61  ;;  %vm2213_vm14 = vweird.f32 %v6725_v51 }
 0x166   : > { %v5078_v2 = vpop.eup %5077  ;;  %v6761_v34 = vadd.f32 1.0, %v5076_v47  ;;  %v3156_v32 = vmul.f32 %v6730_v25, %v3155_v50  ;;  %v2219_v43 = vand.u32 2147483648, %v6725_v51  ;;  %vm3159_vm15 = vweird.f32 %v6730_v25  ;;  %v788_v47 = vpop.f32.mrf.mxu0 }
 0x167   : > { %v5080_v40 = vpop.eup %5079  ;;  %v1729_v19 = vmul.f32 %v5078_v2, %v6720_v45  ;;  %vm6769_vm0 = vcmp.eq.f32.partialorder %v1737_v20, 8.507059e+37  ;;  %v1740_v5 = vor.u32 1.1754944e-38, %v1739_v9  ;;  %v2699_v54 = vand.u32 2147483648, %v6742_v49  ;;  %vm6798_vm6 = vmor %vm3158_vm12, %vm3159_vm15  ;;  %v1026_v45 = vpop.f32.mrf.mxu3 }
 0x168   : > { %v2209_v52 = vmul.f32 %v5080_v40, %v6725_v51  ;;  %5085 = vrcp.f32 %v6761_v34  ;;  %v5082_v12 = vpop.eup %5081  ;;  %v4344_v11 = vmul.f32 -1.442695, %v6757_v0  ;;  %vm6777_vm1 = vcmp.eq.f32.partialorder %v2217_v8, 8.507059e+37 }
 0x169   : > { %v1730_v16 = vsub.f32 1.0, %v1729_v19  ;;  %v6781_v30 = vadd.f32 1.0, %v5082_v12  ;;  %5087 = vpow2.f32 %v4312_v59  ;;  %v3157_v58 = vadd.f32 %v6730_v25, %v3156_v32 }
 0x16a   : > { %v2210_v6 = vsub.f32 1.0, %v2209_v52  ;;  %vm1734_vm2 = vweird.f32 %v5078_v2  ;;  %v2220_v60 = vor.u32 1.1754944e-38, %v2219_v43  ;;  %vm6788_vm3 = vcmp.eq.f32.partialorder %v3162_v46, 8.507059e+37 }
 0x16b   : > { %v5084_v31 = vpop.eup %5083  ;;  %v1731_v24 = vmul.f32 %v5078_v2, %v1730_v16  ;;  %vm2214_vm4 = vweird.f32 %v5080_v40  ;;  %vm2693_vm5 = vweird.f32 %v6742_v49  ;;  %v2697_v56 = vand.u32 2147483647, %v6742_v49  ;;  %vm1735_vm7 = vmor %vm1733_vm13, %vm1734_vm2 }
 0x16c   : > { %v2211_v41 = vmul.f32 %v5080_v40, %v2210_v6  ;;  %v2689_v17 = vmul.f32 %v5084_v31, %v6742_v49  ;;  %v2700_v26 = vor.u32 1.1754944e-38, %v2699_v54  ;;  %5089 = vrcp.f32 %v6781_v30  ;;  %vm2215_vm8 = vmor %vm2213_vm14, %vm2214_vm4 }
 0x16d   : > { %v1732_v7 = vadd.f32 %v5078_v2, %v1731_v24  ;;  %v3177_v27 = vand.u32 2147483647, %v6761_v34  ;;  %5091 = vpow2.f32 %v4344_v11  ;;  %v3161_v39 = vsel %vm6798_vm6, %v6730_v25, %v3157_v58 }
 0x16e   : > { %v5086_v28 = vpop.eup %5085  ;;  %v2212_v22 = vadd.f32 %v5080_v40, %v2211_v41  ;;  %v2690_v36 = vsub.f32 1.0, %v2689_v17  ;;  %v3179_v29 = vand.u32 2147483648, %v6761_v34  ;;  %vm2694_vm9 = vweird.f32 %v5084_v31  ;;  %v791_v17 = vpop.f32.mrf.mxu0 }
 0x16f   : > { %v1736_v35 = vsel %vm1735_vm7, %v5078_v2, %v1732_v7  ;;  %v3169_v44 = vmul.f32 %v5086_v28, %v6761_v34  ;;  %v5088_v23 = vpop.eup %5087  ;;  %vm3174_vm10 = vweird.f32 %v5086_v28  ;;  %v6825_v32 = vadd.f32 %v6316_v4, %v1026_v45  ;;  %vm2695_vm11 = vmor %vm2693_vm5, %vm2694_vm9 }
 0x170   : > { %v1741_v46 = vsel %vm6769_vm0, %v1740_v5, %v1736_v35  ;;  %v2216_v50 = vsel %vm2215_vm8, %v5080_v40, %v2212_v22  ;;  %v2691_v20 = vmul.f32 %v5084_v31, %v2690_v36  ;;  %v6821_v2 = vadd.f32 1.0, %v5088_v23 }
 0x171   : > { %v3522_v25 = vmul.f32 %v1741_v46, %v6630_v53  ;;  %v2221_v9 = vsel %vm6777_vm1, %v2220_v60, %v2216_v50  ;;  %v3170_v51 = vsub.f32 1.0, %v3169_v44  ;;  %v6834_v43 = vadd.f32 %v6316_v4, %v788_v47 }
 0x172   : > { %v3554_v8 = vmul.f32 %v2221_v9, %v6638_v63  ;;  %v2692_v59 = vadd.f32 %v5084_v31, %v2691_v20  ;;  %v6827_v40 = vpop.eup %5089  ;;  %5093 = vrcp.f32 %v6821_v2  ;;  %vm2698_vm12 = vcmp.eq.f32.partialorder %v2697_v56, 8.507059e+37 }
 0x173   : > { %v4499_v19 = vpack.c.bf16 %v3522_v25, %v6734_v38  ;;  %v3171_v53 = vmul.f32 %v5086_v28, %v3170_v51  ;;  %v5092_v63 = vpop.eup %5091  ;;  %v1744_v12 = vmul.f32 %v6827_v40, %v6781_v30  ;;  %v3166_v38 = vsel %vm6788_vm3, %v6745_v55, %v3161_v39  ;;  %v871_v25 = vpop.f32.mrf.mxu1 }
 0x174   : > { %v4579_v14 = vpack.c.bf16 %v3554_v8, %v6739_v37  ;;  %v2696_v52 = vsel %vm2695_vm11, %v5084_v31, %v2692_v59  ;;  %vm3173_vm13 = vweird.f32 %v6761_v34  ;;  %v3180_v37 = vor.u32 1.1754944e-38, %v3179_v29 }
 0x175   : > { %4799 = vst [vmem:[%s5897_s4 + $0x20] sm:$0xff] %v4499_v19   ;;  %v2701_v49 = vsel %vm2698_vm12, %v2700_v26, %v2696_v52  ;;  %v3172_v16 = vadd.f32 %v5086_v28, %v3171_v53  ;;  %vm3175_vm14 = vmor %vm3173_vm13, %vm3174_vm10  ;;  %v6847_v54 = vadd.f32 1.0, %v5092_v63  ;;  %v4376_v11 = vmul.f32 -1.442695, %v6825_v32 }
 0x176   : > { %4815 = vst [vmem:[%s5897_s4 + $0xa0] sm:$0xff] %v4579_v14   ;;  %v3586_v5 = vmul.f32 %v2701_v49, %v6647_v10  ;;  %vm3178_vm15 = vcmp.eq.f32.partialorder %v3177_v27, 8.507059e+37  ;;  %v1745_v18 = vsub.f32 1.0, %v1744_v12  ;;  %v4281_v55 = vmul.f32 -1.442695, %v6834_v43  ;;  %v948_v10 = vpop.f32.mrf.mxu2 }
 0x177   : > { %v3176_v6 = vsel %vm3175_vm14, %v5086_v28, %v3172_v16  ;;  %5095 = vrcp.f32 %v6847_v54  ;;  %v3617_v31 = vmul.f32 %v3166_v38, %v6581_v3  ;;  %v1752_v24 = vand.u32 2147483647, %v6781_v30 }
 0x178   : > { %v4659_v33 = vpack.c.bf16 %v3586_v5, %v6752_v57  ;;  %v3181_v34 = vsel %vm3178_vm15, %v3180_v37, %v3176_v6  ;;  %v6853_v13 = vpop.eup %5093  ;;  %v1754_v60 = vand.u32 2147483648, %v6781_v30  ;;  %5097 = vpow2.f32 %v4376_v11  ;;  %v1028_v57 = vpop.f32.mrf.mxu3 }
 0x179   : > { %v3618_v58 = vmul.f32 %v3181_v34, %v6685_v21  ;;  %v2224_v15 = vmul.f32 %v6853_v13, %v6821_v2  ;;  %v1746_v41 = vmul.f32 %v6827_v40, %v1745_v18  ;;  %5099 = vpow2.f32 %v4281_v55 }
 0x17a   : > { %4831 = vst [vmem:[%s5897_s4 + $0x120] sm:$0xff] %v4659_v33   ;;  %vm1748_vm0 = vweird.f32 %v6781_v30  ;;  %v6865_v21 = vadd.f32 %v6316_v4, %v868_v42  ;;  %v6868_v48 = vadd.f32 %v6316_v4, %v948_v10  ;;  %vm6871_vm1 = vcmp.eq.f32.partialorder %v1752_v24, 8.507059e+37 }
 0x17b   : > { %v4739_v62 = vpack.c.bf16 %v3618_v58, %v3617_v31  ;;  %v2225_v3 = vsub.f32 1.0, %v2224_v15  ;;  %v1755_v56 = vor.u32 1.1754944e-38, %v1754_v60  ;;  %vm2228_vm2 = vweird.f32 %v6821_v2 }
 0x17c   : > { %v6877_v26 = vadd.f32 %v6316_v4, %v1028_v57  ;;  %v4313_v36 = vmul.f32 -1.442695, %v6865_v21  ;;  %v4345_v27 = vmul.f32 -1.442695, %v6868_v48  ;;  %v6885_v39 = vadd.f32 %v6316_v4, %v791_v17 }
 0x17d   : > { %4847 = vst [vmem:[%s5897_s4 + $0x1a0] sm:$0xff] %v4739_v62   ;;  %v6879_v28 = vpop.eup %5095  ;;  %v2226_v22 = vmul.f32 %v6853_v13, %v2225_v3  ;;  %v1747_v35 = vadd.f32 %v6827_v40, %v1746_v41  ;;  %vm1749_vm3 = vweird.f32 %v6827_v40  ;;  %vm2229_vm4 = vweird.f32 %v6853_v13 }
 0x17e   : > { %v2704_v44 = vmul.f32 %v6879_v28, %v6847_v54  ;;  %v4377_v29 = vmul.f32 -1.442695, %v6877_v26  ;;  %v5098_v45 = vpop.eup %5097  ;;  %v2232_v46 = vand.u32 2147483647, %v6821_v2  ;;  %5101 = vpow2.f32 %v4313_v36  ;;  %vm6900_vm5 = vmor %vm1748_vm0, %vm1749_vm3  ;;  %v951_v19 = vpop.f32.mrf.mxu2 }
 0x17f   : > { %v2227_v23 = vadd.f32 %v6853_v13, %v2226_v22  ;;  %v5100_v50 = vpop.eup %5099  ;;  %v2234_v4 = vand.u32 2147483648, %v6821_v2  ;;  %v6896_v47 = vadd.f32 1.0, %v5098_v45  ;;  %5103 = vpow2.f32 %v4345_v27  ;;  %vm6915_vm6 = vmor %vm2228_vm2, %vm2229_vm4  ;;  %v6930_v2 = vld [vmem:[%s9255_s2] ss:$0 sm:$0xff] }
 0x180   : > { %v2705_v20 = vsub.f32 1.0, %v2704_v44  ;;  %v2712_v51 = vand.u32 2147483647, %v6847_v54  ;;  %v6905_v8 = vadd.f32 1.0, %v5100_v50  ;;  %5105 = vpow2.f32 %v4377_v29  ;;  %v1031_v16 = vpop.f32.mrf.mxu3  ;;  %v4450_v50 = vld [vmem:[%s5604_s26 + $0x178] sm:$0xff] }
 0x181   : > { %v4282_v59 = vmul.f32 -1.442695, %v6885_v39  ;;  %v1751_v53 = vsel %vm6900_vm5, %v6827_v40, %v1747_v35  ;;  %v2714_v14 = vand.u32 2147483648, %v6847_v54  ;;  %5107 = vrcp.f32 %v6896_v47  ;;  %995 = vmatmul.bf16.gmra.mxu2 %v4450_v50 }
 0x182   : > { %v2706_v63 = vmul.f32 %v6879_v28, %v2705_v20  ;;  %v2231_v52 = vsel %vm6915_vm6, %v6853_v13, %v2227_v23  ;;  %vm2709_vm7 = vweird.f32 %v6879_v28  ;;  %5109 = vrcp.f32 %v6905_v8  ;;  %v4418_v23 = vld [vmem:[%s5604_s26 + $0x78] sm:$0xff] }
 0x183   : > { %v6933_v40 = vadd.f32 %v6930_v2, %v871_v25  ;;  %vm2233_vm8 = vcmp.eq.f32.partialorder %v2232_v46, 8.507059e+37  ;;  %v2235_v12 = vor.u32 1.1754944e-38, %v2234_v4  ;;  %v6937_v49 = vadd.f32 %v6930_v2, %v951_v19  ;;  %v4434_v46 = vld [vmem:[%s5604_s26 + $0xf8] sm:$0xff]  ;;  %835 = vmatmul.bf16.gmra.mxu0 %v4418_v23 }
 0x184   : > { %v2707_v38 = vadd.f32 %v6879_v28, %v2706_v63  ;;  %v5102_v5 = vpop.eup %5101  ;;  %v1756_v37 = vsel %vm6871_vm1, %v1755_v56, %v1751_v53  ;;  %vm2708_vm9 = vweird.f32 %v6847_v54  ;;  %vm6942_vm10 = vcmp.eq.f32.partialorder %v2712_v51, 8.507059e+37  ;;  %v4466_v51 = vld [vmem:[%s5604_s26 + $0x1f8] sm:$0xff]  ;;  %915 = vmatmul.bf16.gmra.mxu1 %v4434_v46  ;;  %s3909_s26 = scalar_lea.hbm %s9256_s3, %s4475_s24 }
 0x185   : > { %5111 = vpow2.f32 %v4282_v59  ;;  %v5104_v6 = vpop.eup %5103  ;;  %v2236_v18 = vsel %vm2233_vm8, %v2235_v12, %v2231_v52  ;;  %vm6948_vm11 = vmor %vm2708_vm9, %vm2709_vm7  ;;  %v2715_v42 = vor.u32 1.1754944e-38, %v2714_v14  ;;  %v3194_v33 = vand.u32 2147483648, %v6896_v47  ;;  %1075 = vmatmul.bf16.gmra.mxu3 %v4466_v51  ;;  %s3912_s28 = sshll.u32 %s3909_s26, 4  ;;  %s3913_s28 = int_to_ptr.hbm [resolvable:$true] %s3912_s28 }
 0x186   : > { %v6953_v34 = vadd.f32 1.0, %v5102_v5  ;;  %v5106_v10 = vpop.eup %5105  ;;  %v2711_v54 = vsel %vm6948_vm11, %v6879_v28, %v2707_v38  ;;  %v6958_v13 = vadd.f32 1.0, %v5104_v6  ;;  %v4314_v31 = vmul.f32 -1.442695, %v6933_v40  ;;  %v793_v28 = vpop.f32.mrf.mxu0  ;;  %s5456_s5 = sshra.s32 %s3913_s28, 4  ;;  %s5457_s5 = int_to_ptr.hbm [resolvable:$true] %s5456_s5 }
 0x187   : > { %v6962_v58 = vadd.f32 %v6930_v2, %v1031_v16  ;;  %v6964_v24 = vpop.eup %5107  ;;  %v6967_v60 = vmul.f32 %v1756_v37, %v6710_v1  ;;  %v1767_v15 = vand.u32 2147483647, %v6905_v8  ;;  %v4346_v57 = vmul.f32 -1.442695, %v6937_v49  ;;  %s5458_s6 = scalar_lea.hbm %s5457_s5, 512  ;;  %p5463_p0 = scmp.lt.s32.totalorder %s5457_s5, %s9256_s3 }
 0x188   : > { %5113 = vrcp.f32 %v6953_v34  ;;  %v5110_v62 = vpop.eup %5109  ;;  %v6973_v41 = vmul.f32 %v2236_v18, %v6749_v61  ;;  %v3184_v17 = vmul.f32 %v6964_v24, %v6896_v47  ;;  %v1769_v3 = vand.u32 2147483648, %v6905_v8  ;;  %p5459_p11 = scmp.ne.s32.totalorder %s5457_s5, %s5458_s6  ;;  %p5464_p1 = scmp.lt.s32.totalorder %s5462_s9, %s5458_s6 }
 0x189   : > { %5115 = vrcp.f32 %v6958_v13  ;;  %v2716_v1 = vsel %vm6942_vm10, %v2715_v42, %v2711_v54  ;;  %v3192_v7 = vand.u32 2147483647, %v6896_v47  ;;  %v6982_v56 = vor.u32 1.1754944e-38, %v3194_v33 }
 0x18a   : > { %v1759_v61 = vmul.f32 %v5110_v62, %v6905_v8  ;;  %v3185_v36 = vsub.f32 1.0, %v3184_v17  ;;  %v2247_v27 = vand.u32 2147483647, %v6953_v34  ;;  %5117 = vpow2.f32 %v4314_v31  ;;  %p5460_p12 = pnand %p5459_p11, %p5566_p5  ;;  %p5465_p2 = por %p5464_p1, %p5463_p0 }
 0x18b   : > { %v5112_v22 = vpop.eup %5111  ;;  %v4378_v35 = vmul.f32 -1.442695, %v6962_v58  ;;  %vm3188_vm12 = vweird.f32 %v6896_v47  ;;  %vm1763_vm13 = vweird.f32 %v6905_v8  ;;  %vm6989_vm14 = vcmp.eq.f32.partialorder %v1767_v15, 8.507059e+37 }
 0x18c   : > { %v1760_v44 = vsub.f32 1.0, %v1759_v61  ;;  %v6993_v45 = vadd.f32 1.0, %v5106_v10  ;;  %v6999_v4 = vmul.f32 %v2716_v1, %v6757_v0  ;;  %v1770_v20 = vor.u32 1.1754944e-38, %v1769_v3  ;;  %p5461_p13 = pneg %p5460_p12 }
 0x18d   : > { %v7001_v25 = vadd.f32 1.0, %v5112_v22  ;;  %v7004_v9 = vadd.f32 %v6930_v2, %v793_v28  ;;  %vm1764_vm15 = vweird.f32 %v5110_v62  ;;  %vm2243_vm0 = vweird.f32 %v6953_v34 }
 0x18e   : > { %v5114_v59 = vpop.eup %5113  ;;  %v1761_v19 = vmul.f32 %v5110_v62, %v1760_v44  ;;  %5119 = vrcp.f32 %v6993_v45  ;;  %v3186_v0 = vmul.f32 %v6964_v24, %v3185_v36  ;;  %vm3189_vm1 = vweird.f32 %v6964_v24  ;;  %vm1765_vm4 = vmor %vm1763_vm13, %vm1764_vm15  ;;  %p5466_p3 = pnand %p5465_p2, %p5461_p13 }
 0x18f   : > { %v5116_v53 = vpop.eup %5115  ;;  %v2239_v30 = vmul.f32 %v5114_v59, %v6953_v34  ;;  %v2249_v63 = vand.u32 2147483648, %v6953_v34  ;;  %vm7013_vm2 = vcmp.eq.f32.partialorder %v2247_v27, 8.507059e+37  ;;  %5121 = vpow2.f32 %v4346_v57  ;;  %vm7039_vm8 = vmor %vm3188_vm12, %vm3189_vm1 }
 0x190   : > { %v1762_v14 = vadd.f32 %v5110_v62, %v1761_v19  ;;  %v2719_v12 = vmul.f32 %v5116_v53, %v6958_v13  ;;  %v5118_v38 = vpop.eup %5117  ;;  %vm7018_vm3 = vcmp.eq.f32.partialorder %v3192_v7, 8.507059e+37  ;;  %vm2723_vm5 = vweird.f32 %v6958_v13 }
 0x191   : > { %v2240_v5 = vsub.f32 1.0, %v2239_v30  ;;  %v2727_v37 = vand.u32 2147483647, %v6958_v13  ;;  %5123 = vrcp.f32 %v7001_v25  ;;  %v2729_v18 = vand.u32 2147483648, %v6958_v13 }
 0x192   : > { %v1766_v11 = vsel %vm1765_vm4, %v5110_v62, %v1762_v14  ;;  %v2720_v6 = vsub.f32 1.0, %v2719_v12  ;;  %5125 = vpow2.f32 %v4378_v35  ;;  %v3187_v55 = vadd.f32 %v6964_v24, %v3186_v0 }
 0x193   : > { %v1771_v42 = vsel %vm6989_vm14, %v1770_v20, %v1766_v11  ;;  %v2241_v33 = vmul.f32 %v5114_v59, %v2240_v5  ;;  %vm2244_vm6 = vweird.f32 %v5114_v59  ;;  %vm2724_vm7 = vweird.f32 %v5116_v53  ;;  %v1033_v11 = vpop.f32.mrf.mxu3 }
 0x194   : > { %v5120_v8 = vpop.eup %5119  ;;  %v3524_v10 = vmul.f32 %v1771_v42, %v6834_v43  ;;  %v2721_v54 = vmul.f32 %v5116_v53, %v2720_v6  ;;  %v7033_v31 = vadd.f32 1.0, %v5118_v38  ;;  %v2250_v62 = vor.u32 1.1754944e-38, %v2249_v63  ;;  %vm2245_vm10 = vmor %vm2243_vm0, %vm2244_vm6  ;;  %v953_v38 = vpop.f32.mrf.mxu2 }
 0x195   : > { %v2242_v57 = vadd.f32 %v5114_v59, %v2241_v33  ;;  %vm7043_vm9 = vcmp.eq.f32.partialorder %v2727_v37, 8.507059e+37  ;;  %v3199_v43 = vmul.f32 %v5120_v8, %v6993_v45  ;;  %v5122_v3 = vpop.eup %5121  ;;  %v2730_v7 = vor.u32 1.1754944e-38, %v2729_v18  ;;  %vm2725_vm11 = vmor %vm2723_vm5, %vm2724_vm7  ;;  %v796_v42 = vpop.f32.mrf.mxu0 }
 0x196   : > { %v4504_v1 = vpack.c.bf16 %v3524_v10, %v6967_v60  ;;  %v2722_v47 = vadd.f32 %v5116_v53, %v2721_v54  ;;  %5127 = vrcp.f32 %v7033_v31  ;;  %v3191_v28 = vsel %vm7039_vm8, %v6964_v24, %v3187_v55  ;;  %v873_v24 = vpop.f32.mrf.mxu1 }
 0x197   : > { %v7052_v61 = vpop.eup %5123  ;;  %v2246_v22 = vsel %vm2245_vm10, %v5114_v59, %v2242_v57  ;;  %v3200_v36 = vsub.f32 1.0, %v3199_v43  ;;  %v3207_v60 = vand.u32 2147483647, %v6993_v45  ;;  %v3209_v44 = vand.u32 2147483648, %v6993_v45 }
 0x198   : > { %v5126_v34 = vpop.eup %5125  ;;  %4800 = vst [vmem:[%s5897_s4 + $0x28] sm:$0xff] %v4504_v1   ;;  %v2251_v27 = vsel %vm7013_vm2, %v2250_v62, %v2246_v22  ;;  %v2726_v35 = vsel %vm2725_vm11, %v5116_v53, %v2722_v47  ;;  %v1774_v29 = vmul.f32 %v7052_v61, %v7001_v25  ;;  %vm3204_vm12 = vweird.f32 %v5120_v8 }
 0x199   : > { %v3556_v23 = vmul.f32 %v2251_v27, %v6865_v21  ;;  %v2731_v13 = vsel %vm7043_vm9, %v2730_v7, %v2726_v35  ;;  %v3201_v46 = vmul.f32 %v5120_v8, %v3200_v36  ;;  %v3196_v50 = vsel %vm7018_vm3, %v6982_v56, %v3191_v28 }
 0x19a   : > { %v3588_v20 = vmul.f32 %v2731_v13, %v6868_v48  ;;  %vm3203_vm13 = vweird.f32 %v6993_v45  ;;  %v7075_v51 = vadd.f32 1.0, %v5122_v3  ;;  %v1775_v19 = vsub.f32 1.0, %v1774_v29 }
 0x19b   : > { %v4584_v59 = vpack.c.bf16 %v3556_v23, %v6973_v41  ;;  %v3202_v21 = vadd.f32 %v5120_v8, %v3201_v46  ;;  %v7078_v53 = vadd.f32 1.0, %v5126_v34  ;;  %vm3205_vm14 = vmor %vm3203_vm13, %vm3204_vm12  ;;  %vm3208_vm15 = vcmp.eq.f32.partialorder %v3207_v60, 8.507059e+37 }
 0x19c   : > { %v7080_v0 = vpop.eup %5127  ;;  %v4664_v30 = vpack.c.bf16 %v3588_v20, %v6999_v4  ;;  %v3210_v56 = vor.u32 1.1754944e-38, %v3209_v44  ;;  %5129 = vrcp.f32 %v7075_v51  ;;  %v1782_v45 = vand.u32 2147483647, %v7001_v25  ;;  %v956_v46 = vpop.f32.mrf.mxu2 }
 0x19d   : > { %4816 = vst [vmem:[%s5897_s4 + $0xa8] sm:$0xff] %v4584_v59   ;;  %v3206_v48 = vsel %vm3205_vm14, %v5120_v8, %v3202_v21  ;;  %v1784_v41 = vand.u32 2147483648, %v7001_v25  ;;  %v2254_v63 = vmul.f32 %v7080_v0, %v7033_v31  ;;  %v3619_v14 = vmul.f32 %v3196_v50, %v6825_v32 }
 0x19e   : > { %4832 = vst [vmem:[%s5897_s4 + $0x128] sm:$0xff] %v4664_v30   ;;  %v3211_v52 = vsel %vm3208_vm15, %v3210_v56, %v3206_v48  ;;  %v2262_v4 = vand.u32 2147483647, %v7033_v31  ;;  %v4283_v12 = vmul.f32 -1.442695, %v7004_v9  ;;  %v1776_v5 = vmul.f32 %v7052_v61, %v1775_v19  ;;  %v876_v10 = vpop.f32.mrf.mxu1 }
 0x19f   : > { %v3620_v16 = vmul.f32 %v3211_v52, %v6877_v26  ;;  %v2255_v37 = vsub.f32 1.0, %v2254_v63  ;;  %5131 = vrcp.f32 %v7078_v53  ;;  %vm1778_vm0 = vweird.f32 %v7001_v25  ;;  %v798_v63 = vpop.f32.mrf.mxu0 }
 0x1a0   : > { %v1785_v32 = vor.u32 1.1754944e-38, %v1784_v41  ;;  %v2264_v55 = vand.u32 2147483648, %v7033_v31  ;;  %vm1779_vm1 = vweird.f32 %v7052_v61  ;;  %vm7102_vm2 = vcmp.eq.f32.partialorder %v1782_v45, 8.507059e+37 }
 0x1a1   : > { %v4744_v6 = vpack.c.bf16 %v3620_v16, %v3619_v14  ;;  %v2256_v18 = vmul.f32 %v7080_v0, %v2255_v37  ;;  %vm2258_vm3 = vweird.f32 %v7033_v31  ;;  %5133 = vpow2.f32 %v4283_v12  ;;  %vm7140_vm7 = vmor %vm1778_vm0, %vm1779_vm1 }
 0x1a2   : > { %v7099_v33 = vpop.eup %5129  ;;  %v7108_v8 = vadd.f32 %v6930_v2, %v873_v24  ;;  %v1777_v54 = vadd.f32 %v7052_v61, %v1776_v5  ;;  %vm2259_vm4 = vweird.f32 %v7080_v0  ;;  %vm7114_vm5 = vcmp.eq.f32.partialorder %v2262_v4, 8.507059e+37 }
 0x1a3   : > { %4848 = vst [vmem:[%s5897_s4 + $0x1a8] sm:$0xff] %v4744_v6   ;;  %v2257_v15 = vadd.f32 %v7080_v0, %v2256_v18  ;;  %v2734_v62 = vmul.f32 %v7099_v33, %v7075_v51  ;;  %v7122_v43 = vadd.f32 %v6930_v2, %v953_v38  ;;  %v7125_v3 = vadd.f32 %v6930_v2, %v1033_v11  ;;  %vm7155_vm8 = vmor %vm2258_vm3, %vm2259_vm4 }
 0x1a4   : > { %v4315_v17 = vmul.f32 -1.442695, %v7108_v8  ;;  %v7128_v1 = vadd.f32 %v6930_v2, %v796_v42  ;;  %v2265_v7 = vor.u32 1.1754944e-38, %v2264_v55  ;;  %vm2738_vm6 = vweird.f32 %v7075_v51 }
 0x1a5   : > { %v7130_v47 = vpop.eup %5131  ;;  %v2735_v28 = vsub.f32 1.0, %v2734_v62  ;;  %v7134_v22 = vadd.f32 %v6930_v2, %v876_v10  ;;  %v2742_v60 = vand.u32 2147483647, %v7075_v51  ;;  %v2744_v34 = vand.u32 2147483648, %v7075_v51 }
 0x1a6   : > { %v3214_v27 = vmul.f32 %v7130_v47, %v7078_v53  ;;  %5135 = vpow2.f32 %v4315_v17  ;;  %v1781_v35 = vsel %vm7140_vm7, %v7052_v61, %v1777_v54  ;;  %vm3218_vm9 = vweird.f32 %v7078_v53 }
 0x1a7   : > { %v2736_v44 = vmul.f32 %v7099_v33, %v2735_v28  ;;  %v4347_v29 = vmul.f32 -1.442695, %v7122_v43  ;;  %v4379_v24 = vmul.f32 -1.442695, %v7125_v3  ;;  %v5134_v23 = vpop.eup %5133  ;;  %v2261_v61 = vsel %vm7155_vm8, %v7080_v0, %v2257_v15  ;;  %v1036_v0 = vpop.f32.mrf.mxu3 }
 0x1a8   : > { %vm2739_vm10 = vweird.f32 %v7099_v33  ;;  %v3215_v31 = vsub.f32 1.0, %v3214_v27  ;;  %v4284_v13 = vmul.f32 -1.442695, %v7128_v1  ;;  %v7169_v20 = vadd.f32 1.0, %v5134_v23 }
 0x1a9   : > { %v2737_v50 = vadd.f32 %v7099_v33, %v2736_v44  ;;  %5137 = vpow2.f32 %v4347_v29  ;;  %v4316_v59 = vmul.f32 -1.442695, %v7134_v22  ;;  %v2745_v21 = vor.u32 1.1754944e-38, %v2744_v34  ;;  %vm7178_vm11 = vmor %vm2738_vm6, %vm2739_vm10 }
 0x1aa   : > { %v3216_v19 = vmul.f32 %v7130_v47, %v3215_v31  ;;  %v3222_v30 = vand.u32 2147483647, %v7078_v53  ;;  %5139 = vpow2.f32 %v4379_v24  ;;  %v1786_v56 = vsel %vm7102_vm2, %v1785_v32, %v1781_v35 }
 0x1ab   : > { %v3224_v45 = vand.u32 2147483648, %v7078_v53  ;;  %5141 = vrcp.f32 %v7169_v20  ;;  %v7185_v41 = vadd.f32 %v6930_v2, %v956_v46  ;;  %v2266_v52 = vsel %vm7114_vm5, %v2265_v7, %v2261_v61 }
 0x1ac   : > { %v5136_v14 = vpop.eup %5135  ;;  %v2741_v51 = vsel %vm7178_vm11, %v7099_v33, %v2737_v50  ;;  %vm3219_vm12 = vweird.f32 %v7130_v47  ;;  %5143 = vpow2.f32 %v4284_v13  ;;  %v3217_v4 = vadd.f32 %v7130_v47, %v3216_v19 }
 0x1ad   : > { %v7194_v12 = vadd.f32 1.0, %v5136_v14  ;;  %5145 = vpow2.f32 %v4316_v59  ;;  %v7197_v38 = vadd.f32 %v6930_v2, %v1036_v0  ;;  %v7200_v16 = vmul.f32 %v1786_v56, %v6885_v39  ;;  %vm7218_vm15 = vmor %vm3218_vm9, %vm3219_vm12 }
 0x1ae   : > { %vm2743_vm13 = vcmp.eq.f32.partialorder %v2742_v60, 8.507059e+37  ;;  %vm7202_vm14 = vcmp.eq.f32.partialorder %v3222_v30, 8.507059e+37  ;;  %v7207_v37 = vadd.f32 %v6930_v2, %v798_v63  ;;  %v3225_v32 = vor.u32 1.1754944e-38, %v3224_v45 }
 0x1af   : > { %v5138_v11 = vpop.eup %5137  ;;  %v2746_v6 = vsel %vm2743_vm13, %v2745_v21, %v2741_v51  ;;  %v1797_v18 = vand.u32 2147483647, %v7169_v20  ;;  %5147 = vrcp.f32 %v7194_v12  ;;  %v7212_v42 = vmul.f32 %v2266_v52, %v6933_v40 }
 0x1b0   : > { %v5140_v55 = vpop.eup %5139  ;;  %v1799_v33 = vand.u32 2147483648, %v7169_v20  ;;  %v7223_v26 = vadd.f32 1.0, %v5138_v11  ;;  %v4348_v10 = vmul.f32 -1.442695, %v7185_v41  ;;  %v3221_v40 = vsel %vm7218_vm15, %v7130_v47, %v3217_v4 }
 0x1b1   : > { %v5142_v54 = vpop.eup %5141  ;;  %vm1793_vm0 = vweird.f32 %v7169_v20  ;;  %v7230_v15 = vadd.f32 1.0, %v5140_v55  ;;  %v4380_v53 = vmul.f32 -1.442695, %v7197_v38  ;;  %v7234_v62 = vmul.f32 %v2746_v6, %v6937_v49 }
 0x1b2   : > { %v5144_v57 = vpop.eup %5143  ;;  %v1789_v17 = vmul.f32 %v5142_v54, %v7169_v20  ;;  %5149 = vrcp.f32 %v7223_v26  ;;  %v4285_v7 = vmul.f32 -1.442695, %v7207_v37  ;;  %vm7239_vm1 = vcmp.eq.f32.partialorder %v1797_v18, 8.507059e+37 }
 0x1b3   : > { %v5146_v28 = vpop.eup %5145  ;;  %v2277_v47 = vand.u32 2147483647, %v7194_v12  ;;  %v2279_v60 = vand.u32 2147483648, %v7194_v12  ;;  %5151 = vrcp.f32 %v7230_v15  ;;  %v7248_v49 = vsel %vm7202_vm14, %v3225_v32, %v3221_v40 }
 0x1b4   : > { %v1790_v34 = vsub.f32 1.0, %v1789_v17  ;;  %v1800_v27 = vor.u32 1.1754944e-38, %v1799_v33  ;;  %5153 = vpow2.f32 %v4348_v10  ;;  %vm2273_vm2 = vweird.f32 %v7194_v12 }
 0x1b5   : > { %v5148_v35 = vpop.eup %5147  ;;  %v7251_v25 = vadd.f32 1.0, %v5144_v57  ;;  %v7253_v44 = vadd.f32 1.0, %v5146_v28  ;;  %5155 = vpow2.f32 %v4380_v53  ;;  %vm1794_vm3 = vweird.f32 %v5142_v54 }
 0x1b6   : > { %v1791_v29 = vmul.f32 %v5142_v54, %v1790_v34  ;;  %v2269_v24 = vmul.f32 %v5148_v35, %v7194_v12  ;;  %5157 = vpow2.f32 %v4285_v7  ;;  %vm7256_vm4 = vcmp.eq.f32.partialorder %v2277_v47, 8.507059e+37  ;;  %vm1795_vm5 = vmor %vm1793_vm0, %vm1794_vm3 }
 0x1b7   : > { %v2280_v61 = vor.u32 1.1754944e-38, %v2279_v60  ;;  %v2757_v31 = vand.u32 2147483647, %v7223_v26  ;;  %5159 = vrcp.f32 %v7251_v25  ;;  %v2759_v59 = vand.u32 2147483648, %v7223_v26 }
 0x1b8   : > { %v5150_v13 = vpop.eup %5149  ;;  %v1792_v46 = vadd.f32 %v5142_v54, %v1791_v29  ;;  %v2270_v50 = vsub.f32 1.0, %v2269_v24  ;;  %5161 = vrcp.f32 %v7253_v44  ;;  %vm2753_vm6 = vweird.f32 %v7223_v26  ;;  %v958_v24 = vpop.f32.mrf.mxu2 }
 0x1b9   : > { %v5152_v21 = vpop.eup %5151  ;;  %v2749_v19 = vmul.f32 %v5150_v13, %v7223_v26  ;;  %vm3233_vm7 = vweird.f32 %v7230_v15  ;;  %v3237_v30 = vand.u32 2147483647, %v7230_v15  ;;  %vm2274_vm8 = vweird.f32 %v5148_v35 }
 0x1ba   : > { %v5154_v0 = vpop.eup %5153  ;;  %v1796_v56 = vsel %vm1795_vm5, %v5142_v54, %v1792_v46  ;;  %v2271_v48 = vmul.f32 %v5148_v35, %v2270_v50  ;;  %v3229_v45 = vmul.f32 %v5152_v21, %v7230_v15  ;;  %vm7273_vm9 = vcmp.eq.f32.partialorder %v2757_v31, 8.507059e+37  ;;  %vm2275_vm10 = vmor %vm2273_vm2, %vm2274_vm8 }
 0x1bb   : > { %v5156_v63 = vpop.eup %5155  ;;  %v1801_v14 = vsel %vm7239_vm1, %v1800_v27, %v1796_v56  ;;  %v2750_v20 = vsub.f32 1.0, %v2749_v19  ;;  %v3239_v51 = vand.u32 2147483648, %v7230_v15  ;;  %v2760_v6 = vor.u32 1.1754944e-38, %v2759_v59  ;;  %v878_v27 = vpop.f32.mrf.mxu1 }
 0x1bc   : > { %v7278_v4 = vpop.eup %5157  ;;  %v3526_v5 = vmul.f32 %v1801_v14, %v7004_v9  ;;  %v2272_v11 = vadd.f32 %v5148_v35, %v2271_v48  ;;  %v3230_v32 = vsub.f32 1.0, %v3229_v45  ;;  %vm2754_vm11 = vweird.f32 %v5150_v13  ;;  %v1038_v19 = vpop.f32.mrf.mxu3 }
 0x1bd   : > { %v7281_v18 = vpop.eup %5159  ;;  %v2751_v55 = vmul.f32 %v5150_v13, %v2750_v20  ;;  %vm3234_vm12 = vweird.f32 %v5152_v21  ;;  %v7285_v39 = vadd.f32 1.0, %v5154_v0  ;;  %vm7294_vm13 = vcmp.eq.f32.partialorder %v3237_v30, 8.507059e+37  ;;  %vm2755_vm14 = vmor %vm2753_vm6, %vm2754_vm11 }
 0x1be   : > { %v7287_v33 = vpop.eup %5161  ;;  %v4509_v10 = vpack.c.bf16 %v3526_v5, %v7200_v16  ;;  %v2276_v54 = vsel %vm2275_vm10, %v5148_v35, %v2272_v11  ;;  %v3231_v9 = vmul.f32 %v5152_v21, %v3230_v32  ;;  %v1804_v40 = vmul.f32 %v7281_v18, %v7251_v25  ;;  %vm3235_vm15 = vmor %vm3233_vm7, %vm3234_vm12 }
 0x1bf   : > { %v2281_v53 = vsel %vm7256_vm4, %v2280_v61, %v2276_v54  ;;  %v2752_v57 = vadd.f32 %v5150_v13, %v2751_v55  ;;  %v2284_v17 = vmul.f32 %v7287_v33, %v7253_v44  ;;  %v3240_v28 = vor.u32 1.1754944e-38, %v3239_v51 }
 0x1c0   : > { %4801 = vst [vmem:[%s5897_s4 + $0x30] sm:$0xff] %v4509_v10   ;;  %v3558_v7 = vmul.f32 %v2281_v53, %v7108_v8  ;;  %v3232_v16 = vadd.f32 %v5152_v21, %v3231_v9  ;;  %v1805_v36 = vsub.f32 1.0, %v1804_v40  ;;  %5163 = vrcp.f32 %v7285_v39  ;;  %v961_v54 = vpop.f32.mrf.mxu2 }
 0x1c1   : > { %v2756_v47 = vsel %vm2755_vm14, %v5150_v13, %v2752_v57  ;;  %v2285_v60 = vsub.f32 1.0, %v2284_v17  ;;  %v7308_v34 = vadd.f32 1.0, %v5156_v63  ;;  %v3621_v23 = vmul.f32 %v7248_v49, %v6962_v58 }
 0x1c2   : > { %v4589_v8 = vpack.c.bf16 %v3558_v7, %v7212_v42  ;;  %v2761_v26 = vsel %vm7273_vm9, %v2760_v6, %v2756_v47  ;;  %v3236_v35 = vsel %vm3235_vm15, %v5152_v21, %v3232_v16  ;;  %v1806_v29 = vmul.f32 %v7281_v18, %v1805_v36  ;;  %v801_v6 = vpop.f32.mrf.mxu0 }
 0x1c3   : > { %v3590_v15 = vmul.f32 %v2761_v26, %v7122_v43  ;;  %v3241_v61 = vsel %vm7294_vm13, %v3240_v28, %v3236_v35  ;;  %vm1808_vm0 = vweird.f32 %v7251_v25  ;;  %v1812_v31 = vand.u32 2147483647, %v7251_v25  ;;  %v881_v32 = vpop.f32.mrf.mxu1 }
 0x1c4   : > { %4817 = vst [vmem:[%s5897_s4 + $0xb0] sm:$0xff] %v4589_v8   ;;  %v3622_v42 = vmul.f32 %v3241_v61, %v7125_v3  ;;  %v1814_v13 = vand.u32 2147483648, %v7251_v25  ;;  %v2286_v46 = vmul.f32 %v7287_v33, %v2285_v60  ;;  %v1807_v49 = vadd.f32 %v7281_v18, %v1806_v29 }
 0x1c5   : > { %v4669_v58 = vpack.c.bf16 %v3590_v15, %v7234_v62  ;;  %vm1809_vm1 = vweird.f32 %v7281_v18  ;;  %5165 = vrcp.f32 %v7308_v34  ;;  %v7330_v50 = vadd.f32 %v6930_v2, %v878_v27 }
 0x1c6   : > { %v4749_v43 = vpack.c.bf16 %v3622_v42, %v3621_v23  ;;  %v7332_v59 = vpop.eup %5163  ;;  %v2292_v3 = vand.u32 2147483647, %v7253_v44  ;;  %v2294_v21 = vand.u32 2147483648, %v7253_v44  ;;  %vm7340_vm2 = vmor %vm1808_vm0, %vm1809_vm1  ;;  %v2287_v30 = vadd.f32 %v7287_v33, %v2286_v46  ;;  %v1041_v42 = vpop.f32.mrf.mxu3 }
 0x1c7   : > { %4833 = vst [vmem:[%s5897_s4 + $0x130] sm:$0xff] %v4669_v58   ;;  %vm2288_vm3 = vweird.f32 %v7253_v44  ;;  %vm2289_vm4 = vweird.f32 %v7287_v33  ;;  %v2764_v0 = vmul.f32 %v7332_v59, %v7285_v39  ;;  %v1811_v56 = vsel %vm7340_vm2, %v7281_v18, %v1807_v49 }
 0x1c8   : > { %4849 = vst [vmem:[%s5897_s4 + $0x1b0] sm:$0xff] %v4749_v43   ;;  %vm7352_vm5 = vcmp.eq.f32.partialorder %v1812_v31, 8.507059e+37  ;;  %v1815_v25 = vor.u32 1.1754944e-38, %v1814_v13  ;;  %v7357_v45 = vadd.f32 1.0, %v7278_v4  ;;  %v4317_v44 = vmul.f32 -1.442695, %v7330_v50  ;;  %vm7368_vm6 = vmor %vm2288_vm3, %vm2289_vm4 }
 0x1c9   : > { %v2765_v63 = vsub.f32 1.0, %v2764_v0  ;;  %v7361_v14 = vadd.f32 %v6930_v2, %v958_v24  ;;  %v7364_v20 = vadd.f32 %v6930_v2, %v1038_v19  ;;  %vm7372_vm7 = vcmp.eq.f32.partialorder %v2292_v3, 8.507059e+37 }
 0x1ca   : > { %v2295_v4 = vor.u32 1.1754944e-38, %v2294_v21  ;;  %v2774_v11 = vand.u32 2147483648, %v7285_v39  ;;  %5167 = vrcp.f32 %v7357_v45  ;;  %v2291_v18 = vsel %vm7368_vm6, %v7287_v33, %v2287_v30  ;;  %v803_v62 = vpop.f32.mrf.mxu0 }
 0x1cb   : > { %v7366_v52 = vpop.eup %5165  ;;  %vm2768_vm8 = vweird.f32 %v7285_v39  ;;  %v2772_v55 = vand.u32 2147483647, %v7285_v39  ;;  %5169 = vpow2.f32 %v4317_v44  ;;  %v1816_v9 = vsel %vm7352_vm5, %v1815_v25, %v1811_v56  ;;  %v883_v51 = vpop.f32.mrf.mxu1 }
 0x1cc   : > { %v3244_v10 = vmul.f32 %v7366_v52, %v7308_v34  ;;  %vm3248_vm9 = vweird.f32 %v7308_v34  ;;  %v4349_v40 = vmul.f32 -1.442695, %v7361_v14  ;;  %v4381_v53 = vmul.f32 -1.442695, %v7364_v20 }
 0x1cd   : > { %v2766_v33 = vmul.f32 %v7332_v59, %v2765_v63  ;;  %v7392_v12 = vadd.f32 %v6930_v2, %v801_v6  ;;  %v7395_v17 = vadd.f32 %v6930_v2, %v881_v32  ;;  %v2296_v7 = vsel %vm7372_vm7, %v2295_v4, %v2291_v18 }
 0x1ce   : > { %v3245_v57 = vsub.f32 1.0, %v3244_v10  ;;  %v2775_v16 = vor.u32 1.1754944e-38, %v2774_v11  ;;  %5171 = vpow2.f32 %v4349_v40  ;;  %v7400_v28 = vadd.f32 %v6930_v2, %v961_v54  ;;  %v963_v10 = vpop.f32.mrf.mxu2 }
 0x1cf   : > { %vm7402_vm10 = vcmp.eq.f32.partialorder %v2772_v55, 8.507059e+37  ;;  %v3252_v60 = vand.u32 2147483647, %v7308_v34  ;;  %5173 = vpow2.f32 %v4381_v53  ;;  %v4286_v27 = vmul.f32 -1.442695, %v7392_v12 }
 0x1d0   : > { %v3246_v47 = vmul.f32 %v7366_v52, %v3245_v57  ;;  %v5168_v8 = vpop.eup %5167  ;;  %v7410_v26 = vmul.f32 %v1816_v9, %v7128_v1  ;;  %vm2769_vm11 = vweird.f32 %v7332_v59  ;;  %v3254_v35 = vand.u32 2147483648, %v7308_v34 }
 0x1d1   : > { %v4318_v29 = vmul.f32 -1.442695, %v7395_v17  ;;  %v5170_v24 = vpop.eup %5169  ;;  %v7416_v23 = vmul.f32 %v2296_v7, %v7134_v22  ;;  %v2767_v15 = vadd.f32 %v7332_v59, %v2766_v33  ;;  %vm3249_vm12 = vweird.f32 %v7366_v52  ;;  %vm7434_vm14 = vmor %vm2768_vm8, %vm2769_vm11 }
 0x1d2   : > { %v1819_v61 = vmul.f32 %v5168_v8, %v7357_v45  ;;  %v3247_v1 = vadd.f32 %v7366_v52, %v3246_v47  ;;  %v7422_v31 = vadd.f32 1.0, %v5170_v24  ;;  %5175 = vpow2.f32 %v4286_v27  ;;  %vm7450_vm15 = vmor %vm3248_vm9, %vm3249_vm12 }
 0x1d3   : > { %v4350_v13 = vmul.f32 -1.442695, %v7400_v28  ;;  %vm7425_vm13 = vcmp.eq.f32.partialorder %v3252_v60, 8.507059e+37  ;;  %v1827_v58 = vand.u32 2147483647, %v7357_v45  ;;  %5177 = vpow2.f32 %v4318_v29 }
 0x1d4   : > { %v1820_v22 = vsub.f32 1.0, %v1819_v61  ;;  %v5172_v49 = vpop.eup %5171  ;;  %v3255_v3 = vor.u32 1.1754944e-38, %v3254_v35  ;;  %v1829_v21 = vand.u32 2147483648, %v7357_v45  ;;  %5179 = vrcp.f32 %v7422_v31 }
 0x1d5   : > { %v7441_v19 = vadd.f32 %v6930_v2, %v1041_v42  ;;  %v5174_v30 = vpop.eup %5173  ;;  %v2771_v0 = vsel %vm7434_vm14, %v7332_v59, %v2767_v15  ;;  %vm1824_vm0 = vweird.f32 %v5168_v8  ;;  %v7454_v48 = vadd.f32 1.0, %v5172_v49 }
 0x1d6   : > { %v1821_v56 = vmul.f32 %v5168_v8, %v1820_v22  ;;  %v3251_v25 = vsel %vm7450_vm15, %v7366_v52, %v3247_v1  ;;  %vm1823_vm1 = vweird.f32 %v7357_v45  ;;  %v7460_v63 = vadd.f32 1.0, %v5174_v30 }
 0x1d7   : > { %5181 = vpow2.f32 %v4350_v13  ;;  %vm7462_vm2 = vcmp.eq.f32.partialorder %v1827_v58, 8.507059e+37  ;;  %v7468_v44 = vadd.f32 %v6930_v2, %v803_v62  ;;  %v2776_v52 = vsel %vm7402_vm10, %v2775_v16, %v2771_v0  ;;  %vm1825_vm3 = vmor %vm1823_vm1, %vm1824_vm0 }
 0x1d8   : > { %v1822_v59 = vadd.f32 %v5168_v8, %v1821_v56  ;;  %5183 = vrcp.f32 %v7454_v48  ;;  %v5176_v5 = vpop.eup %5175  ;;  %v1830_v45 = vor.u32 1.1754944e-38, %v1829_v21  ;;  %v4382_v4 = vmul.f32 -1.442695, %v7441_v19 }
 0x1d9   : > { %5185 = vrcp.f32 %v7460_v63  ;;  %v5178_v11 = vpop.eup %5177  ;;  %v3256_v6 = vsel %vm7425_vm13, %v3255_v3, %v3251_v25  ;;  %v2307_v18 = vand.u32 2147483647, %v7422_v31  ;;  %v7477_v55 = vadd.f32 1.0, %v5176_v5 }
 0x1da   : > { %v1826_v32 = vsel %vm1825_vm3, %v5168_v8, %v1822_v59  ;;  %v5180_v54 = vpop.eup %5179  ;;  %v2309_v40 = vand.u32 2147483648, %v7422_v31  ;;  %v7482_v53 = vadd.f32 1.0, %v5178_v11  ;;  %v7485_v33 = vadd.f32 %v6930_v2, %v883_v51 }
 0x1db   : > { %v1831_v9 = vsel %vm7462_vm2, %v1830_v45, %v1826_v32  ;;  %v7488_v57 = vmul.f32 %v2776_v52, %v7185_v41  ;;  %v2299_v16 = vmul.f32 %v5180_v54, %v7422_v31  ;;  %v7493_v36 = vmul.f32 -1.442695, %v7468_v44 }
 0x1dc   : > { %v3528_v7 = vmul.f32 %v1831_v9, %v7207_v37  ;;  %v7496_v60 = vmul.f32 %v3256_v6, %v7197_v38  ;;  %vm2303_vm4 = vweird.f32 %v7422_v31  ;;  %5187 = vrcp.f32 %v7477_v55 }
 0x1dd   : > { %v5182_v47 = vpop.eup %5181  ;;  %v7501_v27 = vadd.f32 %v6930_v2, %v963_v10  ;;  %v2300_v8 = vsub.f32 1.0, %v2299_v16  ;;  %vm7504_vm5 = vcmp.eq.f32.partialorder %v2307_v18, 8.507059e+37  ;;  %5189 = vrcp.f32 %v7482_v53 }
 0x1de   : > { %v5184_v41 = vpop.eup %5183  ;;  %v4514_v37 = vpack.c.bf16 %v3528_v7, %v7410_v26  ;;  %v2310_v38 = vor.u32 1.1754944e-38, %v2309_v40  ;;  %vm2783_vm6 = vweird.f32 %v7454_v48  ;;  %v7512_v15 = vmul.f32 -1.442695, %v7485_v33 }
 0x1df   : > { %v5186_v29 = vpop.eup %5185  ;;  %v2779_v24 = vmul.f32 %v5184_v41, %v7454_v48  ;;  %v2301_v2 = vmul.f32 %v5180_v54, %v2300_v8  ;;  %vm2304_vm7 = vweird.f32 %v5180_v54  ;;  %v2787_v26 = vand.u32 2147483647, %v7454_v48  ;;  %v1043_v8 = vpop.f32.mrf.mxu3 }
 0x1e0   : > { %4802 = vst [vmem:[%s5897_s4 + $0x38] sm:$0xff] %v4514_v37   ;;  %v3259_v61 = vmul.f32 %v5186_v29, %v7460_v63  ;;  %v2789_v1 = vand.u32 2147483648, %v7454_v48  ;;  %vm3263_vm8 = vweird.f32 %v7460_v63  ;;  %v7519_v13 = vadd.f32 1.0, %v5182_v47  ;;  %vm2305_vm9 = vmor %vm2303_vm4, %vm2304_vm7 }
 0x1e1   : > { %v2780_v42 = vsub.f32 1.0, %v2779_v24  ;;  %v2302_v46 = vadd.f32 %v5180_v54, %v2301_v2  ;;  %v3267_v58 = vand.u32 2147483647, %v7460_v63  ;;  %5191 = vpow2.f32 %v4382_v4  ;;  %v886_v24 = vpop.f32.mrf.mxu1 }
 0x1e2   : > { %v3260_v22 = vsub.f32 1.0, %v3259_v61  ;;  %v7522_v49 = vpop.eup %5187  ;;  %vm2784_vm10 = vweird.f32 %v5184_v41  ;;  %v3269_v3 = vand.u32 2147483648, %v7460_v63  ;;  %5193 = vrcp.f32 %v7519_v13 }
 0x1e3   : > { %v2781_v43 = vmul.f32 %v5184_v41, %v2780_v42  ;;  %v7528_v21 = vpop.eup %5189  ;;  %v2306_v62 = vsel %vm2305_vm9, %v5180_v54, %v2302_v46  ;;  %vm3264_vm11 = vweird.f32 %v5186_v29  ;;  %v1834_v0 = vmul.f32 %v7522_v49, %v7477_v55  ;;  %vm2785_vm13 = vmor %vm2783_vm6, %vm2784_vm10 }
 0x1e4   : > { %v3261_v30 = vmul.f32 %v5186_v29, %v3260_v22  ;;  %v2311_v39 = vsel %vm7504_vm5, %v2310_v38, %v2306_v62  ;;  %vm2788_vm12 = vcmp.eq.f32.partialorder %v2787_v26, 8.507059e+37  ;;  %v2314_v31 = vmul.f32 %v7528_v21, %v7482_v53  ;;  %vm3265_vm14 = vmor %vm3263_vm8, %vm3264_vm11  ;;  %v7583_v26 = vld [vmem:[%s9255_s2] ss:$0 sm:$0xff] }
 0x1e5   : > { %v2782_v56 = vadd.f32 %v5184_v41, %v2781_v43  ;;  %v3560_v25 = vmul.f32 %v2311_v39, %v7330_v50  ;;  %v2790_v59 = vor.u32 1.1754944e-38, %v2789_v1  ;;  %v1835_v51 = vsub.f32 1.0, %v1834_v0  ;;  %v966_v43 = vpop.f32.mrf.mxu2 }
 0x1e6   : > { %v3262_v34 = vadd.f32 %v5186_v29, %v3261_v30  ;;  %v3270_v52 = vor.u32 1.1754944e-38, %v3269_v3  ;;  %v1842_v45 = vand.u32 2147483647, %v7477_v55  ;;  %v2315_v4 = vsub.f32 1.0, %v2314_v31 }
 0x1e7   : > { %v2786_v5 = vsel %vm2785_vm13, %v5184_v41, %v2782_v56  ;;  %v5192_v11 = vpop.eup %5191  ;;  %v4594_v6 = vpack.c.bf16 %v3560_v25, %v7416_v23  ;;  %vm3268_vm15 = vcmp.eq.f32.partialorder %v3267_v58, 8.507059e+37  ;;  %v1836_v54 = vmul.f32 %v7522_v49, %v1835_v51 }
 0x1e8   : > { %v2791_v32 = vsel %vm2788_vm12, %v2790_v59, %v2786_v5  ;;  %v3266_v50 = vsel %vm3265_vm14, %v5186_v29, %v3262_v34  ;;  %v7543_v48 = vpop.eup %5193  ;;  %vm1838_vm0 = vweird.f32 %v7477_v55  ;;  %v1844_v9 = vand.u32 2147483648, %v7477_v55 }
 0x1e9   : > { %v3592_v18 = vmul.f32 %v2791_v32, %v7361_v14  ;;  %v3271_v10 = vsel %vm3268_vm15, %v3270_v52, %v3266_v50  ;;  %4818 = vst [vmem:[%s5897_s4 + $0xb8] sm:$0xff] %v4594_v6   ;;  %v2322_v23 = vand.u32 2147483647, %v7482_v53  ;;  %v2794_v40 = vmul.f32 %v7543_v48, %v7519_v13 }
 0x1ea   : > { %v3624_v63 = vmul.f32 %v3271_v10, %v7364_v20  ;;  %vm7555_vm1 = vcmp.eq.f32.partialorder %v1842_v45, 8.507059e+37  ;;  %v2316_v16 = vmul.f32 %v7528_v21, %v2315_v4  ;;  %v7560_v47 = vadd.f32 1.0, %v5192_v11 }
 0x1eb   : > { %v4674_v7 = vpack.c.bf16 %v3592_v18, %v7488_v57  ;;  %v2795_v41 = vsub.f32 1.0, %v2794_v40  ;;  %5195 = vpow2.f32 %v7493_v36  ;;  %v4351_v37 = vmul.f32 -1.442695, %v7501_v27  ;;  %v806_v57 = vpop.f32.mrf.mxu0 }
 0x1ec   : > { %v4754_v20 = vpack.c.bf16 %v3624_v63, %v7496_v60  ;;  %v1837_v35 = vadd.f32 %v7522_v49, %v1836_v54  ;;  %vm1839_vm2 = vweird.f32 %v7522_v49  ;;  %vm2318_vm3 = vweird.f32 %v7482_v53 }
 0x1ed   : > { %4834 = vst [vmem:[%s5897_s4 + $0x138] sm:$0xff] %v4674_v7   ;;  %5197 = vrcp.f32 %v7560_v47  ;;  %v1845_v29 = vor.u32 1.1754944e-38, %v1844_v9  ;;  %vm7571_vm4 = vcmp.eq.f32.partialorder %v2322_v23, 8.507059e+37  ;;  %v2324_v36 = vand.u32 2147483648, %v7482_v53  ;;  %vm7592_vm6 = vmor %vm1838_vm0, %vm1839_vm2 }
 0x1ee   : > { %4850 = vst [vmem:[%s5897_s4 + $0x1b8] sm:$0xff] %v4754_v20   ;;  %v2796_v38 = vmul.f32 %v7543_v48, %v2795_v41  ;;  %v2317_v2 = vadd.f32 %v7528_v21, %v2316_v16  ;;  %vm2319_vm5 = vweird.f32 %v7528_v21  ;;  %5199 = vpow2.f32 %v7512_v15 }
 0x1ef   : > { %v7586_v61 = vadd.f32 %v7583_v26, %v1043_v8  ;;  %vm2799_vm7 = vweird.f32 %v7543_v48  ;;  %v2802_v15 = vand.u32 2147483647, %v7519_v13  ;;  %5201 = vpow2.f32 %v4351_v37  ;;  %vm7613_vm8 = vmor %vm2318_vm3, %vm2319_vm5 }
 0x1f0   : > { %v7599_v1 = vadd.f32 %v7583_v26, %v806_v57  ;;  %v1841_v46 = vsel %vm7592_vm6, %v7522_v49, %v1837_v35  ;;  %v2797_v22 = vadd.f32 %v7543_v48, %v2796_v38  ;;  %v7607_v58 = vadd.f32 %v7583_v26, %v886_v24 }
 0x1f1   : > { %v4383_v55 = vmul.f32 -1.442695, %v7586_v61  ;;  %v5196_v3 = vpop.eup %5195  ;;  %v2325_v30 = vor.u32 1.1754944e-38, %v2324_v36  ;;  %vm2798_vm9 = vweird.f32 %v7519_v13  ;;  %v2804_v49 = vand.u32 2147483648, %v7519_v13 }
 0x1f2   : > { %v4288_v0 = vmul.f32 -1.442695, %v7599_v1  ;;  %v2321_v56 = vsel %vm7613_vm8, %v7528_v21, %v2317_v2  ;;  %v7625_v31 = vadd.f32 1.0, %v5196_v3  ;;  %v4320_v53 = vmul.f32 -1.442695, %v7607_v58  ;;  %vm7632_vm10 = vmor %vm2798_vm9, %vm2799_vm7 }
 0x1f3   : > { %v7620_v39 = vpop.eup %5197  ;;  %5203 = vpow2.f32 %v4383_v55  ;;  %v1846_v25 = vsel %vm7555_vm1, %v1845_v29, %v1841_v46  ;;  %v7639_v21 = vadd.f32 %v7583_v26, %v966_v43  ;;  %v2801_v51 = vsel %vm7632_vm10, %v7543_v48, %v2797_v22  ;;  %v1046_v48 = vpop.f32.mrf.mxu3 }
 0x1f4   : > { %v3274_v59 = vmul.f32 %v7620_v39, %v7560_v47  ;;  %5205 = vpow2.f32 %v4288_v0  ;;  %v5200_v34 = vpop.eup %5199  ;;  %vm2803_vm11 = vcmp.eq.f32.partialorder %v2802_v15, 8.507059e+37  ;;  %v3284_v5 = vand.u32 2147483648, %v7560_v47  ;;  %v808_v10 = vpop.f32.mrf.mxu0 }
 0x1f5   : > { %5207 = vrcp.f32 %v7625_v31  ;;  %v5202_v52 = vpop.eup %5201  ;;  %v2326_v45 = vsel %vm7571_vm4, %v2325_v30, %v2321_v56  ;;  %v2805_v4 = vor.u32 1.1754944e-38, %v2804_v49  ;;  %v7648_v6 = vadd.f32 1.0, %v5200_v34 }
 0x1f6   : > { %v3275_v11 = vsub.f32 1.0, %v3274_v59  ;;  %v7651_v32 = vmul.f32 %v1846_v25, %v7392_v12  ;;  %v3282_v50 = vand.u32 2147483647, %v7560_v47  ;;  %v7654_v18 = vadd.f32 1.0, %v5202_v52 }
 0x1f7   : > { %5209 = vpow2.f32 %v4320_v53  ;;  %v2806_v54 = vsel %vm2803_vm11, %v2805_v4, %v2801_v51  ;;  %vm3278_vm12 = vweird.f32 %v7560_v47  ;;  %v1857_v63 = vand.u32 2147483647, %v7625_v31 }
 0x1f8   : > { %5211 = vrcp.f32 %v7648_v6  ;;  %v4352_v9 = vmul.f32 -1.442695, %v7639_v21  ;;  %v7661_v12 = vmul.f32 %v2326_v45, %v7395_v17  ;;  %v7663_v40 = vor.u32 1.1754944e-38, %v3284_v5 }
 0x1f9   : > { %v5204_v23 = vpop.eup %5203  ;;  %v1859_v7 = vand.u32 2147483648, %v7625_v31  ;;  %5213 = vrcp.f32 %v7654_v18  ;;  %v3276_v16 = vmul.f32 %v7620_v39, %v3275_v11  ;;  %v7671_v41 = vadd.f32 %v7583_v26, %v1046_v48 }
 0x1fa   : > { %v5206_v14 = vpop.eup %5205  ;;  %v7668_v20 = vadd.f32 1.0, %v5204_v23  ;;  %v7674_v37 = vadd.f32 %v7583_v26, %v808_v10  ;;  %v7677_v17 = vmul.f32 %v2806_v54, %v7400_v28  ;;  %vm3279_vm13 = vweird.f32 %v7620_v39 }
 0x1fb   : > { %v5208_v8 = vpop.eup %5207  ;;  %vm1853_vm14 = vweird.f32 %v7625_v31  ;;  %v7681_v35 = vadd.f32 1.0, %v5206_v14  ;;  %vm7684_vm15 = vcmp.eq.f32.partialorder %v1857_v63, 8.507059e+37  ;;  %v2337_v60 = vand.u32 2147483647, %v7648_v6  ;;  %vm7712_vm5 = vmor %vm3278_vm12, %vm3279_vm13 }
 0x1fc   : > { %v1849_v57 = vmul.f32 %v5208_v8, %v7625_v31  ;;  %5215 = vpow2.f32 %v4352_v9  ;;  %v1860_v38 = vor.u32 1.1754944e-38, %v1859_v7  ;;  %v2339_v28 = vand.u32 2147483648, %v7648_v6 }
 0x1fd   : > { %v5210_v36 = vpop.eup %5209  ;;  %v2817_v24 = vand.u32 2147483647, %v7654_v18  ;;  %5217 = vrcp.f32 %v7668_v20  ;;  %v3277_v42 = vadd.f32 %v7620_v39, %v3276_v16  ;;  %v2819_v46 = vand.u32 2147483648, %v7654_v18 }
 0x1fe   : > { %v5212_v2 = vpop.eup %5211  ;;  %v1850_v15 = vsub.f32 1.0, %v1849_v57  ;;  %5219 = vrcp.f32 %v7681_v35  ;;  %vm2333_vm0 = vweird.f32 %v7648_v6  ;;  %vm2813_vm1 = vweird.f32 %v7654_v18 }
 0x1ff   : > { %v5214_v22 = vpop.eup %5213  ;;  %v2329_v55 = vmul.f32 %v5212_v2, %v7648_v6  ;;  %v4384_v43 = vmul.f32 -1.442695, %v7671_v41  ;;  %vm7699_vm2 = vcmp.eq.f32.partialorder %v3282_v50, 8.507059e+37  ;;  %vm1854_vm3 = vweird.f32 %v5208_v8 }
 0x200   : > { %v1851_v62 = vmul.f32 %v5208_v8, %v1850_v15  ;;  %vm7703_vm4 = vcmp.eq.f32.partialorder %v2337_v60, 8.507059e+37  ;;  %v2809_v49 = vmul.f32 %v5214_v22, %v7654_v18  ;;  %v2340_v53 = vor.u32 1.1754944e-38, %v2339_v28  ;;  %vm1855_vm7 = vmor %vm1853_vm14, %vm1854_vm3  ;;  %v888_v60 = vpop.f32.mrf.mxu1 }
 0x201   : > { %v2330_v56 = vsub.f32 1.0, %v2329_v55  ;;  %vm7716_vm6 = vcmp.eq.f32.partialorder %v2817_v24, 8.507059e+37  ;;  %v7720_v13 = vadd.f32 1.0, %v5210_v36  ;;  %v3281_v34 = vsel %vm7712_vm5, %v7620_v39, %v3277_v42 }
 0x202   : > { %v5216_v59 = vpop.eup %5215  ;;  %v1852_v51 = vadd.f32 %v5208_v8, %v1851_v62  ;;  %v2810_v5 = vsub.f32 1.0, %v2809_v49  ;;  %v2820_v47 = vor.u32 1.1754944e-38, %v2819_v46  ;;  %vm2334_vm8 = vweird.f32 %v5212_v2 }
 0x203   : > { %v5218_v52 = vpop.eup %5217  ;;  %v2331_v45 = vmul.f32 %v5212_v2, %v2330_v56  ;;  %v3297_v4 = vand.u32 2147483647, %v7668_v20  ;;  %5221 = vrcp.f32 %v7720_v13  ;;  %vm2814_vm9 = vweird.f32 %v5214_v22  ;;  %vm2335_vm10 = vmor %vm2333_vm0, %vm2334_vm8 }
 0x204   : > { %v7729_v11 = vpop.eup %5219  ;;  %v1856_v50 = vsel %vm1855_vm7, %v5208_v8, %v1852_v51  ;;  %v2811_v48 = vmul.f32 %v5214_v22, %v2810_v5  ;;  %v3289_v39 = vmul.f32 %v5218_v52, %v7668_v20  ;;  %5223 = vpow2.f32 %v4384_v43  ;;  %vm2815_vm11 = vmor %vm2813_vm1, %vm2814_vm9 }
 0x205   : > { %v1861_v10 = vsel %vm7684_vm15, %v1860_v38, %v1856_v50  ;;  %v2332_v54 = vadd.f32 %v5212_v2, %v2331_v45  ;;  %v1864_v31 = vmul.f32 %v7729_v11, %v7681_v35  ;;  %v3299_v7 = vand.u32 2147483648, %v7668_v20 }
 0x206   : > { %v3530_v63 = vmul.f32 %v1861_v10, %v7468_v44  ;;  %v2812_v9 = vadd.f32 %v5214_v22, %v2811_v48  ;;  %v3290_v23 = vsub.f32 1.0, %v3289_v39  ;;  %vm3294_vm12 = vweird.f32 %v5218_v52 }
 0x207   : > { %v2336_v14 = vsel %vm2335_vm10, %v5212_v2, %v2332_v54  ;;  %v1865_v16 = vsub.f32 1.0, %v1864_v31  ;;  %v7742_v8 = vadd.f32 1.0, %v5216_v59  ;;  %v3286_v38 = vsel %vm7699_vm2, %v7663_v40, %v3281_v34 }
 0x208   : > { %v4519_v57 = vpack.c.bf16 %v3530_v63, %v7651_v32  ;;  %v2341_v44 = vsel %vm7703_vm4, %v2340_v53, %v2336_v14  ;;  %v2816_v6 = vsel %vm2815_vm11, %v5214_v22, %v2812_v9  ;;  %v3291_v29 = vmul.f32 %v5218_v52, %v3290_v23  ;;  %v891_v50 = vpop.f32.mrf.mxu1 }
 0x209   : > { %v7747_v36 = vpop.eup %5221  ;;  %v3562_v18 = vmul.f32 %v2341_v44, %v7485_v33  ;;  %v2821_v28 = vsel %vm7716_vm6, %v2820_v47, %v2816_v6  ;;  %vm3293_vm13 = vweird.f32 %v7668_v20  ;;  %vm3298_vm14 = vcmp.eq.f32.partialorder %v3297_v4, 8.507059e+37  ;;  %v968_v20 = vpop.f32.mrf.mxu2 }
 0x20a   : > { %4803 = vst [vmem:[%s5897_s4 + $0x40] sm:$0xff] %v4519_v57   ;;  %v3594_v32 = vmul.f32 %v2821_v28, %v7501_v27  ;;  %v3292_v24 = vadd.f32 %v5218_v52, %v3291_v29  ;;  %v2344_v2 = vmul.f32 %v7747_v36, %v7720_v13  ;;  %v5224_v42 = vpop.eup %5223  ;;  %vm3295_vm15 = vmor %vm3293_vm13, %vm3294_vm12  ;;  %v3300_v33 = vor.u32 1.1754944e-38, %v3299_v7  ;;  %v811_v4 = vpop.f32.mrf.mxu0 }
 0x20b   : > { %v4599_v40 = vpack.c.bf16 %v3562_v18, %v7661_v12  ;;  %v1866_v15 = vmul.f32 %v7729_v11, %v1865_v16  ;;  %5225 = vrcp.f32 %v7742_v8  ;;  %v1872_v22 = vand.u32 2147483647, %v7681_v35 }
 0x20c   : > { %v4679_v27 = vpack.c.bf16 %v3594_v32, %v7677_v17  ;;  %v3296_v46 = vsel %vm3295_vm15, %v5218_v52, %v3292_v24  ;;  %v1874_v55 = vand.u32 2147483648, %v7681_v35  ;;  %v3625_v43 = vmul.f32 %v3286_v38, %v7441_v19  ;;  %v1048_v17 = vpop.f32.mrf.mxu3 }
 0x20d   : > { %4819 = vst [vmem:[%s5897_s4 + $0xc0] sm:$0xff] %v4599_v40   ;;  %v3301_v3 = vsel %vm3298_vm14, %v3300_v33, %v3296_v46  ;;  %v2345_v12 = vsub.f32 1.0, %v2344_v2  ;;  %vm1868_vm0 = vweird.f32 %v7681_v35  ;;  %v2354_v30 = vand.u32 2147483648, %v7720_v13 }
 0x20e   : > { %4835 = vst [vmem:[%s5897_s4 + $0x140] sm:$0xff] %v4679_v27   ;;  %v3626_v62 = vmul.f32 %v3301_v3, %v7586_v61  ;;  %v7773_v49 = vadd.f32 1.0, %v5224_v42  ;;  %v1867_v0 = vadd.f32 %v7729_v11, %v1866_v15  ;;  %vm1869_vm1 = vweird.f32 %v7729_v11 }
 0x20f   : > { %v2352_v19 = vand.u32 2147483647, %v7720_v13  ;;  %v4289_v56 = vmul.f32 -1.442695, %v7674_v37  ;;  %vm7779_vm2 = vcmp.eq.f32.partialorder %v1872_v22, 8.507059e+37  ;;  %v1875_v61 = vor.u32 1.1754944e-38, %v1874_v55  ;;  %vm7794_vm4 = vmor %vm1868_vm0, %vm1869_vm1 }
 0x210   : > { %v4759_v53 = vpack.c.bf16 %v3626_v62, %v3625_v43  ;;  %5227 = vrcp.f32 %v7773_v49  ;;  %v2346_v34 = vmul.f32 %v7747_v36, %v2345_v12  ;;  %vm2348_vm3 = vweird.f32 %v7720_v13 }
 0x211   : > { %v7784_v59 = vpop.eup %5225  ;;  %5229 = vpow2.f32 %v4289_v56  ;;  %v7789_v51 = vadd.f32 %v7583_v26, %v888_v60  ;;  %vm2349_vm5 = vweird.f32 %v7747_v36  ;;  %v2355_v47 = vor.u32 1.1754944e-38, %v2354_v30  ;;  %v971_v14 = vpop.f32.mrf.mxu2 }
 0x212   : > { %4851 = vst [vmem:[%s5897_s4 + $0x1c0] sm:$0xff] %v4759_v53   ;;  %v2824_v52 = vmul.f32 %v7784_v59, %v7742_v8  ;;  %v7802_v45 = vadd.f32 %v7583_v26, %v968_v20  ;;  %v1871_v48 = vsel %vm7794_vm4, %v7729_v11, %v1867_v0  ;;  %vm7807_vm6 = vcmp.eq.f32.partialorder %v2352_v19, 8.507059e+37  ;;  %vm7841_vm9 = vmor %vm2348_vm3, %vm2349_vm5  ;;  %v813_v19 = vpop.f32.mrf.mxu0 }
 0x213   : > { %vm2828_vm7 = vweird.f32 %v7742_v8  ;;  %v2832_v39 = vand.u32 2147483647, %v7742_v8  ;;  %v4321_v10 = vmul.f32 -1.442695, %v7789_v51  ;;  %v2834_v31 = vand.u32 2147483648, %v7742_v8 }
 0x214   : > { %v2825_v54 = vsub.f32 1.0, %v2824_v52  ;;  %v4353_v63 = vmul.f32 -1.442695, %v7802_v45  ;;  %v7817_v9 = vadd.f32 %v7583_v26, %v1048_v17  ;;  %v2347_v11 = vadd.f32 %v7747_v36, %v2346_v34  ;;  %v1051_v42 = vpop.f32.mrf.mxu3 }
 0x215   : > { %5231 = vpow2.f32 %v4321_v10  ;;  %v7821_v23 = vadd.f32 %v7583_v26, %v811_v4  ;;  %v7824_v7 = vadd.f32 %v7583_v26, %v891_v50  ;;  %v1876_v57 = vsel %vm7779_vm2, %v1875_v61, %v1871_v48 }
 0x216   : > { %v7826_v16 = vpop.eup %5227  ;;  %v2826_v44 = vmul.f32 %v7784_v59, %v2825_v54  ;;  %5233 = vpow2.f32 %v4353_v63  ;;  %v4385_v6 = vmul.f32 -1.442695, %v7817_v9  ;;  %vm2829_vm8 = vweird.f32 %v7784_v59 }
 0x217   : > { %v5230_v29 = vpop.eup %5229  ;;  %v3304_v60 = vmul.f32 %v7826_v16, %v7773_v49  ;;  %v4290_v38 = vmul.f32 -1.442695, %v7821_v23  ;;  %v4322_v18 = vmul.f32 -1.442695, %v7824_v7  ;;  %v7849_v2 = vadd.f32 %v7583_v26, %v971_v14  ;;  %vm7859_vm10 = vmor %vm2828_vm7, %vm2829_vm8 }
 0x218   : > { %v2827_v32 = vadd.f32 %v7784_v59, %v2826_v44  ;;  %v7846_v24 = vadd.f32 1.0, %v5230_v29  ;;  %5235 = vpow2.f32 %v4385_v6  ;;  %v7852_v40 = vmul.f32 %v1876_v57, %v7599_v1 }
 0x219   : > { %v2351_v13 = vsel %vm7841_vm9, %v7747_v36, %v2347_v11  ;;  %v3305_v33 = vsub.f32 1.0, %v3304_v60  ;;  %5237 = vpow2.f32 %v4290_v38  ;;  %vm7863_vm11 = vcmp.eq.f32.partialorder %v2832_v39, 8.507059e+37 }
 0x21a   : > { %v3312_v27 = vand.u32 2147483647, %v7773_v49  ;;  %v3314_v1 = vand.u32 2147483648, %v7773_v49  ;;  %5239 = vrcp.f32 %v7846_v24  ;;  %v2831_v36 = vsel %vm7859_vm10, %v7784_v59, %v2827_v32 }
 0x21b   : > { %v5232_v46 = vpop.eup %5231  ;;  %v3306_v8 = vmul.f32 %v7826_v16, %v3305_v33  ;;  %5241 = vpow2.f32 %v4322_v18  ;;  %v7875_v22 = vadd.f32 %v7583_v26, %v1051_v42  ;;  %v2356_v43 = vsel %vm7807_vm6, %v2355_v47, %v2351_v13 }
 0x21c   : > { %v5234_v55 = vpop.eup %5233  ;;  %v2835_v3 = vor.u32 1.1754944e-38, %v2834_v31  ;;  %v7879_v12 = vadd.f32 1.0, %v5232_v46  ;;  %v4354_v62 = vmul.f32 -1.442695, %v7849_v2  ;;  %vm3309_vm12 = vweird.f32 %v7826_v16  ;;  %v893_v46 = vpop.f32.mrf.mxu1 }
 0x21d   : > { %v3307_v30 = vadd.f32 %v7826_v16, %v3306_v8  ;;  %v1887_v17 = vand.u32 2147483647, %v7846_v24  ;;  %v7885_v0 = vadd.f32 1.0, %v5234_v55  ;;  %vm3308_vm13 = vweird.f32 %v7773_v49 }
 0x21e   : > { %v5236_v56 = vpop.eup %5235  ;;  %v2836_v53 = vsel %vm7863_vm11, %v2835_v3, %v2831_v36  ;;  %v1889_v25 = vand.u32 2147483648, %v7846_v24  ;;  %5243 = vrcp.f32 %v7879_v12  ;;  %vm7892_vm14 = vcmp.eq.f32.partialorder %v3312_v27, 8.507059e+37  ;;  %vm7903_vm15 = vmor %vm3308_vm13, %vm3309_vm12 }
 0x21f   : > { %v5238_v61 = vpop.eup %5237  ;;  %v3315_v34 = vor.u32 1.1754944e-38, %v3314_v1  ;;  %5245 = vrcp.f32 %v7885_v0  ;;  %v4386_v5 = vmul.f32 -1.442695, %v7875_v22  ;;  %v7899_v52 = vmul.f32 %v2356_v43, %v7607_v58 }
 0x220   : > { %v5240_v47 = vpop.eup %5239  ;;  %vm1883_vm0 = vweird.f32 %v7846_v24  ;;  %5247 = vpow2.f32 %v4354_v62  ;;  %v7909_v4 = vadd.f32 %v7583_v26, %v813_v19  ;;  %v7912_v48 = vmul.f32 %v2836_v53, %v7639_v21 }
 0x221   : > { %v5242_v50 = vpop.eup %5241  ;;  %v3311_v58 = vsel %vm7903_vm15, %v7826_v16, %v3307_v30  ;;  %v1879_v35 = vmul.f32 %v5240_v47, %v7846_v24  ;;  %vm7918_vm1 = vcmp.eq.f32.partialorder %v1887_v17, 8.507059e+37  ;;  %v1890_v10 = vor.u32 1.1754944e-38, %v1889_v25 }
 0x222   : > { %v2367_v54 = vand.u32 2147483647, %v7879_v12  ;;  %v7923_v31 = vadd.f32 1.0, %v5236_v56  ;;  %v7925_v63 = vadd.f32 1.0, %v5238_v61  ;;  %v2369_v21 = vand.u32 2147483648, %v7879_v12 }
 0x223   : > { %v1880_v11 = vsub.f32 1.0, %v1879_v35  ;;  %v2847_v14 = vand.u32 2147483647, %v7885_v0  ;;  %5249 = vpow2.f32 %v4386_v5  ;;  %v3316_v57 = vsel %vm7892_vm14, %v3315_v34, %v3311_v58 }
 0x224   : > { %v5244_v16 = vpop.eup %5243  ;;  %v2849_v44 = vand.u32 2147483648, %v7885_v0  ;;  %5251 = vrcp.f32 %v7923_v31  ;;  %v7933_v6 = vadd.f32 1.0, %v5242_v50  ;;  %vm1884_vm2 = vweird.f32 %v5240_v47 }
 0x225   : > { %v5246_v29 = vpop.eup %5245  ;;  %v1881_v60 = vmul.f32 %v5240_v47, %v1880_v11  ;;  %v2359_v38 = vmul.f32 %v5244_v16, %v7879_v12  ;;  %5253 = vrcp.f32 %v7925_v63  ;;  %vm2363_vm3 = vweird.f32 %v7879_v12  ;;  %vm1885_vm6 = vmor %vm1883_vm0, %vm1884_vm2 }
 0x226   : > { %v5248_v18 = vpop.eup %5247  ;;  %vm7938_vm4 = vcmp.eq.f32.partialorder %v2367_v54, 8.507059e+37  ;;  %v2839_v32 = vmul.f32 %v5246_v29, %v7885_v0  ;;  %vm2843_vm5 = vweird.f32 %v7885_v0  ;;  %v7945_v42 = vmul.f32 %v3316_v57, %v7671_v41 }
 0x227   : > { %v1882_v13 = vadd.f32 %v5240_v47, %v1881_v60  ;;  %v2360_v33 = vsub.f32 1.0, %v2359_v38  ;;  %v2370_v15 = vor.u32 1.1754944e-38, %v2369_v21  ;;  %vm7949_vm7 = vcmp.eq.f32.partialorder %v2847_v14, 8.507059e+37 }
 0x228   : > { %v2840_v20 = vsub.f32 1.0, %v2839_v32  ;;  %v2850_v1 = vor.u32 1.1754944e-38, %v2849_v44  ;;  %5255 = vrcp.f32 %v7933_v6  ;;  %vm2364_vm8 = vweird.f32 %v5244_v16 }
 0x229   : > { %v5250_v36 = vpop.eup %5249  ;;  %v1886_v8 = vsel %vm1885_vm6, %v5240_v47, %v1882_v13  ;;  %v2361_v55 = vmul.f32 %v5244_v16, %v2360_v33  ;;  %v7954_v41 = vadd.f32 1.0, %v5248_v18  ;;  %vm2844_vm9 = vweird.f32 %v5246_v29  ;;  %vm2365_vm10 = vmor %vm2363_vm3, %vm2364_vm8 }
 0x22a   : > { %v5252_v43 = vpop.eup %5251  ;;  %v1891_v24 = vsel %vm7918_vm1, %v1890_v10, %v1886_v8  ;;  %v2841_v3 = vmul.f32 %v5246_v29, %v2840_v20  ;;  %v4291_v62 = vmul.f32 -1.442695, %v7909_v4  ;;  %v7964_v53 = vadd.f32 %v7583_v26, %v893_v46  ;;  %vm2845_vm11 = vmor %vm2843_vm5, %vm2844_vm9 }
 0x22b   : > { %v7959_v30 = vpop.eup %5253  ;;  %v3532_v17 = vmul.f32 %v1891_v24, %v7674_v37  ;;  %v2362_v19 = vadd.f32 %v5244_v16, %v2361_v55  ;;  %v3319_v56 = vmul.f32 %v5252_v43, %v7923_v31  ;;  %v3327_v61 = vand.u32 2147483647, %v7923_v31 }
 0x22c   : > { %v2842_v25 = vadd.f32 %v5246_v29, %v2841_v3  ;;  %v3329_v59 = vand.u32 2147483648, %v7923_v31  ;;  %v1894_v34 = vmul.f32 %v7959_v30, %v7925_v63  ;;  %vm3324_vm12 = vweird.f32 %v5252_v43 }
 0x22d   : > { %v4524_v37 = vpack.c.bf16 %v3532_v17, %v7852_v40  ;;  %v2366_v5 = vsel %vm2365_vm10, %v5244_v16, %v2362_v19  ;;  %v3320_v47 = vsub.f32 1.0, %v3319_v56  ;;  %5257 = vrcp.f32 %v7954_v41 }
 0x22e   : > { %v7975_v49 = vpop.eup %5255  ;;  %v2371_v12 = vsel %vm7938_vm4, %v2370_v15, %v2366_v5  ;;  %v2846_v50 = vsel %vm2845_vm11, %v5246_v29, %v2842_v25  ;;  %v1895_v58 = vsub.f32 1.0, %v1894_v34  ;;  %vm3323_vm13 = vweird.f32 %v7923_v31  ;;  %v973_v31 = vpop.f32.mrf.mxu2 }
 0x22f   : > { %4804 = vst [vmem:[%s5897_s4 + $0x48] sm:$0xff] %v4524_v37   ;;  %v3564_v35 = vmul.f32 %v2371_v12, %v7789_v51  ;;  %v2851_v40 = vsel %vm7949_vm7, %v2850_v1, %v2846_v50  ;;  %v3321_v39 = vmul.f32 %v5252_v43, %v3320_v47  ;;  %v2374_v0 = vmul.f32 %v7975_v49, %v7933_v6  ;;  %vm3325_vm14 = vmor %vm3323_vm13, %vm3324_vm12  ;;  %v896_v5 = vpop.f32.mrf.mxu1 }
 0x230   : > { %v3596_v10 = vmul.f32 %v2851_v40, %v7802_v45  ;;  %v3330_v54 = vor.u32 1.1754944e-38, %v3329_v59  ;;  %v1902_v11 = vand.u32 2147483647, %v7925_v63  ;;  %v1896_v51 = vmul.f32 %v7959_v30, %v1895_v58 }
 0x231   : > { %v4604_v21 = vpack.c.bf16 %v3564_v35, %v7899_v52  ;;  %v3322_v14 = vadd.f32 %v5252_v43, %v3321_v39  ;;  %v2375_v16 = vsub.f32 1.0, %v2374_v0  ;;  %v1904_v44 = vand.u32 2147483648, %v7925_v63 }
 0x232   : > { %v4684_v57 = vpack.c.bf16 %v3596_v10, %v7912_v48  ;;  %v2382_v45 = vand.u32 2147483647, %v7933_v6  ;;  %v7995_v29 = vadd.f32 1.0, %v5250_v36  ;;  %vm3328_vm15 = vcmp.eq.f32.partialorder %v3327_v61, 8.507059e+37  ;;  %v816_v36 = vpop.f32.mrf.mxu0 }
 0x233   : > { %4820 = vst [vmem:[%s5897_s4 + $0xc8] sm:$0xff] %v4604_v21   ;;  %v3326_v60 = vsel %vm3325_vm14, %v5252_v43, %v3322_v14  ;;  %v2376_v52 = vmul.f32 %v7975_v49, %v2375_v16  ;;  %5259 = vpow2.f32 %v4291_v62  ;;  %v7999_v38 = vpop.eup %5257  ;;  %vm1898_vm0 = vweird.f32 %v7925_v63 }
 0x234   : > { %4836 = vst [vmem:[%s5897_s4 + $0x148] sm:$0xff] %v4684_v57   ;;  %v3331_v18 = vsel %vm3328_vm15, %v3330_v54, %v3326_v60  ;;  %v2384_v48 = vand.u32 2147483648, %v7933_v6  ;;  %5261 = vrcp.f32 %v7995_v29  ;;  %v1897_v32 = vadd.f32 %v7959_v30, %v1896_v51 }
 0x235   : > { %v3628_v28 = vmul.f32 %v3331_v18, %v7817_v9  ;;  %vm1899_vm1 = vweird.f32 %v7959_v30  ;;  %v2854_v13 = vmul.f32 %v7999_v38, %v7954_v41  ;;  %vm8010_vm2 = vcmp.eq.f32.partialorder %v1902_v11, 8.507059e+37  ;;  %v1053_v9 = vpop.f32.mrf.mxu3 }
 0x236   : > { %v1905_v15 = vor.u32 1.1754944e-38, %v1904_v44  ;;  %vm2378_vm3 = vweird.f32 %v7933_v6  ;;  %vm8015_vm4 = vcmp.eq.f32.partialorder %v2382_v45, 8.507059e+37  ;;  %v2377_v1 = vadd.f32 %v7975_v49, %v2376_v52  ;;  %vm8024_vm6 = vmor %vm1898_vm0, %vm1899_vm1  ;;  %v976_v50 = vpop.f32.mrf.mxu2 }
 0x237   : > { %v4764_v27 = vpack.c.bf16 %v3628_v28, %v7945_v42  ;;  %vm2379_vm5 = vweird.f32 %v7975_v49  ;;  %v2855_v46 = vsub.f32 1.0, %v2854_v13  ;;  %v2385_v55 = vor.u32 1.1754944e-38, %v2384_v48 }
 0x238   : > { %vm2858_vm7 = vweird.f32 %v7954_v41  ;;  %v4323_v43 = vmul.f32 -1.442695, %v7964_v53  ;;  %v8031_v24 = vadd.f32 %v7583_v26, %v973_v31  ;;  %v1901_v3 = vsel %vm8024_vm6, %v7959_v30, %v1897_v32  ;;  %vm8048_vm8 = vmor %vm2378_vm3, %vm2379_vm5 }
 0x239   : > { %v5260_v42 = vpop.eup %5259  ;;  %4852 = vst [vmem:[%s5897_s4 + $0x1c8] sm:$0xff] %v4764_v27   ;;  %v2856_v63 = vmul.f32 %v7999_v38, %v2855_v46  ;;  %v2862_v62 = vand.u32 2147483647, %v7954_v41  ;;  %v8040_v17 = vadd.f32 %v7583_v26, %v1053_v9  ;;  %v8056_v61 = vadd.f32 %v7583_v26, %v816_v36 }
 0x23a   : > { %v8042_v19 = vpop.eup %5261  ;;  %v8052_v25 = vadd.f32 1.0, %v5260_v42  ;;  %5263 = vpow2.f32 %v4323_v43  ;;  %v4355_v30 = vmul.f32 -1.442695, %v8031_v24  ;;  %v2381_v59 = vsel %vm8048_vm8, %v7975_v49, %v2377_v1  ;;  %v818_v48 = vpop.f32.mrf.mxu0 }
 0x23b   : > { %v2864_v34 = vand.u32 2147483648, %v7954_v41  ;;  %v3334_v6 = vmul.f32 %v8042_v19, %v7995_v29  ;;  %v4387_v37 = vmul.f32 -1.442695, %v8040_v17  ;;  %v1906_v47 = vsel %vm8010_vm2, %v1905_v15, %v1901_v3  ;;  %v898_v43 = vpop.f32.mrf.mxu1 }
 0x23c   : > { %v2857_v12 = vadd.f32 %v7999_v38, %v2856_v63  ;;  %vm2859_vm9 = vweird.f32 %v7999_v38  ;;  %5265 = vrcp.f32 %v8052_v25  ;;  %v3342_v49 = vand.u32 2147483647, %v7995_v29 }
 0x23d   : > { %v3335_v58 = vsub.f32 1.0, %v3334_v6  ;;  %5267 = vpow2.f32 %v4355_v30  ;;  %v4292_v35 = vmul.f32 -1.442695, %v8056_v61  ;;  %v2386_v40 = vsel %vm8015_vm4, %v2385_v55, %v2381_v59  ;;  %vm8081_vm11 = vmor %vm2858_vm7, %vm2859_vm9 }
 0x23e   : > { %vm8074_vm10 = vcmp.eq.f32.partialorder %v2862_v62, 8.507059e+37  ;;  %v3344_v0 = vand.u32 2147483648, %v7995_v29  ;;  %5269 = vpow2.f32 %v4387_v37  ;;  %v2865_v54 = vor.u32 1.1754944e-38, %v2864_v34 }
 0x23f   : > { %v3336_v11 = vmul.f32 %v8042_v19, %v3335_v58  ;;  %5271 = vpow2.f32 %v4292_v35  ;;  %v8087_v21 = vadd.f32 %v7583_v26, %v896_v5  ;;  %v8090_v51 = vmul.f32 %v1906_v47, %v7821_v23  ;;  %v1056_v23 = vpop.f32.mrf.mxu3 }
 0x240   : > { %v5264_v14 = vpop.eup %5263  ;;  %v2861_v16 = vsel %vm8081_vm11, %v7999_v38, %v2857_v12  ;;  %v1917_v41 = vand.u32 2147483647, %v8052_v25  ;;  %v1919_v57 = vand.u32 2147483648, %v8052_v25  ;;  %v8098_v44 = vmul.f32 %v2386_v40, %v7824_v7 }
 0x241   : > { %vm3338_vm12 = vweird.f32 %v7995_v29  ;;  %vm8101_vm13 = vcmp.eq.f32.partialorder %v3342_v49, 8.507059e+37  ;;  %v8105_v31 = vadd.f32 1.0, %v5264_v14  ;;  %v3337_v52 = vadd.f32 %v8042_v19, %v3336_v11  ;;  %v978_v29 = vpop.f32.mrf.mxu2 }
 0x242   : > { %v5266_v60 = vpop.eup %5265  ;;  %vm3339_vm14 = vweird.f32 %v8042_v19  ;;  %v3345_v38 = vor.u32 1.1754944e-38, %v3344_v0  ;;  %v4324_v18 = vmul.f32 -1.442695, %v8087_v21  ;;  %v2866_v28 = vsel %vm8074_vm10, %v2865_v54, %v2861_v16 }
 0x243   : > { %v5268_v7 = vpop.eup %5267  ;;  %v1909_v32 = vmul.f32 %v5266_v60, %v8052_v25  ;;  %vm1913_vm15 = vweird.f32 %v8052_v25  ;;  %5273 = vrcp.f32 %v8105_v31  ;;  %vm8115_vm0 = vcmp.eq.f32.partialorder %v1917_v41, 8.507059e+37  ;;  %vm8129_vm1 = vmor %vm3338_vm12, %vm3339_vm14 }
 0x244   : > { %v5270_v13 = vpop.eup %5269  ;;  %v1920_v15 = vor.u32 1.1754944e-38, %v1919_v57  ;;  %v8120_v20 = vadd.f32 %v7583_v26, %v976_v50  ;;  %v8123_v9 = vadd.f32 %v7583_v26, %v1056_v23  ;;  %v8133_v36 = vadd.f32 1.0, %v5268_v7 }
 0x245   : > { %v5272_v27 = vpop.eup %5271  ;;  %v1910_v46 = vsub.f32 1.0, %v1909_v32  ;;  %v8135_v8 = vadd.f32 1.0, %v5270_v13  ;;  %v8138_v55 = vadd.f32 %v7583_v26, %v818_v48  ;;  %v3341_v42 = vsel %vm8129_vm1, %v8042_v19, %v3337_v52 }
 0x246   : > { %vm1914_vm2 = vweird.f32 %v5266_v60  ;;  %v8143_v3 = vadd.f32 1.0, %v5272_v27  ;;  %5275 = vpow2.f32 %v4324_v18  ;;  %v2397_v62 = vand.u32 2147483647, %v8105_v31 }
 0x247   : > { %v1911_v63 = vmul.f32 %v5266_v60, %v1910_v46  ;;  %v2399_v56 = vand.u32 2147483648, %v8105_v31  ;;  %5277 = vrcp.f32 %v8133_v36  ;;  %v8149_v30 = vmul.f32 %v2866_v28, %v7849_v2  ;;  %vm1915_vm3 = vmor %vm1913_vm15, %vm1914_vm2 }
 0x248   : > { %5279 = vrcp.f32 %v8135_v8  ;;  %v4356_v59 = vmul.f32 -1.442695, %v8120_v20  ;;  %v8154_v19 = vadd.f32 %v7583_v26, %v898_v43  ;;  %v4388_v37 = vmul.f32 -1.442695, %v8123_v9 }
 0x249   : > { %v5274_v34 = vpop.eup %5273  ;;  %v1912_v6 = vadd.f32 %v5266_v60, %v1911_v63  ;;  %5281 = vrcp.f32 %v8143_v3  ;;  %v8159_v5 = vadd.f32 %v7583_v26, %v978_v29  ;;  %v8163_v2 = vsel %vm8101_vm13, %v3345_v38, %v3341_v42 }
 0x24a   : > { %v2389_v47 = vmul.f32 %v5274_v34, %v8105_v31  ;;  %vm2393_vm4 = vweird.f32 %v8105_v31  ;;  %v4293_v12 = vmul.f32 -1.442695, %v8138_v55  ;;  %vm8171_vm5 = vcmp.eq.f32.partialorder %v2397_v62, 8.507059e+37 }
 0x24b   : > { %v1916_v50 = vsel %vm1915_vm3, %v5266_v60, %v1912_v6  ;;  %v2400_v26 = vor.u32 1.1754944e-38, %v2399_v56  ;;  %v2877_v49 = vand.u32 2147483647, %v8133_v36  ;;  %vm2873_vm6 = vweird.f32 %v8133_v36 }
 0x24c   : > { %v5276_v35 = vpop.eup %5275  ;;  %v1921_v40 = vsel %vm8115_vm0, %v1920_v15, %v1916_v50  ;;  %v2390_v25 = vsub.f32 1.0, %v2389_v47  ;;  %v2879_v39 = vand.u32 2147483648, %v8133_v36  ;;  %5283 = vpow2.f32 %v4356_v59 }
 0x24d   : > { %v5278_v0 = vpop.eup %5277  ;;  %v3534_v10 = vmul.f32 %v1921_v40, %v7909_v4  ;;  %vm3353_vm7 = vweird.f32 %v8135_v8  ;;  %v3357_v54 = vand.u32 2147483647, %v8135_v8  ;;  %v3359_v11 = vand.u32 2147483648, %v8135_v8 }
 0x24e   : > { %v8184_v14 = vadd.f32 1.0, %v5276_v35  ;;  %v5280_v16 = vpop.eup %5279  ;;  %v2391_v41 = vmul.f32 %v5274_v34, %v2390_v25  ;;  %vm2394_vm8 = vweird.f32 %v5274_v34  ;;  %v2869_v57 = vmul.f32 %v5278_v0, %v8133_v36 }
 0x24f   : > { %5285 = vpow2.f32 %v4388_v37  ;;  %v8187_v45 = vpop.eup %5281  ;;  %v4529_v23 = vpack.c.bf16 %v3534_v10, %v8090_v51  ;;  %vm8190_vm9 = vcmp.eq.f32.partialorder %v2877_v49, 8.507059e+37  ;;  %v3349_v60 = vmul.f32 %v5280_v16, %v8135_v8  ;;  %vm2395_vm10 = vmor %vm2393_vm4, %vm2394_vm8 }
 0x250   : > { %5287 = vrcp.f32 %v8184_v14  ;;  %v2392_v52 = vadd.f32 %v5274_v34, %v2391_v41  ;;  %v2870_v38 = vsub.f32 1.0, %v2869_v57  ;;  %v2880_v18 = vor.u32 1.1754944e-38, %v2879_v39 }
 0x251   : > { %v1924_v48 = vmul.f32 %v8187_v45, %v8143_v3  ;;  %4805 = vst [vmem:[%s5897_s4 + $0x50] sm:$0xff] %v4529_v23   ;;  %v3350_v7 = vsub.f32 1.0, %v3349_v60  ;;  %vm8201_vm11 = vcmp.eq.f32.partialorder %v3357_v54, 8.507059e+37  ;;  %v3360_v28 = vor.u32 1.1754944e-38, %v3359_v11  ;;  %v8258_v54 = vld [vmem:[%s9255_s2] ss:$0 sm:$0xff] }
 0x252   : > { %vm1928_vm12 = vweird.f32 %v8143_v3  ;;  %v5284_v32 = vpop.eup %5283  ;;  %v2396_v13 = vsel %vm2395_vm10, %v5274_v34, %v2392_v52  ;;  %v2871_v33 = vmul.f32 %v5278_v0, %v2870_v38  ;;  %vm2874_vm13 = vweird.f32 %v5278_v0  ;;  %v901_v38 = vpop.f32.mrf.mxu1 }
 0x253   : > { %v1925_v15 = vsub.f32 1.0, %v1924_v48  ;;  %v2401_v27 = vsel %vm8171_vm5, %v2400_v26, %v2396_v13  ;;  %v3351_v1 = vmul.f32 %v5280_v16, %v3350_v7  ;;  %vm3354_vm14 = vweird.f32 %v5280_v16  ;;  %vm2875_vm15 = vmor %vm2873_vm6, %vm2874_vm13  ;;  %v1058_v26 = vpop.f32.mrf.mxu3 }
 0x254   : > { %5289 = vpow2.f32 %v4293_v12  ;;  %v3566_v46 = vmul.f32 %v2401_v27, %v7964_v53  ;;  %v2872_v43 = vadd.f32 %v5278_v0, %v2871_v33  ;;  %v8210_v29 = vadd.f32 1.0, %v5284_v32  ;;  %vm3355_vm1 = vmor %vm3353_vm7, %vm3354_vm14 }
 0x255   : > { %v5286_v31 = vpop.eup %5285  ;;  %v1926_v42 = vmul.f32 %v8187_v45, %v1925_v15  ;;  %v3352_v62 = vadd.f32 %v5280_v16, %v3351_v1  ;;  %vm1929_vm0 = vweird.f32 %v8187_v45  ;;  %v1932_v56 = vand.u32 2147483647, %v8143_v3 }
 0x256   : > { %v8212_v63 = vpop.eup %5287  ;;  %v1934_v59 = vand.u32 2147483648, %v8143_v3  ;;  %v4609_v53 = vpack.c.bf16 %v3566_v46, %v8098_v44  ;;  %v2876_v34 = vsel %vm2875_vm15, %v5278_v0, %v2872_v43  ;;  %5291 = vrcp.f32 %v8210_v29  ;;  %vm8243_vm2 = vmor %vm1928_vm12, %vm1929_vm0 }
 0x257   : > { %v1927_v6 = vadd.f32 %v8187_v45, %v1926_v42  ;;  %v2404_v36 = vmul.f32 %v8212_v63, %v8184_v14  ;;  %v2881_v37 = vsel %vm8190_vm9, %v2880_v18, %v2876_v34  ;;  %v3356_v47 = vsel %vm3355_vm1, %v5280_v16, %v3352_v62  ;;  %v981_v18 = vpop.f32.mrf.mxu2 }
 0x258   : > { %v8229_v12 = vadd.f32 1.0, %v5286_v31  ;;  %4821 = vst [vmem:[%s5897_s4 + $0xd0] sm:$0xff] %v4609_v53   ;;  %v3598_v44 = vmul.f32 %v2881_v37, %v8031_v24  ;;  %v3361_v8 = vsel %vm8201_vm11, %v3360_v28, %v3356_v47  ;;  %v2412_v58 = vand.u32 2147483647, %v8184_v14 }
 0x259   : > { %v2405_v50 = vsub.f32 1.0, %v2404_v36  ;;  %v3629_v35 = vmul.f32 %v8163_v2, %v7875_v22  ;;  %v3630_v40 = vmul.f32 %v3361_v8, %v8040_v17  ;;  %v4325_v25 = vmul.f32 -1.442695, %v8154_v19  ;;  %v821_v2 = vpop.f32.mrf.mxu0 }
 0x25a   : > { %v5290_v49 = vpop.eup %5289  ;;  %v4689_v39 = vpack.c.bf16 %v3598_v44, %v8149_v30  ;;  %v1931_v0 = vsel %vm8243_vm2, %v8187_v45, %v1927_v6  ;;  %v2414_v17 = vand.u32 2147483648, %v8184_v14  ;;  %v1935_v3 = vor.u32 1.1754944e-38, %v1934_v59 }
 0x25b   : > { %v2406_v22 = vmul.f32 %v8212_v63, %v2405_v50  ;;  %v4769_v10 = vpack.c.bf16 %v3630_v40, %v3629_v35  ;;  %5293 = vrcp.f32 %v8229_v12  ;;  %v8261_v30 = vadd.f32 %v8258_v54, %v1058_v26  ;;  %v1061_v26 = vpop.f32.mrf.mxu3 }
 0x25c   : > { %4837 = vst [vmem:[%s5897_s4 + $0x150] sm:$0xff] %v4689_v39   ;;  %vm1933_vm3 = vcmp.eq.f32.partialorder %v1932_v56, 8.507059e+37  ;;  %vm2408_vm4 = vweird.f32 %v8184_v14  ;;  %vm8265_vm5 = vcmp.eq.f32.partialorder %v2412_v58, 8.507059e+37  ;;  %v4357_v16 = vmul.f32 -1.442695, %v8159_v5  ;;  %v8270_v41 = vpop.eup %5291 }
 0x25d   : > { %4853 = vst [vmem:[%s5897_s4 + $0x1d0] sm:$0xff] %v4769_v10   ;;  %v1936_v57 = vsel %vm1933_vm3, %v1935_v3, %v1931_v0  ;;  %v8273_v45 = vadd.f32 1.0, %v5290_v49  ;;  %5295 = vpow2.f32 %v4325_v25  ;;  %v8276_v23 = vadd.f32 %v8258_v54, %v821_v2 }
 0x25e   : > { %v2407_v4 = vadd.f32 %v8212_v63, %v2406_v22  ;;  %vm2409_vm6 = vweird.f32 %v8212_v63  ;;  %v2415_v60 = vor.u32 1.1754944e-38, %v2414_v17  ;;  %v2884_v52 = vmul.f32 %v8270_v41, %v8210_v29 }
 0x25f   : > { %vm2888_vm7 = vweird.f32 %v8210_v29  ;;  %v2892_v48 = vand.u32 2147483647, %v8210_v29  ;;  %5297 = vrcp.f32 %v8273_v45  ;;  %v4389_v7 = vmul.f32 -1.442695, %v8261_v30  ;;  %vm8295_vm8 = vmor %vm2408_vm4, %vm2409_vm6 }
 0x260   : > { %v8287_v51 = vmul.f32 %v1936_v57, %v8056_v61  ;;  %v2885_v28 = vsub.f32 1.0, %v2884_v52  ;;  %v2894_v32 = vand.u32 2147483648, %v8210_v29  ;;  %v3372_v13 = vand.u32 2147483647, %v8229_v12 }
 0x261   : > { %v8291_v33 = vpop.eup %5293  ;;  %5299 = vpow2.f32 %v4357_v16  ;;  %v4294_v27 = vmul.f32 -1.442695, %v8276_v23  ;;  %v8301_v1 = vadd.f32 %v8258_v54, %v901_v38  ;;  %v8304_v61 = vadd.f32 %v8258_v54, %v981_v18  ;;  %v823_v11 = vpop.f32.mrf.mxu0 }
 0x262   : > { %v2411_v31 = vsel %vm8295_vm8, %v8212_v63, %v2407_v4  ;;  %v2886_v46 = vmul.f32 %v8270_v41, %v2885_v28  ;;  %v3364_v14 = vmul.f32 %v8291_v33, %v8229_v12  ;;  %v3374_v43 = vand.u32 2147483648, %v8229_v12  ;;  %v903_v16 = vpop.f32.mrf.mxu1 }
 0x263   : > { %v5296_v42 = vpop.eup %5295  ;;  %vm2889_vm9 = vweird.f32 %v8270_v41  ;;  %vm8314_vm10 = vcmp.eq.f32.partialorder %v2892_v48, 8.507059e+37  ;;  %5301 = vpow2.f32 %v4389_v7  ;;  %v4326_v56 = vmul.f32 -1.442695, %v8301_v1 }
 0x264   : > { %v2887_v59 = vadd.f32 %v8270_v41, %v2886_v46  ;;  %v3365_v63 = vsub.f32 1.0, %v3364_v14  ;;  %vm3368_vm11 = vweird.f32 %v8229_v12  ;;  %v8321_v53 = vadd.f32 1.0, %v5296_v42  ;;  %vm8328_vm12 = vmor %vm2888_vm7, %vm2889_vm9 }
 0x265   : > { %v5298_v34 = vpop.eup %5297  ;;  %v2416_v6 = vsel %vm8265_vm5, %v2415_v60, %v2411_v31  ;;  %v2895_v36 = vor.u32 1.1754944e-38, %v2894_v32  ;;  %5303 = vpow2.f32 %v4294_v27  ;;  %v4358_v37 = vmul.f32 -1.442695, %v8304_v61 }
 0x266   : > { %v3366_v44 = vmul.f32 %v8291_v33, %v3365_v63  ;;  %vm8333_vm13 = vcmp.eq.f32.partialorder %v3372_v13, 8.507059e+37  ;;  %v3375_v50 = vor.u32 1.1754944e-38, %v3374_v43  ;;  %v1939_v58 = vmul.f32 %v5298_v34, %v8273_v45 }
 0x267   : > { %5305 = vpow2.f32 %v4326_v56  ;;  %v5300_v49 = vpop.eup %5299  ;;  %v2891_v29 = vsel %vm8328_vm12, %v8270_v41, %v2887_v59  ;;  %vm1943_vm14 = vweird.f32 %v8273_v45  ;;  %v1947_v35 = vand.u32 2147483647, %v8273_v45 }
 0x268   : > { %5307 = vrcp.f32 %v8321_v53  ;;  %v3367_v40 = vadd.f32 %v8291_v33, %v3366_v44  ;;  %vm3369_vm15 = vweird.f32 %v8291_v33  ;;  %v1940_v24 = vsub.f32 1.0, %v1939_v58 }
 0x269   : > { %v1949_v25 = vand.u32 2147483648, %v8273_v45  ;;  %v5302_v39 = vpop.eup %5301  ;;  %vm1944_vm0 = vweird.f32 %v5298_v34  ;;  %v8347_v0 = vadd.f32 1.0, %v5300_v49  ;;  %5309 = vpow2.f32 %v4358_v37  ;;  %vm8364_vm1 = vmor %vm3368_vm11, %vm3369_vm15 }
 0x26a   : > { %v8350_v22 = vadd.f32 %v8258_v54, %v1061_v26  ;;  %v2896_v17 = vsel %vm8314_vm10, %v2895_v36, %v2891_v29  ;;  %v1941_v2 = vmul.f32 %v5298_v34, %v1940_v24  ;;  %v2427_v10 = vand.u32 2147483647, %v8321_v53  ;;  %vm1945_vm3 = vmor %vm1943_vm14, %vm1944_vm0 }
 0x26b   : > { %v8355_v3 = vadd.f32 1.0, %v5302_v39  ;;  %v5304_v41 = vpop.eup %5303  ;;  %v8358_v57 = vmul.f32 %v2416_v6, %v8087_v21  ;;  %vm8368_vm2 = vcmp.eq.f32.partialorder %v1947_v35, 8.507059e+37  ;;  %v2429_v52 = vand.u32 2147483648, %v8321_v53 }
 0x26c   : > { %5311 = vrcp.f32 %v8347_v0  ;;  %v3371_v21 = vsel %vm8364_vm1, %v8291_v33, %v3367_v40  ;;  %v1942_v18 = vadd.f32 %v5298_v34, %v1941_v2  ;;  %v1950_v48 = vor.u32 1.1754944e-38, %v1949_v25 }
 0x26d   : > { %v5306_v38 = vpop.eup %5305  ;;  %5313 = vrcp.f32 %v8355_v3  ;;  %v8379_v7 = vmul.f32 %v2896_v17, %v8120_v20  ;;  %vm2423_vm4 = vweird.f32 %v8321_v53  ;;  %v8386_v28 = vadd.f32 %v8258_v54, %v823_v11 }
 0x26e   : > { %v5308_v12 = vpop.eup %5307  ;;  %v8389_v32 = vadd.f32 %v8258_v54, %v903_v16  ;;  %v1946_v13 = vsel %vm1945_vm3, %v5298_v34, %v1942_v18  ;;  %vm8392_vm5 = vcmp.eq.f32.partialorder %v2427_v10, 8.507059e+37  ;;  %v4390_v20 = vmul.f32 -1.442695, %v8350_v22 }
 0x26f   : > { %v2419_v33 = vmul.f32 %v5308_v12, %v8321_v53  ;;  %v5310_v27 = vpop.eup %5309  ;;  %v3376_v45 = vsel %vm8333_vm13, %v3375_v50, %v3371_v21  ;;  %v1951_v31 = vsel %vm8368_vm2, %v1950_v48, %v1946_v13  ;;  %v2430_v46 = vor.u32 1.1754944e-38, %v2429_v52 }
 0x270   : > { %v8401_v14 = vadd.f32 1.0, %v5304_v41  ;;  %v3536_v43 = vmul.f32 %v1951_v31, %v8138_v55  ;;  %v2907_v62 = vand.u32 2147483647, %v8347_v0  ;;  %v8405_v56 = vadd.f32 1.0, %v5306_v38  ;;  %v1063_v31 = vpop.f32.mrf.mxu3 }
 0x271   : > { %v2420_v42 = vsub.f32 1.0, %v2419_v33  ;;  %v2909_v63 = vand.u32 2147483648, %v8347_v0  ;;  %v3387_v34 = vand.u32 2147483647, %v8355_v3  ;;  %v8410_v6 = vadd.f32 1.0, %v5310_v27  ;;  %v983_v33 = vpop.f32.mrf.mxu2 }
 0x272   : > { %v5312_v59 = vpop.eup %5311  ;;  %5315 = vrcp.f32 %v8401_v14  ;;  %v4534_v37 = vpack.c.bf16 %v3536_v43, %v8287_v51  ;;  %vm2424_vm6 = vweird.f32 %v5308_v12  ;;  %v8415_v44 = vmul.f32 %v3376_v45, %v8123_v9 }
 0x273   : > { %v5314_v36 = vpop.eup %5313  ;;  %v2421_v47 = vmul.f32 %v5308_v12, %v2420_v42  ;;  %v2899_v55 = vmul.f32 %v5312_v59, %v8347_v0  ;;  %vm2903_vm7 = vweird.f32 %v8347_v0  ;;  %v3389_v50 = vand.u32 2147483648, %v8355_v3  ;;  %vm2425_vm9 = vmor %vm2423_vm4, %vm2424_vm6 }
 0x274   : > { %v3379_v8 = vmul.f32 %v5314_v36, %v8355_v3  ;;  %4806 = vst [vmem:[%s5897_s4 + $0x58] sm:$0xff] %v4534_v37   ;;  %vm8421_vm8 = vcmp.eq.f32.partialorder %v2907_v62, 8.507059e+37  ;;  %5317 = vrcp.f32 %v8405_v56  ;;  %v2910_v9 = vor.u32 1.1754944e-38, %v2909_v63  ;;  %v826_v37 = vpop.f32.mrf.mxu0 }
 0x275   : > { %v2422_v58 = vadd.f32 %v5308_v12, %v2421_v47  ;;  %v2900_v26 = vsub.f32 1.0, %v2899_v55  ;;  %vm3383_vm10 = vweird.f32 %v8355_v3  ;;  %5319 = vrcp.f32 %v8410_v6 }
 0x276   : > { %v3380_v51 = vsub.f32 1.0, %v3379_v8  ;;  %vm2904_vm11 = vweird.f32 %v5312_v59  ;;  %vm8430_vm12 = vcmp.eq.f32.partialorder %v3387_v34, 8.507059e+37  ;;  %vm3384_vm13 = vweird.f32 %v5314_v36 }
 0x277   : > { %v2426_v29 = vsel %vm2425_vm9, %v5308_v12, %v2422_v58  ;;  %v2901_v35 = vmul.f32 %v5312_v59, %v2900_v26  ;;  %v3390_v39 = vor.u32 1.1754944e-38, %v3389_v50  ;;  %vm1958_vm14 = vweird.f32 %v8401_v14  ;;  %vm2905_vm15 = vmor %vm2903_vm7, %vm2904_vm11 }
 0x278   : > { %v8434_v24 = vpop.eup %5315  ;;  %v2431_v25 = vsel %vm8392_vm5, %v2430_v46, %v2426_v29  ;;  %v3381_v53 = vmul.f32 %v5314_v36, %v3380_v51  ;;  %v1962_v16 = vand.u32 2147483647, %v8401_v14  ;;  %v1964_v41 = vand.u32 2147483648, %v8401_v14  ;;  %vm3385_vm0 = vmor %vm3383_vm10, %vm3384_vm13 }
 0x279   : > { %v3568_v17 = vmul.f32 %v2431_v25, %v8154_v19  ;;  %v2902_v2 = vadd.f32 %v5312_v59, %v2901_v35  ;;  %v1954_v10 = vmul.f32 %v8434_v24, %v8401_v14  ;;  %5321 = vpow2.f32 %v4390_v20  ;;  %v906_v35 = vpop.f32.mrf.mxu1 }
 0x27a   : > { %v3382_v11 = vadd.f32 %v5314_v36, %v3381_v53  ;;  %v8446_v4 = vpop.eup %5317  ;;  %v4295_v38 = vmul.f32 -1.442695, %v8386_v28  ;;  %vm2438_vm1 = vweird.f32 %v8405_v56  ;;  %v2442_v27 = vand.u32 2147483647, %v8405_v56 }
 0x27b   : > { %v4614_v19 = vpack.c.bf16 %v3568_v17, %v8358_v57  ;;  %v2906_v60 = vsel %vm2905_vm15, %v5312_v59, %v2902_v2  ;;  %v1955_v52 = vsub.f32 1.0, %v1954_v10  ;;  %v8452_v0 = vpop.eup %5319  ;;  %v2434_v48 = vmul.f32 %v8446_v4, %v8405_v56 }
 0x27c   : > { %v2911_v21 = vsel %vm8421_vm8, %v2910_v9, %v2906_v60  ;;  %v3386_v18 = vsel %vm3385_vm0, %v5314_v36, %v3382_v11  ;;  %v2914_v13 = vmul.f32 %v8452_v0, %v8410_v6  ;;  %v2444_v45 = vand.u32 2147483648, %v8405_v56 }
 0x27d   : > { %4822 = vst [vmem:[%s5897_s4 + $0xd8] sm:$0xff] %v4614_v19   ;;  %v3600_v57 = vmul.f32 %v2911_v21, %v8159_v5  ;;  %v3391_v3 = vsel %vm8430_vm12, %v3390_v39, %v3386_v18  ;;  %v1956_v12 = vmul.f32 %v8434_v24, %v1955_v52  ;;  %v2435_v20 = vsub.f32 1.0, %v2434_v48 }
 0x27e   : > { %v3632_v15 = vmul.f32 %v3391_v3, %v8261_v30  ;;  %vm1959_vm2 = vweird.f32 %v8434_v24  ;;  %v2915_v46 = vsub.f32 1.0, %v2914_v13  ;;  %5323 = vpow2.f32 %v4295_v38  ;;  %v1066_v3 = vpop.f32.mrf.mxu3 }
 0x27f   : > { %v4694_v5 = vpack.c.bf16 %v3600_v57, %v8379_v7  ;;  %v5322_v43 = vpop.eup %5321  ;;  %v2436_v62 = vmul.f32 %v8446_v4, %v2435_v20  ;;  %v4327_v30 = vmul.f32 -1.442695, %v8389_v32  ;;  %v8475_v59 = vadd.f32 %v8258_v54, %v983_v33  ;;  %vm8496_vm5 = vmor %vm1958_vm14, %vm1959_vm2 }
 0x280   : > { %v4774_v42 = vpack.c.bf16 %v3632_v15, %v8415_v44  ;;  %v1957_v63 = vadd.f32 %v8434_v24, %v1956_v12  ;;  %v2916_v34 = vmul.f32 %v8452_v0, %v2915_v46  ;;  %v8480_v7 = vadd.f32 1.0, %v5322_v43  ;;  %v828_v12 = vpop.f32.mrf.mxu0 }
 0x281   : > { %4838 = vst [vmem:[%s5897_s4 + $0x158] sm:$0xff] %v4694_v5   ;;  %v8483_v36 = vadd.f32 %v8258_v54, %v1063_v31  ;;  %v2437_v47 = vadd.f32 %v8446_v4, %v2436_v62  ;;  %vm2439_vm3 = vweird.f32 %v8446_v4  ;;  %5325 = vpow2.f32 %v4327_v30 }
 0x282   : > { %4854 = vst [vmem:[%s5897_s4 + $0x1d8] sm:$0xff] %v4774_v42   ;;  %v4359_v55 = vmul.f32 -1.442695, %v8475_v59  ;;  %v2917_v44 = vadd.f32 %v8452_v0, %v2916_v34  ;;  %vm2919_vm4 = vweird.f32 %v8452_v0  ;;  %5327 = vrcp.f32 %v8480_v7  ;;  %vm8511_vm8 = vmor %vm2438_vm1, %vm2439_vm3 }
 0x283   : > { %vm8500_vm6 = vcmp.eq.f32.partialorder %v1962_v16, 8.507059e+37  ;;  %vm2918_vm7 = vweird.f32 %v8410_v6  ;;  %v2924_v58 = vand.u32 2147483648, %v8410_v6  ;;  %v1961_v49 = vsel %vm8496_vm5, %v8434_v24, %v1957_v63 }
 0x284   : > { %5329 = vpow2.f32 %v4359_v55  ;;  %v5324_v26 = vpop.eup %5323  ;;  %v2922_v9 = vand.u32 2147483647, %v8410_v6  ;;  %v4391_v51 = vmul.f32 -1.442695, %v8483_v36  ;;  %v8518_v29 = vadd.f32 %v8258_v54, %v826_v37  ;;  %vm8525_vm10 = vmor %vm2918_vm7, %vm2919_vm4 }
 0x285   : > { %v1965_v40 = vor.u32 1.1754944e-38, %v1964_v41  ;;  %v2441_v25 = vsel %vm8511_vm8, %v8446_v4, %v2437_v47  ;;  %vm2443_vm9 = vcmp.eq.f32.partialorder %v2442_v27, 8.507059e+37  ;;  %v2445_v24 = vor.u32 1.1754944e-38, %v2444_v45 }
 0x286   : > { %v2921_v6 = vsel %vm8525_vm10, %v8452_v0, %v2917_v44  ;;  %v8532_v53 = vadd.f32 1.0, %v5324_v26  ;;  %5331 = vpow2.f32 %v4391_v51  ;;  %v4296_v39 = vmul.f32 -1.442695, %v8518_v29  ;;  %v986_v0 = vpop.f32.mrf.mxu2 }
 0x287   : > { %v5326_v17 = vpop.eup %5325  ;;  %v1966_v2 = vsel %vm8500_vm6, %v1965_v40, %v1961_v49  ;;  %v2925_v10 = vor.u32 1.1754944e-38, %v2924_v58  ;;  %v3404_v11 = vand.u32 2147483648, %v8480_v7  ;;  %v8539_v16 = vadd.f32 %v8258_v54, %v906_v35 }
 0x288   : > { %v8541_v41 = vpop.eup %5327  ;;  %v2446_v4 = vsel %vm2443_vm9, %v2445_v24, %v2441_v25  ;;  %vm2923_vm11 = vcmp.eq.f32.partialorder %v2922_v9, 8.507059e+37  ;;  %5333 = vrcp.f32 %v8532_v53  ;;  %v8546_v38 = vadd.f32 1.0, %v5326_v17 }
 0x289   : > { %v2926_v60 = vsel %vm2923_vm11, %v2925_v10, %v2921_v6  ;;  %v3394_v52 = vmul.f32 %v8541_v41, %v8480_v7  ;;  %5335 = vpow2.f32 %v4296_v39  ;;  %v8549_v21 = vmul.f32 %v1966_v2, %v8276_v23 }
 0x28a   : > { %v5330_v19 = vpop.eup %5329  ;;  %v3402_v18 = vand.u32 2147483647, %v8480_v7  ;;  %v4328_v57 = vmul.f32 -1.442695, %v8539_v16  ;;  %v8556_v13 = vmul.f32 %v2446_v4, %v8301_v1  ;;  %v8558_v33 = vor.u32 1.1754944e-38, %v3404_v11 }
 0x28b   : > { %v8552_v48 = vadd.f32 1.0, %v5330_v19  ;;  %v1977_v15 = vand.u32 2147483647, %v8532_v53  ;;  %5337 = vrcp.f32 %v8546_v38  ;;  %v8563_v23 = vmul.f32 %v2926_v60, %v8304_v61 }
 0x28c   : > { %v5332_v20 = vpop.eup %5331  ;;  %v3395_v27 = vsub.f32 1.0, %v3394_v52  ;;  %v1979_v45 = vand.u32 2147483648, %v8532_v53  ;;  %v8570_v1 = vadd.f32 %v8258_v54, %v986_v0  ;;  %v8573_v5 = vadd.f32 %v8258_v54, %v1066_v3 }
 0x28d   : > { %5339 = vrcp.f32 %v8552_v48  ;;  %v8567_v31 = vadd.f32 1.0, %v5332_v20  ;;  %v8576_v46 = vadd.f32 %v8258_v54, %v828_v12  ;;  %vm3398_vm12 = vweird.f32 %v8480_v7 }
 0x28e   : > { %v5334_v43 = vpop.eup %5333  ;;  %vm1973_vm13 = vweird.f32 %v8532_v53  ;;  %v2457_v61 = vand.u32 2147483647, %v8546_v38  ;;  %v2459_v42 = vand.u32 2147483648, %v8546_v38  ;;  %5341 = vpow2.f32 %v4328_v57  ;;  %v988_v14 = vpop.f32.mrf.mxu2 }
 0x28f   : > { %v5336_v62 = vpop.eup %5335  ;;  %vm3399_vm14 = vweird.f32 %v8541_v41  ;;  %v1969_v30 = vmul.f32 %v5334_v43, %v8532_v53  ;;  %vm8584_vm15 = vcmp.eq.f32.partialorder %v1977_v15, 8.507059e+37  ;;  %v2937_v34 = vand.u32 2147483647, %v8552_v48 }
 0x290   : > { %v3396_v37 = vmul.f32 %v8541_v41, %v3395_v27  ;;  %v1980_v47 = vor.u32 1.1754944e-38, %v1979_v45  ;;  %v2939_v55 = vand.u32 2147483648, %v8552_v48  ;;  %5343 = vrcp.f32 %v8567_v31  ;;  %vm8623_vm9 = vmor %vm3398_vm12, %vm3399_vm14 }
 0x291   : > { %v5338_v44 = vpop.eup %5337  ;;  %v1970_v8 = vsub.f32 1.0, %v1969_v30  ;;  %vm2453_vm0 = vweird.f32 %v8546_v38  ;;  %v8593_v50 = vadd.f32 1.0, %v5336_v62  ;;  %v4360_v58 = vmul.f32 -1.442695, %v8570_v1 }
 0x292   : > { %v2449_v49 = vmul.f32 %v5338_v44, %v8546_v38  ;;  %vm8597_vm1 = vcmp.eq.f32.partialorder %v2457_v61, 8.507059e+37  ;;  %v2460_v9 = vor.u32 1.1754944e-38, %v2459_v42  ;;  %vm2933_vm2 = vweird.f32 %v8552_v48 }
 0x293   : > { %v5340_v26 = vpop.eup %5339  ;;  %vm8602_vm3 = vcmp.eq.f32.partialorder %v3402_v18, 8.507059e+37  ;;  %v1971_v35 = vmul.f32 %v5334_v43, %v1970_v8  ;;  %vm1974_vm4 = vweird.f32 %v5334_v43  ;;  %vm8607_vm5 = vcmp.eq.f32.partialorder %v2937_v34, 8.507059e+37 }
 0x294   : > { %v2929_v40 = vmul.f32 %v5340_v26, %v8552_v48  ;;  %v5342_v24 = vpop.eup %5341  ;;  %v3397_v56 = vadd.f32 %v8541_v41, %v3396_v37  ;;  %v2450_v6 = vsub.f32 1.0, %v2449_v49  ;;  %v2940_v39 = vor.u32 1.1754944e-38, %v2939_v55  ;;  %vm1975_vm7 = vmor %vm1973_vm13, %vm1974_vm4  ;;  %v908_v37 = vpop.f32.mrf.mxu1 }
 0x295   : > { %5345 = vrcp.f32 %v8593_v50  ;;  %v1972_v17 = vadd.f32 %v5334_v43, %v1971_v35  ;;  %vm3413_vm6 = vweird.f32 %v8567_v31  ;;  %vm2454_vm8 = vweird.f32 %v5338_v44 }
 0x296   : > { %v2930_v2 = vsub.f32 1.0, %v2929_v40  ;;  %5347 = vpow2.f32 %v4360_v58  ;;  %v5344_v10 = vpop.eup %5343  ;;  %v2451_v11 = vmul.f32 %v5338_v44, %v2450_v6  ;;  %v3417_v4 = vand.u32 2147483647, %v8567_v31  ;;  %vm2455_vm11 = vmor %vm2453_vm0, %vm2454_vm8 }
 0x297   : > { %v8617_v19 = vadd.f32 1.0, %v5342_v24  ;;  %v1976_v52 = vsel %vm1975_vm7, %v5334_v43, %v1972_v17  ;;  %vm2934_vm10 = vweird.f32 %v5340_v26  ;;  %v3409_v53 = vmul.f32 %v5344_v10, %v8567_v31 }
 0x298   : > { %v2931_v0 = vmul.f32 %v5340_v26, %v2930_v2  ;;  %v3401_v18 = vsel %vm8623_vm9, %v8541_v41, %v3397_v56  ;;  %v1981_v57 = vsel %vm8584_vm15, %v1980_v47, %v1976_v52  ;;  %v2452_v3 = vadd.f32 %v5338_v44, %v2451_v11  ;;  %vm2935_vm12 = vmor %vm2933_vm2, %vm2934_vm10  ;;  %v831_v11 = vpop.f32.mrf.mxu0 }
 0x299   : > { %v3419_v12 = vand.u32 2147483648, %v8567_v31  ;;  %v3538_v7 = vmul.f32 %v1981_v57, %v8386_v28  ;;  %v3410_v20 = vsub.f32 1.0, %v3409_v53  ;;  %5349 = vrcp.f32 %v8617_v19 }
 0x29a   : > { %v2932_v15 = vadd.f32 %v5340_v26, %v2931_v0  ;;  %v2456_v45 = vsel %vm2455_vm11, %v5338_v44, %v2452_v3  ;;  %vm3414_vm13 = vweird.f32 %v5344_v10  ;;  %v4392_v41 = vmul.f32 -1.442695, %v8573_v5 }
 0x29b   : > { %v8638_v27 = vpop.eup %5345  ;;  %v4297_v43 = vmul.f32 -1.442695, %v8576_v46  ;;  %v4539_v38 = vpack.c.bf16 %v3538_v7, %v8549_v21  ;;  %v2461_v61 = vsel %vm8597_vm1, %v2460_v9, %v2456_v45  ;;  %v3411_v62 = vmul.f32 %v5344_v10, %v3410_v20  ;;  %vm3415_vm15 = vmor %vm3413_vm6, %vm3414_vm13 }
 0x29c   : > { %v5348_v28 = vpop.eup %5347  ;;  %v2936_v42 = vsel %vm2935_vm12, %v5340_v26, %v2932_v15  ;;  %v3406_v30 = vsel %vm8602_vm3, %v8558_v33, %v3401_v18  ;;  %v3570_v48 = vmul.f32 %v2461_v61, %v8389_v32  ;;  %v1984_v34 = vmul.f32 %v8638_v27, %v8593_v50  ;;  %v911_v20 = vpop.f32.mrf.mxu1 }
 0x29d   : > { %v2941_v63 = vsel %vm8607_vm5, %v2940_v39, %v2936_v42  ;;  %4807 = vst [vmem:[%s5897_s4 + $0x60] sm:$0xff] %v4539_v38   ;;  %v3412_v47 = vadd.f32 %v5344_v10, %v3411_v62  ;;  %vm3418_vm14 = vcmp.eq.f32.partialorder %v3417_v4, 8.507059e+37  ;;  %v3420_v55 = vor.u32 1.1754944e-38, %v3419_v12 }
 0x29e   : > { %v3602_v21 = vmul.f32 %v2941_v63, %v8475_v59  ;;  %v4619_v44 = vpack.c.bf16 %v3570_v48, %v8556_v13  ;;  %v1985_v32 = vsub.f32 1.0, %v1984_v34  ;;  %v8661_v33 = vadd.f32 1.0, %v5348_v28 }
 0x29f   : > { %5351 = vpow2.f32 %v4392_v41  ;;  %v8663_v8 = vpop.eup %5349  ;;  %v3416_v26 = vsel %vm3415_vm15, %v5344_v10, %v3412_v47  ;;  %v8667_v59 = vadd.f32 %v8258_v54, %v908_v37  ;;  %v3633_v9 = vmul.f32 %v3406_v30, %v8350_v22 }
 0x2a0   : > { %v4699_v58 = vpack.c.bf16 %v3602_v21, %v8563_v23  ;;  %5353 = vpow2.f32 %v4297_v43  ;;  %4823 = vst [vmem:[%s5897_s4 + $0xe0] sm:$0xff] %v4619_v44   ;;  %v3421_v13 = vsel %vm3418_vm14, %v3420_v55, %v3416_v26  ;;  %v1986_v49 = vmul.f32 %v8638_v27, %v1985_v32  ;;  %v1068_v23 = vpop.f32.mrf.mxu3 }
 0x2a1   : > { %v2464_v31 = vmul.f32 %v8663_v8, %v8617_v19  ;;  %v3634_v51 = vmul.f32 %v3421_v13, %v8483_v36  ;;  %5355 = vrcp.f32 %v8661_v33  ;;  %vm1988_vm0 = vweird.f32 %v8593_v50  ;;  %v991_v13 = vpop.f32.mrf.mxu2 }
 0x2a2   : > { %4839 = vst [vmem:[%s5897_s4 + $0x160] sm:$0xff] %v4699_v58   ;;  %v4329_v40 = vmul.f32 -1.442695, %v8667_v59  ;;  %v1987_v24 = vadd.f32 %v8638_v27, %v1986_v49  ;;  %vm1989_vm1 = vweird.f32 %v8638_v27  ;;  %v8682_v56 = vadd.f32 %v8258_v54, %v988_v14 }
 0x2a3   : > { %v2465_v35 = vsub.f32 1.0, %v2464_v31  ;;  %v4779_v25 = vpack.c.bf16 %v3634_v51, %v3633_v9  ;;  %v8686_v36 = vadd.f32 %v8258_v54, %v1068_v23  ;;  %v1992_v17 = vand.u32 2147483647, %v8593_v50  ;;  %vm8695_vm2 = vmor %vm1988_vm0, %vm1989_vm1 }
 0x2a4   : > { %5357 = vpow2.f32 %v4329_v40  ;;  %v1994_v2 = vand.u32 2147483648, %v8593_v50  ;;  %vm2468_vm3 = vweird.f32 %v8617_v19  ;;  %vm2469_vm4 = vweird.f32 %v8663_v8 }
 0x2a5   : > { %v5352_v22 = vpop.eup %5351  ;;  %v2466_v6 = vmul.f32 %v8663_v8, %v2465_v35  ;;  %4855 = vst [vmem:[%s5897_s4 + $0x1e0] sm:$0xff] %v4779_v25   ;;  %v2472_v60 = vand.u32 2147483647, %v8617_v19  ;;  %v1991_v53 = vsel %vm8695_vm2, %v8638_v27, %v1987_v24  ;;  %v4361_v18 = vmul.f32 -1.442695, %v8682_v56  ;;  %vm8724_vm6 = vmor %vm2468_vm3, %vm2469_vm4 }
 0x2a6   : > { %v5354_v39 = vpop.eup %5353  ;;  %v8691_v10 = vadd.f32 1.0, %v5352_v22  ;;  %v4393_v3 = vmul.f32 -1.442695, %v8686_v36  ;;  %v8717_v12 = vadd.f32 %v8258_v54, %v831_v11  ;;  %vm1993_vm5 = vcmp.eq.f32.partialorder %v1992_v17, 8.507059e+37 }
 0x2a7   : > { %v8702_v52 = vadd.f32 1.0, %v5354_v39  ;;  %v8704_v0 = vpop.eup %5355  ;;  %v2467_v50 = vadd.f32 %v8663_v8, %v2466_v6  ;;  %v1995_v7 = vor.u32 1.1754944e-38, %v1994_v2  ;;  %v2474_v15 = vand.u32 2147483648, %v8617_v19 }
 0x2a8   : > { %5359 = vrcp.f32 %v8691_v10  ;;  %v2944_v57 = vmul.f32 %v8704_v0, %v8661_v33  ;;  %vm8728_vm7 = vcmp.eq.f32.partialorder %v2472_v60, 8.507059e+37  ;;  %v2952_v28 = vand.u32 2147483647, %v8661_v33 }
 0x2a9   : > { %5361 = vrcp.f32 %v8702_v52  ;;  %v2954_v38 = vand.u32 2147483648, %v8661_v33  ;;  %v1996_v61 = vsel %vm1993_vm5, %v1995_v7, %v1991_v53  ;;  %v2471_v42 = vsel %vm8724_vm6, %v8663_v8, %v2467_v50 }
 0x2aa   : > { %v5358_v27 = vpop.eup %5357  ;;  %v2945_v43 = vsub.f32 1.0, %v2944_v57  ;;  %5363 = vpow2.f32 %v4361_v18  ;;  %v4298_v30 = vmul.f32 -1.442695, %v8717_v12  ;;  %v8742_v48 = vadd.f32 %v8258_v54, %v911_v20  ;;  %v1071_v18 = vpop.f32.mrf.mxu3 }
 0x2ab   : > { %v8737_v62 = vadd.f32 1.0, %v5358_v27  ;;  %5365 = vpow2.f32 %v4393_v3  ;;  %v2475_v34 = vor.u32 1.1754944e-38, %v2474_v15  ;;  %vm2948_vm8 = vweird.f32 %v8661_v33  ;;  %v833_v27 = vpop.f32.mrf.mxu0 }
 0x2ac   : > { %v2946_v19 = vmul.f32 %v8704_v0, %v2945_v43  ;;  %v3434_v37 = vand.u32 2147483648, %v8691_v10  ;;  %v8750_v47 = vmul.f32 %v1996_v61, %v8518_v29  ;;  %vm8752_vm9 = vcmp.eq.f32.partialorder %v2952_v28, 8.507059e+37 }
 0x2ad   : > { %5367 = vrcp.f32 %v8737_v62  ;;  %v2955_v44 = vor.u32 1.1754944e-38, %v2954_v38  ;;  %v3432_v32 = vand.u32 2147483647, %v8691_v10  ;;  %v2476_v8 = vsel %vm8728_vm7, %v2475_v34, %v2471_v42 }
 0x2ae   : > { %v8744_v63 = vpop.eup %5359  ;;  %vm2949_vm10 = vweird.f32 %v8704_v0  ;;  %v2947_v29 = vadd.f32 %v8704_v0, %v2946_v19  ;;  %v2007_v49 = vand.u32 2147483647, %v8702_v52  ;;  %5369 = vpow2.f32 %v4298_v30 }
 0x2af   : > { %v5362_v21 = vpop.eup %5361  ;;  %v3424_v58 = vmul.f32 %v8744_v63, %v8691_v10  ;;  %v4330_v31 = vmul.f32 -1.442695, %v8742_v48  ;;  %v8766_v9 = vor.u32 1.1754944e-38, %v3434_v37  ;;  %vm2003_vm11 = vweird.f32 %v8702_v52  ;;  %vm8782_vm12 = vmor %vm2948_vm8, %vm2949_vm10 }
 0x2b0   : > { %v1999_v26 = vmul.f32 %v5362_v21, %v8702_v52  ;;  %v5364_v14 = vpop.eup %5363  ;;  %v2009_v23 = vand.u32 2147483648, %v8702_v52  ;;  %v8771_v40 = vmul.f32 %v2476_v8, %v8539_v16  ;;  %v8776_v24 = vadd.f32 %v8258_v54, %v991_v13 }
 0x2b1   : > { %v5366_v35 = vpop.eup %5365  ;;  %v8773_v25 = vadd.f32 1.0, %v5364_v14  ;;  %5371 = vpow2.f32 %v4330_v31  ;;  %v3425_v39 = vsub.f32 1.0, %v3424_v58  ;;  %vm2004_vm13 = vweird.f32 %v5362_v21 }
 0x2b2   : > { %v2000_v51 = vsub.f32 1.0, %v1999_v26  ;;  %v8786_v16 = vadd.f32 1.0, %v5366_v35  ;;  %v2951_v2 = vsel %vm8782_vm12, %v8704_v0, %v2947_v29  ;;  %vm8791_vm14 = vcmp.eq.f32.partialorder %v2007_v49, 8.507059e+37  ;;  %vm2005_vm0 = vmor %vm2003_vm11, %vm2004_vm13 }
 0x2b3   : > { %v5368_v22 = vpop.eup %5367  ;;  %5373 = vrcp.f32 %v8773_v25  ;;  %vm3428_vm15 = vweird.f32 %v8691_v10  ;;  %v2010_v60 = vor.u32 1.1754944e-38, %v2009_v23  ;;  %v2487_v53 = vand.u32 2147483647, %v8737_v62 }
 0x2b4   : > { %v2001_v17 = vmul.f32 %v5362_v21, %v2000_v51  ;;  %v2479_v4 = vmul.f32 %v5368_v22, %v8737_v62  ;;  %v2489_v50 = vand.u32 2147483648, %v8737_v62  ;;  %v5370_v57 = vpop.eup %5369  ;;  %vm2483_vm1 = vweird.f32 %v8737_v62 }
 0x2b5   : > { %5375 = vrcp.f32 %v8786_v16  ;;  %v4362_v3 = vmul.f32 -1.442695, %v8776_v24  ;;  %v2956_v7 = vsel %vm8752_vm9, %v2955_v44, %v2951_v2  ;;  %v3426_v15 = vmul.f32 %v8744_v63, %v3425_v39 }
 0x2b6   : > { %v2002_v33 = vadd.f32 %v5362_v21, %v2001_v17  ;;  %v2480_v0 = vsub.f32 1.0, %v2479_v4  ;;  %vm3429_vm2 = vweird.f32 %v8744_v63  ;;  %vm2484_vm3 = vweird.f32 %v5368_v22 }
 0x2b7   : > { %v5372_v45 = vpop.eup %5371  ;;  %v8812_v43 = vadd.f32 %v8258_v54, %v1071_v18  ;;  %vm8814_vm4 = vcmp.eq.f32.partialorder %v3432_v32, 8.507059e+37  ;;  %vm8819_vm5 = vcmp.eq.f32.partialorder %v2487_v53, 8.507059e+37  ;;  %v2490_v42 = vor.u32 1.1754944e-38, %v2489_v50  ;;  %vm2485_vm6 = vmor %vm2483_vm1, %vm2484_vm3 }
 0x2b8   : > { %v2006_v20 = vsel %vm2005_vm0, %v5362_v21, %v2002_v33  ;;  %v2481_v41 = vmul.f32 %v5368_v22, %v2480_v0  ;;  %v8823_v19 = vadd.f32 1.0, %v5370_v57  ;;  %v8825_v37 = vadd.f32 1.0, %v5372_v45  ;;  %vm8851_vm8 = vmor %vm3428_vm15, %vm3429_vm2 }
 0x2b9   : > { %v2011_v52 = vsel %vm8791_vm14, %v2010_v60, %v2006_v20  ;;  %v5374_v30 = vpop.eup %5373  ;;  %5377 = vpow2.f32 %v4362_v3  ;;  %v8828_v21 = vadd.f32 %v8258_v54, %v833_v27  ;;  %v8831_v55 = vmul.f32 %v2956_v7, %v8570_v1  ;;  %v913_v60 = vpop.f32.mrf.mxu1 }
 0x2ba   : > { %v3540_v38 = vmul.f32 %v2011_v52, %v8576_v46  ;;  %v2482_v34 = vadd.f32 %v5368_v22, %v2481_v41  ;;  %v3427_v46 = vadd.f32 %v8744_v63, %v3426_v15  ;;  %v2959_v32 = vmul.f32 %v5374_v30, %v8773_v25  ;;  %v8888_v15 = vld [vmem:[%s9255_s2] ss:$0 sm:$0xff] }
 0x2bb   : > { %v5376_v8 = vpop.eup %5375  ;;  %vm2963_vm7 = vweird.f32 %v8773_v25  ;;  %5379 = vrcp.f32 %v8823_v19  ;;  %v4394_v54 = vmul.f32 -1.442695, %v8812_v43  ;;  %v2969_v49 = vand.u32 2147483648, %v8773_v25 }
 0x2bc   : > { %v4544_v44 = vpack.c.bf16 %v3540_v38, %v8750_v47  ;;  %v2486_v58 = vsel %vm2485_vm6, %v5368_v22, %v2482_v34  ;;  %v2960_v26 = vsub.f32 1.0, %v2959_v32  ;;  %v2967_v47 = vand.u32 2147483647, %v8773_v25  ;;  %v993_v25 = vpop.f32.mrf.mxu2 }
 0x2bd   : > { %v2491_v1 = vsel %vm8819_vm5, %v2490_v42, %v2486_v58  ;;  %v3439_v62 = vmul.f32 %v5376_v8, %v8786_v16  ;;  %5381 = vrcp.f32 %v8825_v37  ;;  %v4299_v31 = vmul.f32 -1.442695, %v8828_v21 }
 0x2be   : > { %4808 = vst [vmem:[%s5897_s4 + $0x68] sm:$0xff] %v4544_v44   ;;  %v3572_v29 = vmul.f32 %v2491_v1, %v8667_v59  ;;  %v3431_v14 = vsel %vm8851_vm8, %v8744_v63, %v3427_v46  ;;  %v2961_v51 = vmul.f32 %v5374_v30, %v2960_v26  ;;  %vm2964_vm9 = vweird.f32 %v5374_v30 }
 0x2bf   : > { %v3440_v10 = vsub.f32 1.0, %v3439_v62  ;;  %v5378_v23 = vpop.eup %5377  ;;  %v3447_v22 = vand.u32 2147483647, %v8786_v16  ;;  %v3449_v59 = vand.u32 2147483648, %v8786_v16  ;;  %5383 = vpow2.f32 %v4394_v54  ;;  %vm2965_vm11 = vmor %vm2963_vm7, %vm2964_vm9 }
 0x2c0   : > { %v4624_v35 = vpack.c.bf16 %v3572_v29, %v8771_v40  ;;  %v2962_v6 = vadd.f32 %v5374_v30, %v2961_v51  ;;  %vm3444_vm10 = vweird.f32 %v5376_v8  ;;  %v8865_v17 = vadd.f32 1.0, %v5378_v23 }
 0x2c1   : > { %v3441_v39 = vmul.f32 %v5376_v8, %v3440_v10  ;;  %v8867_v2 = vpop.eup %5379  ;;  %v3436_v63 = vsel %vm8814_vm4, %v8766_v9, %v3431_v14  ;;  %v2970_v40 = vor.u32 1.1754944e-38, %v2969_v49  ;;  %vm3443_vm12 = vweird.f32 %v8786_v16 }
 0x2c2   : > { %4824 = vst [vmem:[%s5897_s4 + $0xe8] sm:$0xff] %v4624_v35   ;;  %5385 = vpow2.f32 %v4299_v31  ;;  %v2966_v11 = vsel %vm2965_vm11, %v5374_v30, %v2962_v6  ;;  %vm2968_vm13 = vcmp.eq.f32.partialorder %v2967_v47, 8.507059e+37  ;;  %v2014_v33 = vmul.f32 %v8867_v2, %v8823_v19  ;;  %vm3445_vm14 = vmor %vm3443_vm12, %vm3444_vm10 }
 0x2c3   : > { %v3442_v4 = vadd.f32 %v5376_v8, %v3441_v39  ;;  %v8878_v53 = vpop.eup %5381  ;;  %v2971_v50 = vsel %vm2968_vm13, %v2970_v40, %v2966_v11  ;;  %vm3448_vm15 = vcmp.eq.f32.partialorder %v3447_v22, 8.507059e+37  ;;  %v3450_v9 = vor.u32 1.1754944e-38, %v3449_v59 }
 0x2c4   : > { %5387 = vrcp.f32 %v8865_v17  ;;  %v3604_v16 = vmul.f32 %v2971_v50, %v8682_v56  ;;  %v2015_v57 = vsub.f32 1.0, %v2014_v33  ;;  %v2494_v0 = vmul.f32 %v8878_v53, %v8825_v37  ;;  %v916_v33 = vpop.f32.mrf.mxu1 }
 0x2c5   : > { %v3446_v18 = vsel %vm3445_vm14, %v5376_v8, %v3442_v4  ;;  %v5384_v3 = vpop.eup %5383  ;;  %v8891_v20 = vadd.f32 %v8888_v15, %v913_v60  ;;  %v3635_v27 = vmul.f32 %v3436_v63, %v8573_v5  ;;  %v8897_v52 = vadd.f32 %v8888_v15, %v993_v25  ;;  %v836_v8 = vpop.f32.mrf.mxu0 }
 0x2c6   : > { %v3451_v7 = vsel %vm3448_vm15, %v3450_v9, %v3446_v18  ;;  %v4704_v56 = vpack.c.bf16 %v3604_v16, %v8831_v55  ;;  %v8899_v28 = vadd.f32 1.0, %v5384_v3  ;;  %v2016_v61 = vmul.f32 %v8867_v2, %v2015_v57  ;;  %v1073_v55 = vpop.f32.mrf.mxu3 }
 0x2c7   : > { %v3636_v45 = vmul.f32 %v3451_v7, %v8686_v36  ;;  %v2495_v42 = vsub.f32 1.0, %v2494_v0  ;;  %v4331_v5 = vmul.f32 -1.442695, %v8891_v20  ;;  %v4363_v36 = vmul.f32 -1.442695, %v8897_v52  ;;  %v996_v7 = vpop.f32.mrf.mxu2 }
 0x2c8   : > { %v5386_v41 = vpop.eup %5385  ;;  %4840 = vst [vmem:[%s5897_s4 + $0x168] sm:$0xff] %v4704_v56   ;;  %5389 = vrcp.f32 %v8899_v28  ;;  %vm2018_vm0 = vweird.f32 %v8823_v19  ;;  %v2017_v46 = vadd.f32 %v8867_v2, %v2016_v61  ;;  %vm2019_vm1 = vweird.f32 %v8867_v2 }
 0x2c9   : > { %v4784_v38 = vpack.c.bf16 %v3636_v45, %v3635_v27  ;;  %v8903_v30 = vadd.f32 1.0, %v5386_v41  ;;  %v2496_v44 = vmul.f32 %v8878_v53, %v2495_v42  ;;  %v2022_v58 = vand.u32 2147483647, %v8823_v19  ;;  %vm8927_vm2 = vmor %vm2018_vm0, %vm2019_vm1 }
 0x2ca   : > { %v8905_v34 = vpop.eup %5387  ;;  %v2024_v54 = vand.u32 2147483648, %v8823_v19  ;;  %v2502_v1 = vand.u32 2147483647, %v8825_v37  ;;  %v2504_v26 = vand.u32 2147483648, %v8825_v37  ;;  %v8923_v47 = vadd.f32 %v8888_v15, %v1073_v55 }
 0x2cb   : > { %4856 = vst [vmem:[%s5897_s4 + $0x1e8] sm:$0xff] %v4784_v38   ;;  %5391 = vrcp.f32 %v8903_v30  ;;  %v2974_v32 = vmul.f32 %v8905_v34, %v8865_v17  ;;  %vm2498_vm3 = vweird.f32 %v8825_v37  ;;  %vm2499_vm4 = vweird.f32 %v8878_v53 }
 0x2cc   : > { %5393 = vpow2.f32 %v4331_v5  ;;  %v2984_v13 = vand.u32 2147483648, %v8865_v17  ;;  %v8935_v29 = vadd.f32 %v8888_v15, %v836_v8  ;;  %v2021_v31 = vsel %vm8927_vm2, %v8867_v2, %v2017_v46  ;;  %vm8956_vm8 = vmor %vm2498_vm3, %vm2499_vm4 }
 0x2cd   : > { %5395 = vpow2.f32 %v4363_v36  ;;  %v2497_v19 = vadd.f32 %v8878_v53, %v2496_v44  ;;  %v2975_v14 = vsub.f32 1.0, %v2974_v32  ;;  %v4395_v51 = vmul.f32 -1.442695, %v8923_v47  ;;  %v838_v45 = vpop.f32.mrf.mxu0 }
 0x2ce   : > { %v8937_v49 = vpop.eup %5389  ;;  %vm2023_vm5 = vcmp.eq.f32.partialorder %v2022_v58, 8.507059e+37  ;;  %v2025_v23 = vor.u32 1.1754944e-38, %v2024_v54  ;;  %vm8944_vm6 = vcmp.eq.f32.partialorder %v2502_v1, 8.507059e+37  ;;  %v4300_v22 = vmul.f32 -1.442695, %v8935_v29  ;;  %v1076_v8 = vpop.f32.mrf.mxu3 }
 0x2cf   : > { %v2505_v59 = vor.u32 1.1754944e-38, %v2504_v26  ;;  %vm2978_vm7 = vweird.f32 %v8865_v17  ;;  %v2982_v6 = vand.u32 2147483647, %v8865_v17  ;;  %v2985_v11 = vor.u32 1.1754944e-38, %v2984_v13 }
 0x2d0   : > { %v2026_v63 = vsel %vm2023_vm5, %v2025_v23, %v2021_v31  ;;  %v3454_v4 = vmul.f32 %v8937_v49, %v8899_v28  ;;  %5397 = vpow2.f32 %v4395_v51  ;;  %v2501_v50 = vsel %vm8956_vm8, %v8878_v53, %v2497_v19 }
 0x2d1   : > { %v5392_v10 = vpop.eup %5391  ;;  %v2976_v9 = vmul.f32 %v8905_v34, %v2975_v14  ;;  %v2037_v37 = vand.u32 2147483647, %v8903_v30  ;;  %v2039_v18 = vand.u32 2147483648, %v8903_v30  ;;  %5399 = vpow2.f32 %v4300_v22 }
 0x2d2   : > { %v2029_v39 = vmul.f32 %v5392_v10, %v8903_v30  ;;  %v5394_v2 = vpop.eup %5393  ;;  %vm8972_vm9 = vcmp.eq.f32.partialorder %v2982_v6, 8.507059e+37  ;;  %vm2034_vm10 = vweird.f32 %v5392_v10  ;;  %v8978_v53 = vadd.f32 %v8888_v15, %v916_v33 }
 0x2d3   : > { %v5396_v60 = vpop.eup %5395  ;;  %v8966_v16 = vadd.f32 1.0, %v5394_v2  ;;  %vm2979_vm11 = vweird.f32 %v8905_v34  ;;  %v3455_v27 = vsub.f32 1.0, %v3454_v4  ;;  %v3462_v56 = vand.u32 2147483647, %v8899_v28 }
 0x2d4   : > { %v2030_v25 = vsub.f32 1.0, %v2029_v39  ;;  %v8970_v57 = vadd.f32 1.0, %v5396_v60  ;;  %v2506_v41 = vsel %vm8944_vm6, %v2505_v59, %v2501_v50  ;;  %v2977_v38 = vadd.f32 %v8905_v34, %v2976_v9  ;;  %vm9005_vm0 = vmor %vm2978_vm7, %vm2979_vm11 }
 0x2d5   : > { %5401 = vrcp.f32 %v8966_v16  ;;  %vm2033_vm12 = vweird.f32 %v8903_v30  ;;  %v3541_v5 = vmul.f32 %v2026_v63, %v8717_v12  ;;  %v3464_v36 = vand.u32 2147483648, %v8899_v28 }
 0x2d6   : > { %v2031_v3 = vmul.f32 %v5392_v10, %v2030_v25  ;;  %5403 = vrcp.f32 %v8970_v57  ;;  %v5398_v42 = vpop.eup %5397  ;;  %vm2035_vm13 = vmor %vm2033_vm12, %vm2034_vm10  ;;  %v2040_v55 = vor.u32 1.1754944e-38, %v2039_v18  ;;  %v8991_v46 = vadd.f32 %v8888_v15, %v996_v7 }
 0x2d7   : > { %vm3458_vm14 = vweird.f32 %v8899_v28  ;;  %vm2038_vm15 = vcmp.eq.f32.partialorder %v2037_v37, 8.507059e+37  ;;  %v4332_v32 = vmul.f32 -1.442695, %v8978_v53  ;;  %v8996_v30 = vadd.f32 %v8888_v15, %v838_v45  ;;  %v5400_v58 = vpop.eup %5399 }
 0x2d8   : > { %v2032_v61 = vadd.f32 %v5392_v10, %v2031_v3  ;;  %v8999_v12 = vmul.f32 %v2506_v41, %v8742_v48  ;;  %v3456_v1 = vmul.f32 %v8937_v49, %v3455_v27  ;;  %v9010_v62 = vadd.f32 1.0, %v5398_v42 }
 0x2d9   : > { %v2981_v31 = vsel %vm9005_vm0, %v8905_v34, %v2977_v38  ;;  %vm3459_vm1 = vweird.f32 %v8937_v49  ;;  %v9017_v17 = vadd.f32 1.0, %v5400_v58  ;;  %v4364_v51 = vmul.f32 -1.442695, %v8991_v46  ;;  %v918_v38 = vpop.f32.mrf.mxu1 }
 0x2da   : > { %v2036_v44 = vsel %vm2035_vm13, %v5392_v10, %v2032_v61  ;;  %5405 = vrcp.f32 %v9010_v62  ;;  %v9023_v10 = vadd.f32 %v8888_v15, %v1076_v8  ;;  %v4301_v35 = vmul.f32 -1.442695, %v8996_v30  ;;  %vm9046_vm5 = vmor %vm3458_vm14, %vm3459_vm1 }
 0x2db   : > { %v2041_v26 = vsel %vm2038_vm15, %v2040_v55, %v2036_v44  ;;  %v5402_v13 = vpop.eup %5401  ;;  %5407 = vpow2.f32 %v4332_v32  ;;  %v3457_v22 = vadd.f32 %v8937_v49, %v3456_v1  ;;  %v2517_v6 = vand.u32 2147483647, %v8966_v16 }
 0x2dc   : > { %v3542_v48 = vmul.f32 %v2041_v26, %v8828_v21  ;;  %v5404_v19 = vpop.eup %5403  ;;  %v2509_v14 = vmul.f32 %v5402_v13, %v8966_v16  ;;  %v2986_v21 = vsel %vm8972_vm9, %v2985_v11, %v2981_v31  ;;  %v2519_v39 = vand.u32 2147483648, %v8966_v16 }
 0x2dd   : > { %v2989_v34 = vmul.f32 %v5404_v19, %v8970_v57  ;;  %v2997_v63 = vand.u32 2147483647, %v8970_v57  ;;  %5409 = vrcp.f32 %v9017_v17  ;;  %vm2514_vm2 = vweird.f32 %v5402_v13 }
 0x2de   : > { %v4549_v23 = vpack.c.bf16 %v3542_v48, %v3541_v5  ;;  %v2510_v59 = vsub.f32 1.0, %v2509_v14  ;;  %v2999_v4 = vand.u32 2147483648, %v8970_v57  ;;  %5411 = vpow2.f32 %v4364_v51 }
 0x2df   : > { %v2990_v2 = vsub.f32 1.0, %v2989_v34  ;;  %vm9036_vm3 = vcmp.eq.f32.partialorder %v3462_v56, 8.507059e+37  ;;  %vm2994_vm4 = vweird.f32 %v5404_v19  ;;  %v4396_v60 = vmul.f32 -1.442695, %v9023_v10 }
 0x2e0   : > { %4809 = vst [vmem:[%s5897_s4 + $0x70] sm:$0xff] %v4549_v23   ;;  %v2511_v40 = vmul.f32 %v5402_v13, %v2510_v59  ;;  %5413 = vpow2.f32 %v4301_v35  ;;  %v5406_v50 = vpop.eup %5405  ;;  %v3605_v9 = vmul.f32 %v2986_v21, %v8776_v24  ;;  %vm2513_vm6 = vweird.f32 %v8966_v16 }
 0x2e1   : > { %v2991_v33 = vmul.f32 %v5404_v19, %v2990_v2  ;;  %vm2993_vm7 = vweird.f32 %v8970_v57  ;;  %v5408_v18 = vpop.eup %5407  ;;  %v3461_v0 = vsel %vm9046_vm5, %v8937_v49, %v3457_v22  ;;  %vm2515_vm8 = vmor %vm2513_vm6, %vm2514_vm2  ;;  %v2520_v24 = vor.u32 1.1754944e-38, %v2519_v39  ;;  %v1078_v39 = vpop.f32.mrf.mxu3 }
 0x2e2   : > { %v2512_v37 = vadd.f32 %v5402_v13, %v2511_v40  ;;  %v3469_v7 = vmul.f32 %v5406_v50, %v9010_v62  ;;  %vm2518_vm9 = vcmp.eq.f32.partialorder %v2517_v6, 8.507059e+37  ;;  %vm2995_vm10 = vmor %vm2993_vm7, %vm2994_vm4  ;;  %vm2998_vm11 = vcmp.eq.f32.partialorder %v2997_v63, 8.507059e+37  ;;  %v998_v6 = vpop.f32.mrf.mxu2 }
 0x2e3   : > { %v2992_v3 = vadd.f32 %v5404_v19, %v2991_v33  ;;  %v3000_v56 = vor.u32 1.1754944e-38, %v2999_v4  ;;  %v9058_v16 = vpop.eup %5409  ;;  %5415 = vpow2.f32 %v4396_v60  ;;  %v3479_v5 = vand.u32 2147483648, %v9010_v62 }
 0x2e4   : > { %v2516_v27 = vsel %vm2515_vm8, %v5402_v13, %v2512_v37  ;;  %v3470_v41 = vsub.f32 1.0, %v3469_v7  ;;  %v5412_v49 = vpop.eup %5411  ;;  %v9062_v55 = vadd.f32 1.0, %v5408_v18  ;;  %vm3474_vm12 = vweird.f32 %v5406_v50 }
 0x2e5   : > { %v2521_v57 = vsel %vm2518_vm9, %v2520_v24, %v2516_v27  ;;  %v2996_v45 = vsel %vm2995_vm10, %v5404_v19, %v2992_v3  ;;  %v3477_v58 = vand.u32 2147483647, %v9010_v62  ;;  %v3465_v54 = vor.u32 1.1754944e-38, %v3464_v36 }
 0x2e6   : > { %v3574_v61 = vmul.f32 %v2521_v57, %v8891_v20  ;;  %v3001_v42 = vsel %vm2998_vm11, %v3000_v56, %v2996_v45  ;;  %v5414_v44 = vpop.eup %5413  ;;  %v3471_v8 = vmul.f32 %v5406_v50, %v3470_v41  ;;  %v2044_v20 = vmul.f32 %v9058_v16, %v9017_v17 }
 0x2e7   : > { %v3606_v32 = vmul.f32 %v3001_v42, %v8897_v52  ;;  %v9072_v26 = vadd.f32 %v8888_v15, %v918_v38  ;;  %vm3473_vm13 = vweird.f32 %v9010_v62  ;;  %v9075_v52 = vadd.f32 1.0, %v5412_v49 }
 0x2e8   : > { %v4629_v1 = vpack.c.bf16 %v3574_v61, %v8999_v12  ;;  %v3472_v31 = vadd.f32 %v5406_v50, %v3471_v8  ;;  %v3466_v48 = vsel %vm9036_vm3, %v3465_v54, %v3461_v0  ;;  %vm3475_vm14 = vmor %vm3473_vm13, %vm3474_vm12  ;;  %v3480_v28 = vor.u32 1.1754944e-38, %v3479_v5 }
 0x2e9   : > { %v4709_v13 = vpack.c.bf16 %v3606_v32, %v3605_v9  ;;  %5417 = vrcp.f32 %v9062_v55  ;;  %v1496_v36 = vadd.f32 1.0, %v5414_v44  ;;  %v5416_v12 = vpop.eup %5415  ;;  %vm3478_vm15 = vcmp.eq.f32.partialorder %v3477_v58, 8.507059e+37 }
 0x2ea   : > { %4825 = vst [vmem:[%s5897_s4 + $0xf0] sm:$0xff] %v4629_v1   ;;  %v3476_v19 = vsel %vm3475_vm14, %v5406_v50, %v3472_v31  ;;  %v2045_v51 = vsub.f32 1.0, %v2044_v20  ;;  %v3637_v62 = vmul.f32 %v3466_v48, %v8812_v43  ;;  %5419 = vrcp.f32 %v9075_v52 }
 0x2eb   : > { %4841 = vst [vmem:[%s5897_s4 + $0x170] sm:$0xff] %v4709_v13   ;;  %v3481_v14 = vsel %vm3478_vm15, %v3480_v28, %v3476_v19  ;;  %5421 = vrcp.f32 %v1496_v36  ;;  %v4333_v34 = vmul.f32 -1.442695, %v9072_v26  ;;  %v9089_v59 = vadd.f32 1.0, %v5416_v12 }
 0x2ec   : > { %v3638_v23 = vmul.f32 %v3481_v14, %v8923_v47  ;;  %v2046_v22 = vmul.f32 %v9058_v16, %v2045_v51  ;;  %vm2048_vm0 = vweird.f32 %v9017_v17  ;;  %v9098_v47 = vadd.f32 %v8888_v15, %v998_v6 }
 0x2ed   : > { %5423 = vpow2.f32 %v4333_v34  ;;  %vm2049_vm1 = vweird.f32 %v9058_v16  ;;  %v9104_v4 = vadd.f32 %v8888_v15, %v1078_v39  ;;  %v2052_v11 = vand.u32 2147483647, %v9017_v17 }
 0x2ee   : > { %v4789_v35 = vpack.c.bf16 %v3638_v23, %v3637_v62  ;;  %v2047_v40 = vadd.f32 %v9058_v16, %v2046_v22  ;;  %5425 = vrcp.f32 %v9089_v59  ;;  %v2054_v60 = vand.u32 2147483648, %v9017_v17  ;;  %vm9110_vm2 = vmor %vm2048_vm0, %vm2049_vm1 }
 0x2ef   : > { %v9086_v21 = vpop.eup %5417  ;;  %v4365_v50 = vmul.f32 -1.442695, %v9098_v47  ;;  %v4397_v9 = vmul.f32 -1.442695, %v9104_v4  ;;  %v2067_v3 = vand.u32 2147483647, %v1496_v36  ;;  %vm2063_vm5 = vweird.f32 %v1496_v36 }
 0x2f0   : > { %4857 = vst [vmem:[%s5897_s4 + $0x1f0] sm:$0xff] %v4789_v35   ;;  %v9092_v2 = vpop.eup %5419  ;;  %v2524_v43 = vmul.f32 %v9086_v21, %v9062_v55  ;;  %v2051_v24 = vsel %vm9110_vm2, %v9058_v16, %v2047_v40  ;;  %v2069_v17 = vand.u32 2147483648, %v1496_v36  ;;  %vm2053_vm4 = vcmp.eq.f32.partialorder %v2052_v11, 8.507059e+37 }
 0x2f1   : > { %v5422_v63 = vpop.eup %5421  ;;  %v3004_v18 = vmul.f32 %v9092_v2, %v9075_v52  ;;  %5427 = vpow2.f32 %v4365_v50  ;;  %v2055_v57 = vor.u32 1.1754944e-38, %v2054_v60  ;;  %vm2068_vm7 = vcmp.eq.f32.partialorder %v2067_v3, 8.507059e+37 }
 0x2f2   : > { %v2059_v33 = vmul.f32 %v5422_v63, %v1496_v36  ;;  %v2525_v37 = vsub.f32 1.0, %v2524_v43  ;;  %vm2064_vm3 = vweird.f32 %v5422_v63  ;;  %5429 = vpow2.f32 %v4397_v9 }
 0x2f3   : > { %v5424_v15 = vpop.eup %5423  ;;  %v2056_v38 = vsel %vm2053_vm4, %v2055_v57, %v2051_v24  ;;  %vm2065_vm6 = vmor %vm2063_vm5, %vm2064_vm3  ;;  %v2070_v16 = vor.u32 1.1754944e-38, %v2069_v17  ;;  %v3005_v49 = vsub.f32 1.0, %v3004_v18  ;;  %vm2528_vm8 = vweird.f32 %v9062_v55 }
 0x2f4   : > { %v2060_v0 = vsub.f32 1.0, %v2059_v33  ;;  %v9119_v27 = vadd.f32 1.0, %v5424_v15  ;;  %v9121_v56 = vpop.eup %5425  ;;  %v2526_v45 = vmul.f32 %v9086_v21, %v2525_v37  ;;  %vm2529_vm9 = vweird.f32 %v9086_v21 }
 0x2f5   : > { %v3484_v61 = vmul.f32 %v9121_v56, %v9089_v59  ;;  %v3543_v8 = vmul.f32 %v2056_v38, %v8935_v29  ;;  %v2532_v20 = vand.u32 2147483647, %v9062_v55  ;;  %v2534_v13 = vand.u32 2147483648, %v9062_v55  ;;  %vm9144_vm10 = vmor %vm2528_vm8, %vm2529_vm9 }
 0x2f6   : > { %v2061_v7 = vmul.f32 %v5422_v63, %v2060_v0  ;;  %5431 = vrcp.f32 %v9119_v27  ;;  %v2527_v58 = vadd.f32 %v9086_v21, %v2526_v45  ;;  %v3006_v28 = vmul.f32 %v9092_v2, %v3005_v49 }
 0x2f7   : > { %v5428_v5 = vpop.eup %5427  ;;  %v3485_v36 = vsub.f32 1.0, %v3484_v61  ;;  %v3014_v51 = vand.u32 2147483648, %v9075_v52  ;;  %v3492_v62 = vand.u32 2147483647, %v9089_v59  ;;  %vm2533_vm11 = vcmp.eq.f32.partialorder %v2532_v20, 8.507059e+37 }
 0x2f8   : > { %v2062_v41 = vadd.f32 %v5422_v63, %v2061_v7  ;;  %v5430_v32 = vpop.eup %5429  ;;  %v9132_v1 = vadd.f32 1.0, %v5428_v5  ;;  %v2531_v14 = vsel %vm9144_vm10, %v9086_v21, %v2527_v58  ;;  %v2535_v55 = vor.u32 1.1754944e-38, %v2534_v13 }
 0x2f9   : > { %v9136_v31 = vadd.f32 1.0, %v5430_v32  ;;  %vm3008_vm12 = vweird.f32 %v9075_v52  ;;  %v3007_v34 = vadd.f32 %v9092_v2, %v3006_v28  ;;  %vm3009_vm13 = vweird.f32 %v9092_v2 }
 0x2fa   : > { %v2066_v42 = vsel %vm2065_vm6, %v5422_v63, %v2062_v41  ;;  %5433 = vrcp.f32 %v9132_v1  ;;  %v3486_v35 = vmul.f32 %v9121_v56, %v3485_v36  ;;  %v2549_v22 = vand.u32 2147483648, %v9119_v27  ;;  %vm9175_vm2 = vmor %vm3008_vm12, %vm3009_vm13 }
 0x2fb   : > { %v2071_v44 = vsel %vm2068_vm7, %v2070_v16, %v2066_v42  ;;  %5435 = vrcp.f32 %v9136_v31  ;;  %v2536_v6 = vsel %vm2533_vm11, %v2535_v55, %v2531_v14  ;;  %v2547_v43 = vand.u32 2147483647, %v9119_v27 }
 0x2fc   : > { %v3544_v54 = vmul.f32 %v2071_v44, %v8996_v30  ;;  %v5432_v48 = vpop.eup %5431  ;;  %v3012_v30 = vand.u32 2147483647, %v9075_v52  ;;  %v3015_v40 = vor.u32 1.1754944e-38, %v3014_v51  ;;  %vm3488_vm0 = vweird.f32 %v9089_v59 }
 0x2fd   : > { %v2539_v19 = vmul.f32 %v5432_v48, %v9119_v27  ;;  %vm2544_vm15 = vweird.f32 %v5432_v48  ;;  %vm9168_vm1 = vcmp.eq.f32.partialorder %v3492_v62, 8.507059e+37  ;;  %v3494_v33 = vand.u32 2147483648, %v9089_v59 }
 0x2fe   : > { %v4554_v12 = vpack.c.bf16 %v3544_v54, %v3543_v8  ;;  %vm9162_vm14 = vcmp.eq.f32.partialorder %v3012_v30, 8.507059e+37  ;;  %vm3489_vm3 = vweird.f32 %v9121_v56  ;;  %vm2543_vm4 = vweird.f32 %v9119_v27 }
 0x2ff   : > { %v2540_v23 = vsub.f32 1.0, %v2539_v19  ;;  %v3575_v37 = vmul.f32 %v2536_v6, %v8978_v53  ;;  %v3487_v18 = vadd.f32 %v9121_v56, %v3486_v35  ;;  %vm2545_vm5 = vmor %vm2543_vm4, %vm2544_vm15  ;;  %v2550_v0 = vor.u32 1.1754944e-38, %v2549_v22 }
 0x300   : > { %4810 = vst [vmem:[%s5897_s4 + $0x78] sm:$0xff] %v4554_v12   ;;  %v5434_v63 = vpop.eup %5433  ;;  %v3011_v15 = vsel %vm9175_vm2, %v9092_v2, %v3007_v34  ;;  %vm2548_vm6 = vcmp.eq.f32.partialorder %v2547_v43, 8.507059e+37  ;;  %v3027_v7 = vand.u32 2147483647, %v9132_v1  ;;  %v3029_v27 = vand.u32 2147483648, %v9132_v1  ;;  %vm9196_vm7 = vmor %vm3488_vm0, %vm3489_vm3 }
 0x301   : > { %v2541_v39 = vmul.f32 %v5432_v48, %v2540_v23  ;;  %v5436_v60 = vpop.eup %5435  ;;  %v3019_v25 = vmul.f32 %v5434_v63, %v9132_v1  ;;  %vm3024_vm8 = vweird.f32 %v5434_v63  ;;  %v3509_v41 = vand.u32 2147483648, %v9136_v31 }
 0x302   : > { %v3499_v52 = vmul.f32 %v5436_v60, %v9136_v31  ;;  %v3491_v38 = vsel %vm9196_vm7, %v9121_v56, %v3487_v18  ;;  %vm3504_vm9 = vweird.f32 %v5436_v60  ;;  %v3507_v49 = vand.u32 2147483647, %v9136_v31 }
 0x303   : > { %v2542_v9 = vadd.f32 %v5432_v48, %v2541_v39  ;;  %v3020_v3 = vsub.f32 1.0, %v3019_v25  ;;  %v3495_v59 = vor.u32 1.1754944e-38, %v3494_v33  ;;  %vm3023_vm10 = vweird.f32 %v9132_v1 }
 0x304   : > { %v3500_v53 = vsub.f32 1.0, %v3499_v52  ;;  %vm3025_vm11 = vmor %vm3023_vm10, %vm3024_vm8  ;;  %v3030_v5 = vor.u32 1.1754944e-38, %v3029_v27  ;;  %vm3503_vm12 = vweird.f32 %v9136_v31  ;;  %vm3028_vm13 = vcmp.eq.f32.partialorder %v3027_v7, 8.507059e+37 }
 0x305   : > { %v2546_v24 = vsel %vm2545_vm5, %v5432_v48, %v2542_v9  ;;  %v3021_v45 = vmul.f32 %v5434_v63, %v3020_v3  ;;  %v3496_v44 = vsel %vm9168_vm1, %v3495_v59, %v3491_v38  ;;  %vm3505_vm15 = vmor %vm3503_vm12, %vm3504_vm9  ;;  %v3510_v8 = vor.u32 1.1754944e-38, %v3509_v41 }
 0x306   : > { %v2551_v17 = vsel %vm2548_vm6, %v2550_v0, %v2546_v24  ;;  %v3501_v16 = vmul.f32 %v5436_v60, %v3500_v53  ;;  %v3639_v31 = vmul.f32 %v3496_v44, %v9023_v10 }
 0x307   : > { %v3576_v2 = vmul.f32 %v2551_v17, %v9072_v26  ;;  %v3022_v42 = vadd.f32 %v5434_v63, %v3021_v45  ;;  %v3016_v26 = vsel %vm9162_vm14, %v3015_v40, %v3011_v15  ;;  %vm3508_vm14 = vcmp.eq.f32.partialorder %v3507_v49, 8.507059e+37 }
 0x308   : > { %v3502_v56 = vadd.f32 %v5436_v60, %v3501_v16  ;;  %v3607_v1 = vmul.f32 %v3016_v26, %v8991_v46 }
 0x309   : > { %v4634_v61 = vpack.c.bf16 %v3576_v2, %v3575_v37  ;;  %v3026_v32 = vsel %vm3025_vm11, %v5434_v63, %v3022_v42 }
 0x30a   : > { %v3031_v58 = vsel %vm3028_vm13, %v3030_v5, %v3026_v32  ;;  %v3506_v54 = vsel %vm3505_vm15, %v5436_v60, %v3502_v56 }
 0x30b   : > { %4826 = vst [vmem:[%s5897_s4 + $0xf8] sm:$0xff] %v4634_v61   ;;  %v3608_v20 = vmul.f32 %v3031_v58, %v9098_v47  ;;  %v3511_v13 = vsel %vm3508_vm14, %v3510_v8, %v3506_v54 }
 0x30c   : > { %v3640_v48 = vmul.f32 %v3511_v13, %v9104_v4 }
 0x30d   : > { %v4714_v28 = vpack.c.bf16 %v3608_v20, %v3607_v1 }
 0x30e   : > { %v4794_v36 = vpack.c.bf16 %v3640_v48, %v3639_v31 }
 0x30f   : > { %4842 = vst [vmem:[%s5897_s4 + $0x178] sm:$0xff] %v4714_v28  }
 0x310   : > { %4858 = vst [vmem:[%s5897_s4 + $0x1f8] sm:$0xff] %v4794_v36  }
 0x311   : > { %5469 = shalt.err (!%p5466_p3)
}
 0x312   : > { %s5506_s29 = smov 64   ;;  %s5507_s4 = smov 4  }
 0x313   : > { %4883 = dma.vmem_to_hbm [thread:$0]  (%p5566_p5), %s3911_s27, 8192, %s3913_s28, %s3898_s30, %s5506_s29, %s5506_s29, %s5507_s4  }
 0x314 PF: > { %p4889_p4 = scmp.ge.s32.totalorder %s5504_s15, 2  ;;  %s3927_s17 = sand.u32 1, %s5492_s12  }
 0x315   : > { %s3928_s19 = scalar_lea.sflag [#allocation3], %s3927_s17 }
 0x316   : > { %p4886_p7 = pnand %p4889_p4, %p5570_p6 }
 0x318   : > { %p4887_p8 = pneg %p4886_p7 }
 0x31a   : > { %5487 = dma.done.wait (%p4887_p8), %s3928_s19, 8192  }
 0x31b   : > { %5489 = vsyncadd (%p4887_p8), %s3928_s19, 4294959104  ;;  %p13_p9 = scmp.ge.s32.totalorder %s5553_s18, 4   ;;  %s9575_s12 = smov %s5496_s13 }
 0x31c   : > { %s9576_s13 = smov %s5500_s14  ;;  %s9577_s14 = smov %s5564_s21 }
 0x31d   : > { %s9578_s15 = smov %s5553_s18  ;;  %15 = sbr.rel (!%p13_p9) target bundleno = 3 (0x3), region = 67 }
 0x322   :  { %3934 = vsyncpa [#allocation3], 1 }
 0x323   :  { %3936 = vsyncpa [#allocation3 + $0x1], 1 }

</bundles_post_ra>
